<compile_context>
chip_gen: v6e
topology: v6e:2x2x1
jax: 0.10.0
libtpu: 0.0.40
codegen_flags: <defaults>
</compile_context>

<pallas_src>
import jax
import jax.numpy as jnp
from jax.experimental import pallas as pl
from jax.experimental.pallas import tpu as pltpu

D_IN, D_H, D_OUT = 784, 1200, 10
D_OUT_PAD = 128          # lane-dense padded output width
BATCH_TILE = 256         # batch tile once B exceeds this


def _mlp_kernel(x_ref, w1_ref, b1_ref, w2_ref, b2_ref, w3_ref, b3_ref, o_ref):
    # Layer 1: Linear(784 -> 1200) + (eval-mode dropout = identity) + ReLU
    h = jnp.dot(x_ref[...], w1_ref[...], preferred_element_type=jnp.float32)
    h = jnp.maximum(h + b1_ref[...], 0.0).astype(jnp.bfloat16)
    # Layer 2: Linear(1200 -> 1200) + (eval-mode dropout = identity) + ReLU
    h = jnp.dot(h, w2_ref[...], preferred_element_type=jnp.float32)
    h = jnp.maximum(h + b2_ref[...], 0.0).astype(jnp.bfloat16)
    # Layer 3: Linear(1200 -> 10) (padded to 128 lanes, zero columns)
    out = jnp.dot(h, w3_ref[...], preferred_element_type=jnp.float32)
    o_ref[...] = (out + b3_ref[...]).astype(o_ref.dtype)


def teacher_model_forward(x, w1, b1, w2, b2, w3, b3):
    """x: any shape whose trailing dims flatten to 784 per row (e.g. (B,1,28,28)).

    Weights are stored (in_features, out_features) — the transpose of
    nn.Linear's (out, in) layout — so each layer is x @ W + b.
    Returns float32 logits of shape (B, 10).
    """
    x2d = x.reshape(-1, D_IN)
    B = x2d.shape[0]

    # bf16 feed, f32 accumulation inside the kernel.
    xb = x2d.astype(jnp.bfloat16)
    w1b = w1.astype(jnp.bfloat16)
    w2b = w2.astype(jnp.bfloat16)
    # Pad layer-3 weight/bias to a lane-dense 128-wide output.
    w3p = jnp.pad(w3, ((0, 0), (0, D_OUT_PAD - D_OUT))).astype(jnp.bfloat16)
    b3p = jnp.pad(b3, ((0, 0), (0, D_OUT_PAD - D_OUT))).astype(jnp.float32)
    b1f = b1.astype(jnp.float32)
    b2f = b2.astype(jnp.float32)

    # Batch tiling: single full-batch block for small B, otherwise tiles of
    # BATCH_TILE rows (pad B up so the grid divides evenly).
    if B <= BATCH_TILE:
        tb, b_pad = B, B
    else:
        tb = BATCH_TILE
        b_pad = -(-B // tb) * tb
        xb = jnp.pad(xb, ((0, b_pad - B), (0, 0)))
    grid = (b_pad // tb,)

    flops = 2 * b_pad * (D_IN * D_H + D_H * D_H + D_H * D_OUT_PAD)
    bytes_accessed = (
        (D_IN * D_H + D_H * D_H + D_H * D_OUT_PAD) * 2       # bf16 weights
        + (D_H + D_H + D_OUT_PAD) * 4                         # f32 biases
        + b_pad * D_IN * 2                                    # bf16 input
        + b_pad * D_OUT_PAD * 4                               # f32 output
    )

    out_pad = pl.pallas_call(
        _mlp_kernel,
        out_shape=jax.ShapeDtypeStruct((b_pad, D_OUT_PAD), jnp.float32),
        grid=grid,
        in_specs=[
            pl.BlockSpec((tb, D_IN), lambda i: (i, 0)),       # x: per-tile
            pl.BlockSpec((D_IN, D_H), lambda i: (0, 0)),      # weights/biases:
            pl.BlockSpec((1, D_H), lambda i: (0, 0)),         # resident across
            pl.BlockSpec((D_H, D_H), lambda i: (0, 0)),       # all grid steps
            pl.BlockSpec((1, D_H), lambda i: (0, 0)),
            pl.BlockSpec((D_H, D_OUT_PAD), lambda i: (0, 0)),
            pl.BlockSpec((1, D_OUT_PAD), lambda i: (0, 0)),
        ],
        out_specs=pl.BlockSpec((tb, D_OUT_PAD), lambda i: (i, 0)),
        compiler_params=pltpu.CompilerParams(
            dimension_semantics=("parallel",),
            vmem_limit_bytes=32 << 20,
        ),
        cost_estimate=pl.CostEstimate(
            flops=flops, transcendentals=0, bytes_accessed=bytes_accessed
        ),
    )(xb, w1b, b1f, w2b, b2f, w3p, b3p)

    return out_pad[:B, :D_OUT]


def init_params(key):
    """Deterministic init mimicking nn.Linear default
    (U[-1/sqrt(fan_in), 1/sqrt(fan_in)]). Weights stored (in, out)."""
    ks = jax.random.split(key, 6)

    def lin(kw, kb, fan_in, fan_out):
        bound = 1.0 / jnp.sqrt(float(fan_in))
        w = jax.random.uniform(kw, (fan_in, fan_out), jnp.float32, -bound, bound)
        b = jax.random.uniform(kb, (1, fan_out), jnp.float32, -bound, bound)
        return w, b

    w1, b1 = lin(ks[0], ks[1], D_IN, D_H)
    w2, b2 = lin(ks[2], ks[3], D_H, D_H)
    w3, b3 = lin(ks[4], ks[5], D_H, D_OUT)
    return w1, b1, w2, b2, w3, b3


if __name__ == "__main__":
    key = jax.random.PRNGKey(0)
    k_params, k_x = jax.random.split(key)

    params = init_params(k_params)
    # MNIST-like input: (batch=2, channels=1, 28, 28) -> flattened to (2, 784)
    x = jax.random.normal(k_x, (2, 1, 28, 28), jnp.float32)

    out = teacher_model_forward(x, *params)
    out = jax.block_until_ready(out)
    assert out.shape == (2, D_OUT)

    # Reference 1: plain-JAX bf16 path (same dtypes as the kernel).
    w1, b1, w2, b2, w3, b3 = params
    x2d = x.reshape(-1, D_IN)
    xb = x2d.astype(jnp.bfloat16)
    h = jnp.maximum(
        jnp.dot(xb, w1.astype(jnp.bfloat16), preferred_element_type=jnp.float32) + b1,
        0.0).astype(jnp.bfloat16)
    h = jnp.maximum(
        jnp.dot(h, w2.astype(jnp.bfloat16), preferred_element_type=jnp.float32) + b2,
        0.0).astype(jnp.bfloat16)
    ref_bf16 = jnp.dot(h, w3.astype(jnp.bfloat16),
                       preferred_element_type=jnp.float32) + b3
    assert jnp.allclose(out, ref_bf16, atol=1e-2, rtol=1e-2)

    # Reference 2: full-f32 reference (loose tolerance for bf16 weights).
    ref_f32 = jnp.maximum(x2d @ w1 + b1, 0.0)
    ref_f32 = jnp.maximum(ref_f32 @ w2 + b2, 0.0)
    ref_f32 = ref_f32 @ w3 + b3
    assert jnp.allclose(out, ref_f32, atol=5e-2, rtol=5e-2)

    print("KERNEL_OK")
</pallas_src>

<mosaic_0001>
module attributes {stable_mosaic.version = 11 : i64} {
  func.func @_mlp_kernel(%arg0: i32, %arg1: memref<2x784xbf16, #tpu.memory_space<vmem>>, %arg2: memref<784x1200xbf16, #tpu.memory_space<vmem>>, %arg3: memref<1x1200xf32, #tpu.memory_space<vmem>>, %arg4: memref<1200x1200xbf16, #tpu.memory_space<vmem>>, %arg5: memref<1x1200xf32, #tpu.memory_space<vmem>>, %arg6: memref<1200x128xbf16, #tpu.memory_space<vmem>>, %arg7: memref<1x128xf32, #tpu.memory_space<vmem>>, %arg8: memref<2x128xf32, #tpu.memory_space<vmem>>) attributes {dimension_semantics = [#tpu.dimension_semantics<parallel>], iteration_bounds = array<i64: 1>, scalar_prefetch = 0 : i64, scratch_operands = 0 : i64, tpu.core_type = #tpu.core_type<tc>, window_params = [{transform_indices = @transform_0, window_bounds = array<i64: 2, 784>}, {pipeline_mode = #tpu.pipeline_mode<synchronous>, transform_indices = @transform_1, window_bounds = array<i64: 784, 1200>}, {pipeline_mode = #tpu.pipeline_mode<synchronous>, transform_indices = @transform_2, window_bounds = array<i64: 1, 1200>}, {pipeline_mode = #tpu.pipeline_mode<synchronous>, transform_indices = @transform_3, window_bounds = array<i64: 1200, 1200>}, {pipeline_mode = #tpu.pipeline_mode<synchronous>, transform_indices = @transform_4, window_bounds = array<i64: 1, 1200>}, {pipeline_mode = #tpu.pipeline_mode<synchronous>, transform_indices = @transform_5, window_bounds = array<i64: 1200, 128>}, {pipeline_mode = #tpu.pipeline_mode<synchronous>, transform_indices = @transform_6, window_bounds = array<i64: 1, 128>}, {transform_indices = @transform_7, window_bounds = array<i64: 2, 128>}]} {
    %c0 = arith.constant 0 : index
    %c0_0 = arith.constant 0 : index
    %0 = vector.load %arg1[%c0, %c0_0] : memref<2x784xbf16, #tpu.memory_space<vmem>>, vector<2x784xbf16>
    %c0_1 = arith.constant 0 : index
    %c0_2 = arith.constant 0 : index
    %1 = vector.load %arg2[%c0_1, %c0_2] : memref<784x1200xbf16, #tpu.memory_space<vmem>>, vector<784x1200xbf16>
    %cst = arith.constant dense<0.000000e+00> : vector<2x1200xf32>
    %2 = tpu.matmul %0, %1, %cst {dimension_numbers = #tpu.dot_dimension_numbers<[1], [0], [0], [1], [0, 0, 1, 1], [], []>} : vector<2x784xbf16>, vector<784x1200xbf16>, vector<2x1200xf32> -> vector<2x1200xf32>
    %c0_3 = arith.constant 0 : index
    %c0_4 = arith.constant 0 : index
    %3 = vector.load %arg3[%c0_3, %c0_4] : memref<1x1200xf32, #tpu.memory_space<vmem>>, vector<1x1200xf32>
    %4 = vector.broadcast %3 : vector<1x1200xf32> to vector<2x1200xf32>
    %5 = arith.addf %2, %4 : vector<2x1200xf32>
    %cst_5 = arith.constant 0.000000e+00 : f32
    %6 = vector.broadcast %cst_5 : f32 to vector<2x1200xf32>
    %7 = arith.maximumf %5, %6 : vector<2x1200xf32>
    %8 = arith.truncf %7 : vector<2x1200xf32> to vector<2x1200xbf16>
    %c0_6 = arith.constant 0 : index
    %c0_7 = arith.constant 0 : index
    %9 = vector.load %arg4[%c0_6, %c0_7] : memref<1200x1200xbf16, #tpu.memory_space<vmem>>, vector<1200x1200xbf16>
    %cst_8 = arith.constant dense<0.000000e+00> : vector<2x1200xf32>
    %10 = tpu.matmul %8, %9, %cst_8 {dimension_numbers = #tpu.dot_dimension_numbers<[1], [0], [0], [1], [0, 0, 1, 1], [], []>} : vector<2x1200xbf16>, vector<1200x1200xbf16>, vector<2x1200xf32> -> vector<2x1200xf32>
    %c0_9 = arith.constant 0 : index
    %c0_10 = arith.constant 0 : index
    %11 = vector.load %arg5[%c0_9, %c0_10] : memref<1x1200xf32, #tpu.memory_space<vmem>>, vector<1x1200xf32>
    %12 = vector.broadcast %11 : vector<1x1200xf32> to vector<2x1200xf32>
    %13 = arith.addf %10, %12 : vector<2x1200xf32>
    %cst_11 = arith.constant 0.000000e+00 : f32
    %14 = vector.broadcast %cst_11 : f32 to vector<2x1200xf32>
    %15 = arith.maximumf %13, %14 : vector<2x1200xf32>
    %16 = arith.truncf %15 : vector<2x1200xf32> to vector<2x1200xbf16>
    %c0_12 = arith.constant 0 : index
    %c0_13 = arith.constant 0 : index
    %17 = vector.load %arg6[%c0_12, %c0_13] : memref<1200x128xbf16, #tpu.memory_space<vmem>>, vector<1200x128xbf16>
    %cst_14 = arith.constant dense<0.000000e+00> : vector<2x128xf32>
    %18 = tpu.matmul %16, %17, %cst_14 {dimension_numbers = #tpu.dot_dimension_numbers<[1], [0], [0], [1], [0, 0, 1, 1], [], []>} : vector<2x1200xbf16>, vector<1200x128xbf16>, vector<2x128xf32> -> vector<2x128xf32>
    %c0_15 = arith.constant 0 : index
    %c0_16 = arith.constant 0 : index
    %19 = vector.load %arg7[%c0_15, %c0_16] : memref<1x128xf32, #tpu.memory_space<vmem>>, vector<1x128xf32>
    %20 = vector.broadcast %19 : vector<1x128xf32> to vector<2x128xf32>
    %21 = arith.addf %18, %20 : vector<2x128xf32>
    %c0_17 = arith.constant 0 : index
    %c0_18 = arith.constant 0 : index
    %22 = vector.load %arg8[%c0_17, %c0_18] : memref<2x128xf32, #tpu.memory_space<vmem>>, vector<2x128xf32>
    tpu.vector_store %arg8[%c0_17, %c0_18], %21 {strides = array<i32>} : memref<2x128xf32, #tpu.memory_space<vmem>>, vector<2x128xf32>,
    return
  }
  func.func @transform_0(%arg0: i32) -> (i32, i32) {
    %c0_i32 = arith.constant 0 : i32
    %c0_i32_0 = arith.constant 0 : i32
    return %arg0, %c0_i32 : i32, i32
  }
  func.func @transform_1(%arg0: i32) -> (i32, i32) {
    %c0_i32 = arith.constant 0 : i32
    %c0_i32_0 = arith.constant 0 : i32
    %c0_i32_1 = arith.constant 0 : i32
    return %c0_i32, %c0_i32_0 : i32, i32
  }
  func.func @transform_2(%arg0: i32) -> (i32, i32) {
    %c0_i32 = arith.constant 0 : i32
    %c0_i32_0 = arith.constant 0 : i32
    %c0_i32_1 = arith.constant 0 : i32
    return %c0_i32, %c0_i32_0 : i32, i32
  }
  func.func @transform_3(%arg0: i32) -> (i32, i32) {
    %c0_i32 = arith.constant 0 : i32
    %c0_i32_0 = arith.constant 0 : i32
    %c0_i32_1 = arith.constant 0 : i32
    return %c0_i32, %c0_i32_0 : i32, i32
  }
  func.func @transform_4(%arg0: i32) -> (i32, i32) {
    %c0_i32 = arith.constant 0 : i32
    %c0_i32_0 = arith.constant 0 : i32
    %c0_i32_1 = arith.constant 0 : i32
    return %c0_i32, %c0_i32_0 : i32, i32
  }
  func.func @transform_5(%arg0: i32) -> (i32, i32) {
    %c0_i32 = arith.constant 0 : i32
    %c0_i32_0 = arith.constant 0 : i32
    %c0_i32_1 = arith.constant 0 : i32
    return %c0_i32, %c0_i32_0 : i32, i32
  }
  func.func @transform_6(%arg0: i32) -> (i32, i32) {
    %c0_i32 = arith.constant 0 : i32
    %c0_i32_0 = arith.constant 0 : i32
    %c0_i32_1 = arith.constant 0 : i32
    return %c0_i32, %c0_i32_0 : i32, i32
  }
  func.func @transform_7(%arg0: i32) -> (i32, i32) {
    %c0_i32 = arith.constant 0 : i32
    %c0_i32_0 = arith.constant 0 : i32
    return %arg0, %c0_i32 : i32, i32
  }
}

</mosaic_0001>

<bundles_post_ra>
// kernel: tpu_custom_call.1
= control target key start
LH: loop header
LB: loop body
LE: loop exit
PB: predicated region body
PF: predicated region fallthrough
CT: control target
= control target key end

     0   :  { %12 = vsyncpa [#allocation3], 0  ;;  %s14463_s0 = inlined_call_operand.hbm [shape: bf16[2,784], index: 0, kind: input, shape index: {}]   ;;  %s14464_s1 = inlined_call_operand.hbm [shape: bf16[784,1200], index: 1, kind: input, shape index: {}]   ;;  %s14465_s2 = inlined_call_operand.hbm [shape: f32[1,1200], index: 2, kind: input, shape index: {}]   ;;  %s14466_s3 = inlined_call_operand.hbm [shape: bf16[1200,1200], index: 3, kind: input, shape index: {}]   ;;  %s14467_s4 = inlined_call_operand.hbm [shape: f32[1,1200], index: 4, kind: input, shape index: {}]   ;;  %s14468_s5 = inlined_call_operand.hbm [shape: bf16[1200,128], index: 5, kind: input, shape index: {}]   ;;  %s14469_s6 = inlined_call_operand.hbm [shape: f32[1,128], index: 6, kind: input, shape index: {}]   ;;  %s14470_s7 = inlined_call_operand.hbm [shape: f32[2,128], index: 7, kind: output, shape index: {}]  }
   0x1   :  { %13 = vsyncpa [#allocation6], 0 }
   0x2   :  { %14 = vsyncpa [#allocation9], 0 }
   0x3   :  { %15 = vsyncpa [#allocation12], 0 }
   0x4   :  { %16 = vsyncpa [#allocation4], 0  ;;  %s13980_s24 = smov [#allocation5]  }
   0x5   :  { %s32_s25 = sshll.u32 %s13980_s24, 4  ;;  %s33_s25 = int_to_ptr.vmem [resolvable:$true] %s32_s25 }
   0x6   :  { %s13818_s26 = scalar_lea.vmem %s33_s25, 62720  ;;  %p13823_p1 = scmp.lt.s32.totalorder %s33_s25, %s33_s25 }
   0x7   :  { %p13819_p0 = scmp.ne.s32.totalorder %s33_s25, %s13818_s26  ;;  %p13824_p2 = scmp.lt.s32.totalorder %s13818_s26, %s13818_s26 }
   0x9   :  { %p13825_p3 = por %p13824_p2, %p13823_p1 }
   0xb   :  { %p13826_p4 = pnand %p13825_p3, %p13819_p0 }
   0xd   :  { %13829 = shalt.err (!%p13826_p4)
}
   0xe   :  { %s13981_s27 = smov 640   ;;  %s13982_s28 = smov 40  }
   0xf   :  { %38 = dma.hbm_to_vmem [thread:$0]  %s14464_s1, 62720, %s33_s25, [#allocation6], %s13981_s27, %s13981_s27, %s13982_s28  }
  0x10   :  { %s13983_s8 = smov [#allocation8]   ;;  %s13984_s10 = smov [#allocation11]  }
  0x11   :  { %s54_s9 = sshll.u32 %s13983_s8, 4  ;;  %s76_s11 = sshll.u32 %s13984_s10, 4  ;;  %s55_s9 = int_to_ptr.vmem [resolvable:$true] %s54_s9  ;;  %s77_s11 = int_to_ptr.vmem [resolvable:$true] %s76_s11 }
  0x12   :  { %s13838_s12 = scalar_lea.vmem %s55_s9, 96000  ;;  %p13843_p6 = scmp.lt.s32.totalorder %s55_s9, %s55_s9 }
  0x13   :  { %p13839_p5 = scmp.ne.s32.totalorder %s55_s9, %s13838_s12  ;;  %p13844_p7 = scmp.lt.s32.totalorder %s13838_s12, %s13838_s12 }
  0x15   :  { %p13845_p8 = por %p13844_p7, %p13843_p6 }
  0x17   :  { %p13846_p9 = pnand %p13845_p8, %p13839_p5 }
  0x19   :  { %13849 = shalt.err (!%p13846_p9)
}
  0x1a   :  { %60 = dma.hbm_to_vmem [thread:$0]  %s14466_s3, 96000, %s55_s9, [#allocation9], %s13981_s27, %s13981_s27, %s13982_s28  }
  0x1b   :  { %s13858_s15 = scalar_lea.vmem %s77_s11, 9600  ;;  %p13863_p11 = scmp.lt.s32.totalorder %s77_s11, %s77_s11 }
  0x1c   :  { %p13859_p10 = scmp.ne.s32.totalorder %s77_s11, %s13858_s15  ;;  %p13864_p12 = scmp.lt.s32.totalorder %s13858_s15, %s13858_s15 }
  0x1e   :  { %p13865_p13 = por %p13864_p12, %p13863_p11 }
  0x20   :  { %p13866_p0 = pnand %p13865_p13, %p13859_p10 }
  0x22   :  { %13869 = shalt.err (!%p13866_p0)
}
  0x23   :  { %s13985_s1 = smov 64   ;;  %s13986_s16 = smov 4  }
  0x24   :  { %82 = dma.hbm_to_vmem [thread:$0]  %s14468_s5, 9600, %s77_s11, [#allocation12], %s13985_s1, %s13985_s1, %s13986_s16  }
  0x25   :  { %s13987_s19 = smov [#allocation2]   ;;  %s13988_s21 = smov [#allocation7]  }
  0x26   :  { %s23_s20 = sshll.u32 %s13987_s19, 4  ;;  %s45_s22 = sshll.u32 %s13988_s21, 4  ;;  %s24_s20 = int_to_ptr.vmem [resolvable:$true] %s23_s20  ;;  %s46_s22 = int_to_ptr.vmem [resolvable:$true] %s45_s22 }
  0x27   :  { %s13878_s3 = scalar_lea.vmem %s24_s20, 112  ;;  %s13882_s23 = scalar_lea.vmem %s24_s20, 128 }
  0x28   :  { %p13879_p1 = scmp.ne.s32.totalorder %s24_s20, %s13878_s3  ;;  %p13883_p2 = scmp.lt.s32.totalorder %s24_s20, %s24_s20 }
  0x29   :  { %p13884_p3 = scmp.lt.s32.totalorder %s13882_s23, %s13878_s3 }
  0x2b   :  { %p13885_p4 = por %p13884_p3, %p13883_p2 }
  0x2d   :  { %p13886_p5 = pnand %p13885_p4, %p13879_p1 }
  0x2f   :  { %13889 = shalt.err (!%p13886_p5)
}
  0x30   :  { %26 = dma.hbm_to_vmem [thread:$0]  %s14463_s0, 112, %s24_s20, [#allocation3]  }
  0x31   :  { %s13898_s26 = scalar_lea.vmem %s46_s22, 160  ;;  %p13903_p7 = scmp.lt.s32.totalorder %s46_s22, %s46_s22 }
  0x32   :  { %p13899_p6 = scmp.ne.s32.totalorder %s46_s22, %s13898_s26  ;;  %p13904_p8 = scmp.lt.s32.totalorder %s13898_s26, %s13898_s26 }
  0x34   :  { %p13905_p9 = por %p13904_p8, %p13903_p7 }
  0x36   :  { %p13906_p10 = pnand %p13905_p9, %p13899_p6 }
  0x38   :  { %13909 = shalt.err (!%p13906_p10)
}
  0x39   :  { %48 = dma.hbm_to_vmem [thread:$0]  %s14465_s2, 160, %s46_s22, [#allocation6]  }
  0x3a   :  { %s13989_s28 = smov [#allocation10]   ;;  %s13990_s30 = smov [#allocation13]  }
  0x3b   :  { %s67_s29 = sshll.u32 %s13989_s28, 4  ;;  %s89_s8 = sshll.u32 %s13990_s30, 4  ;;  %s68_s29 = int_to_ptr.vmem [resolvable:$true] %s67_s29  ;;  %s90_s8 = int_to_ptr.vmem [resolvable:$true] %s89_s8 }
  0x3c   :  { %s13918_s9 = scalar_lea.vmem %s68_s29, 160  ;;  %p13923_p12 = scmp.lt.s32.totalorder %s68_s29, %s68_s29 }
  0x3d   :  { %p13919_p11 = scmp.ne.s32.totalorder %s68_s29, %s13918_s9  ;;  %p13924_p13 = scmp.lt.s32.totalorder %s13918_s9, %s13918_s9 }
  0x3f   :  { %p13925_p0 = por %p13924_p13, %p13923_p12 }
  0x41   :  { %p13926_p1 = pnand %p13925_p0, %p13919_p11 }
  0x43   :  { %13929 = shalt.err (!%p13926_p1)
}
  0x44   :  { %70 = dma.hbm_to_vmem [thread:$0]  %s14467_s4, 160, %s68_s29, [#allocation9]  }
  0x45   :  { %s13938_s11 = scalar_lea.vmem %s90_s8, 16  ;;  %s13942_s2 = scalar_lea.vmem %s90_s8, 32 }
  0x46   :  { %p13939_p2 = scmp.ne.s32.totalorder %s90_s8, %s13938_s11  ;;  %p13943_p3 = scmp.lt.s32.totalorder %s90_s8, %s90_s8 }
  0x47   :  { %p13944_p4 = scmp.lt.s32.totalorder %s13942_s2, %s13938_s11 }
  0x49   :  { %p13945_p5 = por %p13944_p4, %p13943_p3 }
  0x4b   :  { %p13946_p6 = pnand %p13945_p5, %p13939_p2 }
  0x4d   :  { %13949 = shalt.err (!%p13946_p6)
}
  0x4e   :  { %92 = dma.hbm_to_vmem [thread:$0]  %s14469_s6, 16, %s90_s8, [#allocation12]  }
  0x4f   :  { %13970 = dma.done.wait [#allocation3], 112  }
  0x50   :  { %13971 = vsyncadd [#allocation3], 4294967184 }
  0x51   :  { %13972 = dma.done.wait [#allocation6], 62880  }
  0x52   :  { %13973 = vsyncadd [#allocation6], 4294904416 }
  0x53   :  { %13974 = dma.done.wait [#allocation9], 96160  }
  0x54   :  { %13975 = vsyncadd [#allocation9], 4294871136 }
  0x55   :  { %13976 = dma.done.wait [#allocation12], 9616  }
  0x56   :  { %13977 = vsyncadd [#allocation12], 4294957680  ;;  %v11870_v0 = vld [vmem:[#allocation5 + $0x234] ss:$40 sps:$4 sm:$0xff]   ;;  %v11874_v2 = vld [vmem:[#allocation5 + $0x230] ss:$40 sps:$4 sm:$0xff]   ;;  %v610_v36 = vlaneseq }
  0x57   :  { %v11872_v1 = vld [vmem:[#allocation5 + $0x734] ss:$40 sps:$4 sm:$0xff]   ;;  %3169 = vmatprep.subr.bf16.mxu0 %v11870_v0  ;;  %v11875_v3 = vld [vmem:[#allocation5 + $0x730] ss:$40 sps:$4 sm:$0xff]   ;;  %v11876_v4 = vld [vmem:[#allocation5 + $0x1e4] ss:$40 sps:$4 sm:$0xff]  }
  0x58   :  { %3210 = vmatprep.subr.bf16.mxu1 %v11872_v1  ;;  %3170 = vmatpush1.bf16.msra.mxu0 %v11874_v2  ;;  %v11878_v5 = vld [vmem:[#allocation5 + $0x6e4] ss:$40 sps:$4 sm:$0xff]   ;;  %v11880_v6 = vld [vmem:[#allocation5 + $0x1e0] ss:$40 sps:$4 sm:$0xff]   ;;  %v11882_v8 = vld [vmem:[#allocation5 + $0x194] ss:$40 sps:$4 sm:$0xff]  }
  0x59   :  { %3211 = vmatpush1.bf16.msra.mxu1 %v11875_v3  ;;  %3171 = vmatprep.subr.bf16.mxu0 %v11876_v4  ;;  %v11881_v7 = vld [vmem:[#allocation5 + $0x6e0] ss:$40 sps:$4 sm:$0xff]   ;;  %v11884_v9 = vld [vmem:[#allocation5 + $0x694] ss:$40 sps:$4 sm:$0xff]   ;;  %v11886_v10 = vld [vmem:[#allocation5 + $0x190] ss:$40 sps:$4 sm:$0xff]  }
  0x5a   :  { %3212 = vmatprep.subr.bf16.mxu1 %v11878_v5  ;;  %v11887_v11 = vld [vmem:[#allocation5 + $0x690] ss:$40 sps:$4 sm:$0xff]   ;;  %v11888_v12 = vld [vmem:[#allocation5 + $0x144] ss:$40 sps:$4 sm:$0xff]   ;;  %v11892_v14 = vld [vmem:[#allocation5 + $0x140] ss:$40 sps:$4 sm:$0xff]  }
  0x5b   :  { %v11890_v13 = vld [vmem:[#allocation5 + $0x644] ss:$40 sps:$4 sm:$0xff]   ;;  %v11893_v15 = vld [vmem:[#allocation5 + $0x640] ss:$40 sps:$4 sm:$0xff]   ;;  %v11894_v16 = vld [vmem:[#allocation5 + $0xf4] ss:$40 sps:$4 sm:$0xff]  }
  0x5c   :  { %3172 = vmatpush1.bf16.msra.mxu0 %v11880_v6  ;;  %v11896_v17 = vld [vmem:[#allocation5 + $0x5f4] ss:$40 sps:$4 sm:$0xff]   ;;  %v11898_v18 = vld [vmem:[#allocation5 + $0xf0] ss:$40 sps:$4 sm:$0xff]   ;;  %v11900_v20 = vld [vmem:[#allocation5 + $0xa4] ss:$40 sps:$4 sm:$0xff]  }
  0x5d   :  { %3213 = vmatpush1.bf16.msra.mxu1 %v11881_v7  ;;  %3173 = vmatprep.subr.bf16.mxu0 %v11882_v8  ;;  %v11899_v19 = vld [vmem:[#allocation5 + $0x5f0] ss:$40 sps:$4 sm:$0xff]   ;;  %v11902_v21 = vld [vmem:[#allocation5 + $0x5a4] ss:$40 sps:$4 sm:$0xff]   ;;  %v11904_v22 = vld [vmem:[#allocation5 + $0xa0] ss:$40 sps:$4 sm:$0xff]  }
  0x5e   :  { %3214 = vmatprep.subr.bf16.mxu1 %v11884_v9  ;;  %v11905_v23 = vld [vmem:[#allocation5 + $0x5a0] ss:$40 sps:$4 sm:$0xff]   ;;  %v11906_v24 = vld [vmem:[#allocation5 + $0x54] ss:$40 sps:$4 sm:$0xff]   ;;  %v11910_v26 = vld [vmem:[#allocation5 + $0x50] ss:$40 sps:$4 sm:$0xff]  }
  0x5f   :  { %v11908_v25 = vld [vmem:[#allocation5 + $0x554] ss:$40 sps:$4 sm:$0xff]   ;;  %v11911_v27 = vld [vmem:[#allocation5 + $0x550] ss:$40 sps:$4 sm:$0xff]   ;;  %v11912_v28 = vld [vmem:[#allocation5 + $0x4] ss:$40 sps:$4 sm:$0xff]  }
  0x60   :  { %3174 = vmatpush1.bf16.msra.mxu0 %v11886_v10  ;;  %v11914_v29 = vld [vmem:[#allocation5 + $0x504] ss:$40 sps:$4 sm:$0xff]   ;;  %v11916_v30 = vld [vmem:[#allocation5] ss:$40 sps:$4 sm:$0xff]   ;;  %v11918_v32 = vld [vmem:[#allocation5 + $0x4b4] ss:$40 sps:$4 sm:$0xff]  }
  0x61   :  { %3215 = vmatpush1.bf16.msra.mxu1 %v11887_v11  ;;  %3175 = vmatprep.subr.bf16.mxu0 %v11888_v12  ;;  %v11917_v31 = vld [vmem:[#allocation5 + $0x500] ss:$40 sps:$4 sm:$0xff]   ;;  %v11920_v33 = vld [vmem:[#allocation5 + $0x9b4] ss:$40 sps:$4 sm:$0xff]   ;;  %v11922_v34 = vld [vmem:[#allocation5 + $0x4b0] ss:$40 sps:$4 sm:$0xff]  }
  0x62   :  { %3216 = vmatprep.subr.bf16.mxu1 %v11890_v13  ;;  %v11923_v35 = vld [vmem:[#allocation5 + $0x9b0] ss:$40 sps:$4 sm:$0xff]   ;;  %v13991_v37 = vmov 1966171168   ;;  %v11924_v39 = vld [vmem:[#allocation5 + $0x464] ss:$40 sps:$4 sm:$0xff]  }
  0x63   :  { %v663_v38 = vunpack.c.l.s4 %v13991_v37  ;;  %v11926_v40 = vld [vmem:[#allocation5 + $0x964] ss:$40 sps:$4 sm:$0xff]   ;;  %v11928_v41 = vld [vmem:[#allocation5 + $0x460] ss:$40 sps:$4 sm:$0xff]   ;;  %v14055_v42 = vshrl.u32 %v610_v36, 7  ;;  %vm3165_vm0 = vcmask 130048  }
  0x64   :  { %3176 = vmatpush1.bf16.msra.mxu0 %v11892_v14  ;;  %v11929_v44 = vld [vmem:[#allocation5 + $0x960] ss:$40 sps:$4 sm:$0xff]   ;;  %v11930_v45 = vld [vmem:[#allocation5 + $0x414] ss:$40 sps:$4 sm:$0xff]   ;;  %v11934_v47 = vld [vmem:[#allocation5 + $0x410] ss:$40 sps:$4 sm:$0xff]  }
  0x65   :  { %3217 = vmatpush1.bf16.msra.mxu1 %v11893_v15  ;;  %3177 = vmatprep.subr.bf16.mxu0 %v11894_v16  ;;  %v664_v43 = vunpack.c.0.s8 %v663_v38  ;;  %v11932_v46 = vld [vmem:[#allocation5 + $0x914] ss:$40 sps:$4 sm:$0xff]   ;;  %v11935_v48 = vld [vmem:[#allocation5 + $0x910] ss:$40 sps:$4 sm:$0xff]   ;;  %v11936_v50 = vld [vmem:[#allocation5 + $0x3c4] ss:$40 sps:$4 sm:$0xff]  }
  0x66   :  { %3218 = vmatprep.subr.bf16.mxu1 %v11896_v17  ;;  %v11938_v51 = vld [vmem:[#allocation5 + $0x8c4] ss:$40 sps:$4 sm:$0xff]   ;;  %v115_v52 = vld [vmem:[#allocation2] sm:$0x7f]  ;;  %v11940_v53 = vld [vmem:[#allocation5 + $0x3c0] ss:$40 sps:$4 sm:$0xff]  }
  0x67   :  { %v14058_v49 = vsub.s32 %v664_v43, %v14055_v42  ;;  %v661_v55 = vcombine.high %v115_v52, %v115_v52  ;;  %v11941_v56 = vld [vmem:[#allocation5 + $0x8c0] ss:$40 sps:$4 sm:$0xff]   ;;  %v11942_v57 = vld [vmem:[#allocation5 + $0x374] ss:$40 sps:$4 sm:$0xff]   ;;  %v11946_v61 = vld [vmem:[#allocation5 + $0x370] ss:$40 sps:$4 sm:$0xff]  }
  0x68   :  { %3178 = vmatpush1.bf16.msra.mxu0 %v11898_v18  ;;  %v11944_v58 = vld [vmem:[#allocation5 + $0x874] ss:$40 sps:$4 sm:$0xff]   ;;  %v11947_v0 = vld [vmem:[#allocation5 + $0x870] ss:$40 sps:$4 sm:$0xff]   ;;  %v11948_v1 = vld [vmem:[#allocation5 + $0x324] ss:$40 sps:$4 sm:$0xff]  }
  0x69   :  { %3219 = vmatpush1.bf16.msra.mxu1 %v11899_v19  ;;  %3179 = vmatprep.subr.bf16.mxu0 %v11900_v20  ;;  %v668_v54 = vrot.slane %v115_v52, %v14058_v49  ;;  %v675_v60 = vrot.slane %v661_v55, %v14058_v49  ;;  %v11950_v2 = vld [vmem:[#allocation5 + $0x824] ss:$40 sps:$4 sm:$0xff]   ;;  %v11952_v4 = vld [vmem:[#allocation5 + $0x320] ss:$40 sps:$4 sm:$0xff]   ;;  %v11954_v6 = vld [vmem:[#allocation5 + $0x2d4] ss:$40 sps:$4 sm:$0xff]  }
  0x6a   :  { %3220 = vmatprep.subr.bf16.mxu1 %v11902_v21  ;;  %v11953_v5 = vld [vmem:[#allocation5 + $0x820] ss:$40 sps:$4 sm:$0xff]   ;;  %v11956_v7 = vld [vmem:[#allocation5 + $0x7d4] ss:$40 sps:$4 sm:$0xff]   ;;  %v11958_v8 = vld [vmem:[#allocation5 + $0x2d0] ss:$40 sps:$4 sm:$0xff]  }
  0x6b   :  { %v676_v59 = vcombine.high %v668_v54, %v668_v54  ;;  %v14066_v63 = vrot.slane %v675_v60, %v14058_v49  ;;  %v11959_v9 = vld [vmem:[#allocation5 + $0x7d0] ss:$40 sps:$4 sm:$0xff]   ;;  %v11960_v10 = vld [vmem:[#allocation5 + $0x284] ss:$40 sps:$4 sm:$0xff]   ;;  %v11964_v12 = vld [vmem:[#allocation5 + $0x280] ss:$40 sps:$4 sm:$0xff]   ;;  %v14075_v13 = vrot.slane %v668_v54, %v14058_v49  ;;  %v677_v17 = vcombine.high %v675_v60, %v675_v60 }
  0x6c   :  { %3180 = vmatpush1.bf16.msra.mxu0 %v11904_v22  ;;  %v11962_v11 = vld [vmem:[#allocation5 + $0x784] ss:$40 sps:$4 sm:$0xff]   ;;  %v11965_v14 = vld [vmem:[#allocation5 + $0x780] ss:$40 sps:$4 sm:$0xff]   ;;  %v11968_v15 = vld [vmem:[#allocation5 + $0xc34] ss:$40 sps:$4 sm:$0xff]  }
  0x6d   :  { %3221 = vmatpush1.bf16.msra.mxu1 %v11905_v23  ;;  %3181 = vmatprep.subr.bf16.mxu0 %v11906_v24  ;;  %v14063_v62 = vrot.slane %v676_v59, %v14058_v49  ;;  %v11971_v16 = vld [vmem:[#allocation5 + $0x23c] ss:$40 sps:$4 sm:$0xff]   ;;  %v11966_v18 = vld [vmem:[#allocation5 + $0xc30] ss:$40 sps:$4 sm:$0xff]   ;;  %v14079_v19 = vcombine.high %v14075_v13, %v14075_v13  ;;  %v11977_v22 = vld [vmem:[#allocation5 + $0x1ec] ss:$40 sps:$4 sm:$0xff]   ;;  %v14082_v23 = vrot.slane %v677_v17, %v14058_v49 }
  0x6e   :  { %3222 = vmatprep.subr.bf16.mxu1 %v11908_v25  ;;  %v11969_v20 = vld [vmem:[#allocation5 + $0x238] ss:$40 sps:$4 sm:$0xff]   ;;  %v11974_v21 = vld [vmem:[#allocation5 + $0xbe4] ss:$40 sps:$4 sm:$0xff]   ;;  %v11975_v25 = vld [vmem:[#allocation5 + $0x1e8] ss:$40 sps:$4 sm:$0xff]  }
  0x6f   :  { %v14070_v3 = vcombine.high %v14063_v62, %v14063_v62  ;;  %3201 = vmatprep.mubr.bf16.mxu0 %v14063_v62  ;;  %v11972_v24 = vld [vmem:[#allocation5 + $0xbe0] ss:$40 sps:$4 sm:$0xff]   ;;  %v11990_v36 = vld [vmem:[#allocation5 + $0xaf0] ss:$40 sps:$4 sm:$0xff]   ;;  %v11998_v38 = vld [vmem:[#allocation5 + $0xaa4] ss:$40 sps:$4 sm:$0xff]  }
  0x70   :  { %3182 = vmatpush1.bf16.msra.mxu0 %v11910_v26  ;;  %v11980_v26 = vld [vmem:[#allocation5 + $0xb94] ss:$40 sps:$4 sm:$0xff]   ;;  %v11993_v37 = vld [vmem:[#allocation5 + $0xf8] ss:$40 sps:$4 sm:$0xff]   ;;  %v12022_v55 = vld [vmem:[#allocation5 + $0xe64] ss:$40 sps:$4 sm:$0xff]  }
  0x71   :  { %3223 = vmatpush1.bf16.msra.mxu1 %v11911_v27  ;;  %3183 = vmatprep.subr.bf16.mxu0 %v11912_v28  ;;  %v11983_v27 = vld [vmem:[#allocation5 + $0x19c] ss:$40 sps:$4 sm:$0xff]   ;;  %v11978_v28 = vld [vmem:[#allocation5 + $0xb90] ss:$40 sps:$4 sm:$0xff]   ;;  %v12008_v49 = vld [vmem:[#allocation5 + $0xa00] ss:$40 sps:$4 sm:$0xff]  }
  0x72   :  { %3224 = vmatprep.subr.bf16.mxu1 %v11914_v29  ;;  %3242 = vmatprep.mubr.bf16.mxu1 %v14070_v3  ;;  %v11981_v29 = vld [vmem:[#allocation5 + $0x198] ss:$40 sps:$4 sm:$0xff]   ;;  %v12004_v43 = vld [vmem:[#allocation5 + $0xa54] ss:$40 sps:$4 sm:$0xff]   ;;  %vm8563_vm1 = vcmask 392192   ;;  %s13993_s4 = smov [#allocation14]  }
  0x73   :  { %v12019_v52 = vld [vmem:[#allocation5 + $0x4bc] ss:$40 sps:$4 sm:$0xff]   ;;  %v12017_v54 = vld [vmem:[#allocation5 + $0x4b8] ss:$40 sps:$4 sm:$0xff]   ;;  %s10429_s6 = sshll.u32 %s13993_s4, 4  ;;  %s10430_s6 = int_to_ptr.vmem [resolvable:$true] %s10429_s6 }
  0x74   :  { %3184 = vmatpush1.bf16.msra.mxu0 %v11916_v30  ;;  %v11986_v30 = vld [vmem:[#allocation5 + $0xb44] ss:$40 sps:$4 sm:$0xff]   ;;  %v12028_v59 = vld [vmem:[#allocation5 + $0xe14] ss:$40 sps:$4 sm:$0xff]   ;;  %v12050_v17 = vld [vmem:[#allocation5 + $0xcd0] ss:$40 sps:$4 sm:$0xff]   ;;  %p13955_p8 = scmp.lt.s32.totalorder %s10430_s6, %s10430_s6 }
  0x75   :  { %3225 = vmatpush1.bf16.msra.mxu1 %v11917_v31  ;;  %3185 = vmatprep.subr.bf16.mxu0 %v11918_v32  ;;  %v11989_v31 = vld [vmem:[#allocation5 + $0x14c] ss:$40 sps:$4 sm:$0xff]   ;;  %v11984_v32 = vld [vmem:[#allocation5 + $0xb40] ss:$40 sps:$4 sm:$0xff]   ;;  %v12031_v60 = vld [vmem:[#allocation5 + $0x41c] ss:$40 sps:$4 sm:$0xff]  }
  0x76   :  { %3226 = vmatprep.subr.bf16.mxu1 %v11920_v33  ;;  %v11987_v33 = vld [vmem:[#allocation5 + $0x148] ss:$40 sps:$4 sm:$0xff]   ;;  %s13950_s14 = scalar_lea.vmem %s10430_s6, 32 }
  0x77   :  { %p13951_p7 = scmp.ne.s32.totalorder %s10430_s6, %s13950_s14  ;;  %p13956_p9 = scmp.lt.s32.totalorder %s13950_s14, %s13950_s14 }
  0x78   :  { %3186 = vmatpush2.bf16.msra.mxu0 %v11922_v34  ;;  %v11992_v34 = vld [vmem:[#allocation5 + $0xaf4] ss:$40 sps:$4 sm:$0xff]  }
  0x79   :  { %3227 = vmatpush2.bf16.msra.mxu1 %v11923_v35  ;;  %3187 = vmatprep.subr.bf16.mxu0 %v11924_v39  ;;  %v11995_v35 = vld [vmem:[#allocation5 + $0xfc] ss:$40 sps:$4 sm:$0xff]   ;;  %v12001_v39 = vld [vmem:[#allocation5 + $0xac] ss:$40 sps:$4 sm:$0xff]   ;;  %p13957_p10 = por %p13956_p9, %p13955_p8 }
  0x7a   :  { %3228 = vmatprep.subr.bf16.mxu1 %v11926_v40  ;;  %v11996_v40 = vld [vmem:[#allocation5 + $0xaa0] ss:$40 sps:$4 sm:$0xff]  }
  0x7b   :  { %p13958_p11 = pnand %p13957_p10, %p13951_p7 }
  0x7c   :  { %3188 = vmatpush2.bf16.msra.mxu0 %v11928_v41  ;;  %v11999_v41 = vld [vmem:[#allocation5 + $0xa8] ss:$40 sps:$4 sm:$0xff]  }
  0x7d   :  { %3229 = vmatpush2.bf16.msra.mxu1 %v11929_v44  ;;  %3189 = vmatprep.subr.bf16.mxu0 %v11930_v45  ;;  %v12007_v44 = vld [vmem:[#allocation5 + $0x5c] ss:$40 sps:$4 sm:$0xff]   ;;  %v12002_v45 = vld [vmem:[#allocation5 + $0xa50] ss:$40 sps:$4 sm:$0xff]  }
  0x7e   :  { %3230 = vmatprep.subr.bf16.mxu1 %v11932_v46  ;;  %v12005_v46 = vld [vmem:[#allocation5 + $0x58] ss:$40 sps:$4 sm:$0xff]  }
  0x80   :  { %3190 = vmatpush2.bf16.msra.mxu0 %v11934_v47  ;;  %v12010_v47 = vld [vmem:[#allocation5 + $0xa04] ss:$40 sps:$4 sm:$0xff]  }
  0x81   :  { %3231 = vmatpush2.bf16.msra.mxu1 %v11935_v48  ;;  %3191 = vmatprep.subr.bf16.mxu0 %v11936_v50  ;;  %v12013_v48 = vld [vmem:[#allocation5 + $0xc] ss:$40 sps:$4 sm:$0xff]   ;;  %v12011_v50 = vld [vmem:[#allocation5 + $0x8] ss:$40 sps:$4 sm:$0xff]  }
  0x82   :  { %3232 = vmatprep.subr.bf16.mxu1 %v11938_v51  ;;  %v12016_v51 = vld [vmem:[#allocation5 + $0xeb4] ss:$40 sps:$4 sm:$0xff]  }
  0x84   :  { %3192 = vmatpush2.bf16.msra.mxu0 %v11940_v53  ;;  %v12014_v53 = vld [vmem:[#allocation5 + $0xeb0] ss:$40 sps:$4 sm:$0xff]  }
  0x85   :  { %3233 = vmatpush2.bf16.msra.mxu1 %v11941_v56  ;;  %3193 = vmatprep.subr.bf16.mxu0 %v11942_v57  ;;  %v12025_v56 = vld [vmem:[#allocation5 + $0x46c] ss:$40 sps:$4 sm:$0xff]   ;;  %v12020_v57 = vld [vmem:[#allocation5 + $0xe60] ss:$40 sps:$4 sm:$0xff]  }
  0x86   :  { %3234 = vmatprep.subr.bf16.mxu1 %v11944_v58  ;;  %v12023_v58 = vld [vmem:[#allocation5 + $0x468] ss:$40 sps:$4 sm:$0xff]  }
  0x88   :  { %3194 = vmatpush2.bf16.msra.mxu0 %v11946_v61  ;;  %v12026_v61 = vld [vmem:[#allocation5 + $0xe10] ss:$40 sps:$4 sm:$0xff]  }
  0x89   :  { %3235 = vmatpush2.bf16.msra.mxu1 %v11947_v0  ;;  %3195 = vmatprep.subr.bf16.mxu0 %v11948_v1  ;;  %v12029_v0 = vld [vmem:[#allocation5 + $0x418] ss:$40 sps:$4 sm:$0xff]   ;;  %v12034_v1 = vld [vmem:[#allocation5 + $0xdc4] ss:$40 sps:$4 sm:$0xff]  }
  0x8a   :  { %3236 = vmatprep.subr.bf16.mxu1 %v11950_v2  ;;  %v12037_v2 = vld [vmem:[#allocation5 + $0x3cc] ss:$40 sps:$4 sm:$0xff]  }
  0x8c   :  { %3196 = vmatpush2.bf16.msra.mxu0 %v11952_v4  ;;  %v12032_v4 = vld [vmem:[#allocation5 + $0xdc0] ss:$40 sps:$4 sm:$0xff]  }
  0x8d   :  { %3237 = vmatpush2.bf16.msra.mxu1 %v11953_v5  ;;  %3197 = vmatprep.subr.bf16.mxu0 %v11954_v6  ;;  %v12035_v5 = vld [vmem:[#allocation5 + $0x3c8] ss:$40 sps:$4 sm:$0xff]   ;;  %v12040_v6 = vld [vmem:[#allocation5 + $0xd74] ss:$40 sps:$4 sm:$0xff]  }
  0x8e   :  { %3238 = vmatprep.subr.bf16.mxu1 %v11956_v7  ;;  %v12043_v7 = vld [vmem:[#allocation5 + $0x37c] ss:$40 sps:$4 sm:$0xff]  }
  0x90   :  { %3198 = vmatpush2.bf16.msra.mxu0 %v11958_v8  ;;  %v12038_v8 = vld [vmem:[#allocation5 + $0xd70] ss:$40 sps:$4 sm:$0xff]  }
  0x91   :  { %3239 = vmatpush2.bf16.msra.mxu1 %v11959_v9  ;;  %3199 = vmatprep.subr.bf16.mxu0 %v11960_v10  ;;  %v12041_v9 = vld [vmem:[#allocation5 + $0x378] ss:$40 sps:$4 sm:$0xff]   ;;  %v12046_v10 = vld [vmem:[#allocation5 + $0xd24] ss:$40 sps:$4 sm:$0xff]  }
  0x92   :  { %3240 = vmatprep.subr.bf16.mxu1 %v11962_v11  ;;  %v12049_v11 = vld [vmem:[#allocation5 + $0x32c] ss:$40 sps:$4 sm:$0xff]  }
  0x94   :  { %3200 = vmatpush2.bf16.msra.mxu0 %v11964_v12  ;;  %v12044_v12 = vld [vmem:[#allocation5 + $0xd20] ss:$40 sps:$4 sm:$0xff]  }
  0x95   :  { %3241 = vmatpush2.bf16.msra.mxu1 %v11965_v14  ;;  %3251 = vmatprep.subr.bf16.mxu0 %v11968_v15  ;;  %v12047_v14 = vld [vmem:[#allocation5 + $0x328] ss:$40 sps:$4 sm:$0xff]   ;;  %v12052_v15 = vld [vmem:[#allocation5 + $0xcd4] ss:$40 sps:$4 sm:$0xff]  }
  0x96   :  { %3333 = vmatprep.subr.bf16.mxu1 %v11971_v16  ;;  %v12055_v16 = vld [vmem:[#allocation5 + $0x2dc] ss:$40 sps:$4 sm:$0xff]  }
  0x97   :  { %3202 = vmatmul.mubr.bf16.vlgmr.msra.gmra.mxu0 %v14075_v13 }
  0x98   :  { %3243 = vmatmul.mubr.bf16.vlgmr.msra.gmra.mxu1 %v14079_v19  ;;  %3252 = vmatpush1.bf16.msra.mxu0 %v11966_v18  ;;  %v12053_v18 = vld [vmem:[#allocation5 + $0x2d8] ss:$40 sps:$4 sm:$0xff]  }
  0x99   :  { %3334 = vmatpush1.bf16.msra.mxu1 %v11969_v20  ;;  %3253 = vmatprep.subr.bf16.mxu0 %v11974_v21  ;;  %v12058_v20 = vld [vmem:[#allocation5 + $0xc84] ss:$40 sps:$4 sm:$0xff]  }
  0x9a   :  { %3335 = vmatprep.subr.bf16.mxu1 %v11977_v22  ;;  %3283 = vmatprep.mubr.bf16.mxu0 %v14082_v23  ;;  %v12061_v21 = vld [vmem:[#allocation5 + $0x28c] ss:$40 sps:$4 sm:$0xff]   ;;  %v12056_v22 = vld [vmem:[#allocation5 + $0xc80] ss:$40 sps:$4 sm:$0xff]  }
  0x9b   :  { %3365 = vmatprep.mubr.bf16.mxu1 %v14063_v62 }
  0x9c   :  { %3254 = vmatpush1.bf16.msra.mxu0 %v11972_v24  ;;  %v12059_v24 = vld [vmem:[#allocation5 + $0x288] ss:$40 sps:$4 sm:$0xff]  }
  0x9d   :  { %3336 = vmatpush1.bf16.msra.mxu1 %v11975_v25  ;;  %3255 = vmatprep.subr.bf16.mxu0 %v11980_v26  ;;  %v12065_v25 = vld [vmem:[#allocation5 + $0xf04] ss:$40 sps:$4 sm:$0xff]  }
  0x9e   :  { %3337 = vmatprep.subr.bf16.mxu1 %v11983_v27  ;;  %v12068_v26 = vld [vmem:[#allocation5 + $0xc3c] ss:$40 sps:$4 sm:$0xff]   ;;  %v12063_v27 = vld [vmem:[#allocation5 + $0xf00] ss:$40 sps:$4 sm:$0xff]  }
  0xa0   :  { %3256 = vmatpush1.bf16.msra.mxu0 %v11978_v28  ;;  %v12066_v28 = vld [vmem:[#allocation5 + $0xc38] ss:$40 sps:$4 sm:$0xff]  }
  0xa1   :  { %3338 = vmatpush1.bf16.msra.mxu1 %v11981_v29  ;;  %3257 = vmatprep.subr.bf16.mxu0 %v11986_v30  ;;  %v12071_v29 = vld [vmem:[#allocation5 + $0xbec] ss:$40 sps:$4 sm:$0xff]   ;;  %v12074_v30 = vld [vmem:[#allocation5 + $0x73c] ss:$40 sps:$4 sm:$0xff]  }
  0xa2   :  { %3339 = vmatprep.subr.bf16.mxu1 %v11989_v31  ;;  %v12069_v31 = vld [vmem:[#allocation5 + $0xbe8] ss:$40 sps:$4 sm:$0xff]  }
  0xa4   :  { %3258 = vmatpush1.bf16.msra.mxu0 %v11984_v32  ;;  %v13992_v32 = vmov 0  }
  0xa5   :  { %3340 = vmatpush1.bf16.msra.mxu1 %v11987_v33  ;;  %3259 = vmatprep.subr.bf16.mxu0 %v11992_v34  ;;  %v12077_v33 = vld [vmem:[#allocation5 + $0xb9c] ss:$40 sps:$4 sm:$0xff]   ;;  %v12072_v34 = vld [vmem:[#allocation5 + $0x738] ss:$40 sps:$4 sm:$0xff]  }
  0xa6   :  { %3341 = vmatprep.subr.bf16.mxu1 %v11995_v35  ;;  %v14094_v35 = vcombine.high %v14066_v63, %v14066_v63 }
  0xa8   :  { %3260 = vmatpush1.bf16.msra.mxu0 %v11990_v36  ;;  %v12075_v36 = vld [vmem:[#allocation5 + $0xb98] ss:$40 sps:$4 sm:$0xff]  }
  0xa9   :  { %3342 = vmatpush1.bf16.msra.mxu1 %v11993_v37  ;;  %3261 = vmatprep.subr.bf16.mxu0 %v11998_v38  ;;  %v12080_v37 = vld [vmem:[#allocation5 + $0x6ec] ss:$40 sps:$4 sm:$0xff]  }
  0xaa   :  { %3343 = vmatprep.subr.bf16.mxu1 %v12001_v39  ;;  %v12083_v38 = vld [vmem:[#allocation5 + $0xb4c] ss:$40 sps:$4 sm:$0xff]   ;;  %v12078_v39 = vld [vmem:[#allocation5 + $0x6e8] ss:$40 sps:$4 sm:$0xff]  }
  0xac   :  { %3262 = vmatpush1.bf16.msra.mxu0 %v11996_v40  ;;  %v12081_v40 = vld [vmem:[#allocation5 + $0xb48] ss:$40 sps:$4 sm:$0xff]  }
  0xad   :  { %3344 = vmatpush1.bf16.msra.mxu1 %v11999_v41  ;;  %3263 = vmatprep.subr.bf16.mxu0 %v12004_v43  ;;  %v12086_v41 = vld [vmem:[#allocation5 + $0x69c] ss:$40 sps:$4 sm:$0xff]  }
  0xae   :  { %3345 = vmatprep.subr.bf16.mxu1 %v12007_v44  ;;  %v12089_v43 = vld [vmem:[#allocation5 + $0xafc] ss:$40 sps:$4 sm:$0xff]   ;;  %v12084_v44 = vld [vmem:[#allocation5 + $0x698] ss:$40 sps:$4 sm:$0xff]  }
  0xb0   :  { %3264 = vmatpush1.bf16.msra.mxu0 %v12002_v45  ;;  %v12087_v45 = vld [vmem:[#allocation5 + $0xaf8] ss:$40 sps:$4 sm:$0xff]  }
  0xb1   :  { %3346 = vmatpush1.bf16.msra.mxu1 %v12005_v46  ;;  %3265 = vmatprep.subr.bf16.mxu0 %v12010_v47  ;;  %v12092_v46 = vld [vmem:[#allocation5 + $0x64c] ss:$40 sps:$4 sm:$0xff]  }
  0xb2   :  { %3347 = vmatprep.subr.bf16.mxu1 %v12013_v48  ;;  %v12095_v47 = vld [vmem:[#allocation5 + $0xaac] ss:$40 sps:$4 sm:$0xff]   ;;  %v12090_v48 = vld [vmem:[#allocation5 + $0x648] ss:$40 sps:$4 sm:$0xff]  }
  0xb4   :  { %3266 = vmatpush1.bf16.msra.mxu0 %v12008_v49  ;;  %v12093_v49 = vld [vmem:[#allocation5 + $0xaa8] ss:$40 sps:$4 sm:$0xff]  }
  0xb5   :  { %3348 = vmatpush1.bf16.msra.mxu1 %v12011_v50  ;;  %3267 = vmatprep.subr.bf16.mxu0 %v12016_v51  ;;  %v12098_v50 = vld [vmem:[#allocation5 + $0x5fc] ss:$40 sps:$4 sm:$0xff]  }
  0xb6   :  { %3349 = vmatprep.subr.bf16.mxu1 %v12019_v52  ;;  %v12101_v51 = vld [vmem:[#allocation5 + $0xa5c] ss:$40 sps:$4 sm:$0xff]   ;;  %v12096_v52 = vld [vmem:[#allocation5 + $0x5f8] ss:$40 sps:$4 sm:$0xff]  }
  0xb8   :  { %3268 = vmatpush2.bf16.msra.mxu0 %v12014_v53  ;;  %v12099_v53 = vld [vmem:[#allocation5 + $0xa58] ss:$40 sps:$4 sm:$0xff]  }
  0xb9   :  { %3350 = vmatpush2.bf16.msra.mxu1 %v12017_v54  ;;  %3269 = vmatprep.subr.bf16.mxu0 %v12022_v55  ;;  %v12104_v54 = vld [vmem:[#allocation5 + $0x5ac] ss:$40 sps:$4 sm:$0xff]  }
  0xba   :  { %3351 = vmatprep.subr.bf16.mxu1 %v12025_v56  ;;  %v12107_v55 = vld [vmem:[#allocation5 + $0xa0c] ss:$40 sps:$4 sm:$0xff]   ;;  %v12102_v56 = vld [vmem:[#allocation5 + $0x5a8] ss:$40 sps:$4 sm:$0xff]  }
  0xbc   :  { %3270 = vmatpush2.bf16.msra.mxu0 %v12020_v57  ;;  %v12105_v57 = vld [vmem:[#allocation5 + $0xa08] ss:$40 sps:$4 sm:$0xff]  }
  0xbd   :  { %3352 = vmatpush2.bf16.msra.mxu1 %v12023_v58  ;;  %3271 = vmatprep.subr.bf16.mxu0 %v12028_v59  ;;  %v12110_v58 = vld [vmem:[#allocation5 + $0x55c] ss:$40 sps:$4 sm:$0xff]  }
  0xbe   :  { %3353 = vmatprep.subr.bf16.mxu1 %v12031_v60  ;;  %v12113_v59 = vld [vmem:[#allocation5 + $0xebc] ss:$40 sps:$4 sm:$0xff]   ;;  %v12108_v60 = vld [vmem:[#allocation5 + $0x558] ss:$40 sps:$4 sm:$0xff]  }
  0xc0   :  { %3272 = vmatpush2.bf16.msra.mxu0 %v12026_v61  ;;  %v12111_v61 = vld [vmem:[#allocation5 + $0xeb8] ss:$40 sps:$4 sm:$0xff]  }
  0xc1   :  { %3354 = vmatpush2.bf16.msra.mxu1 %v12029_v0  ;;  %3273 = vmatprep.subr.bf16.mxu0 %v12034_v1  ;;  %v12116_v0 = vld [vmem:[#allocation5 + $0x50c] ss:$40 sps:$4 sm:$0xff]  }
  0xc2   :  { %3355 = vmatprep.subr.bf16.mxu1 %v12037_v2  ;;  %v12119_v1 = vld [vmem:[#allocation5 + $0xe6c] ss:$40 sps:$4 sm:$0xff]   ;;  %v12114_v2 = vld [vmem:[#allocation5 + $0x508] ss:$40 sps:$4 sm:$0xff]  }
  0xc4   :  { %3274 = vmatpush2.bf16.msra.mxu0 %v12032_v4  ;;  %v12117_v4 = vld [vmem:[#allocation5 + $0xe68] ss:$40 sps:$4 sm:$0xff]  }
  0xc5   :  { %3356 = vmatpush2.bf16.msra.mxu1 %v12035_v5  ;;  %3275 = vmatprep.subr.bf16.mxu0 %v12040_v6  ;;  %v12122_v5 = vld [vmem:[#allocation5 + $0x9bc] ss:$40 sps:$4 sm:$0xff]  }
  0xc6   :  { %3357 = vmatprep.subr.bf16.mxu1 %v12043_v7  ;;  %v12125_v6 = vld [vmem:[#allocation5 + $0xe1c] ss:$40 sps:$4 sm:$0xff]   ;;  %v12120_v7 = vld [vmem:[#allocation5 + $0x9b8] ss:$40 sps:$4 sm:$0xff]  }
  0xc8   :  { %3276 = vmatpush2.bf16.msra.mxu0 %v12038_v8  ;;  %v12123_v8 = vld [vmem:[#allocation5 + $0xe18] ss:$40 sps:$4 sm:$0xff]  }
  0xc9   :  { %3358 = vmatpush2.bf16.msra.mxu1 %v12041_v9  ;;  %3277 = vmatprep.subr.bf16.mxu0 %v12046_v10  ;;  %v12128_v9 = vld [vmem:[#allocation5 + $0x96c] ss:$40 sps:$4 sm:$0xff]  }
  0xca   :  { %3359 = vmatprep.subr.bf16.mxu1 %v12049_v11  ;;  %v12131_v10 = vld [vmem:[#allocation5 + $0xdcc] ss:$40 sps:$4 sm:$0xff]   ;;  %v12126_v11 = vld [vmem:[#allocation5 + $0x968] ss:$40 sps:$4 sm:$0xff]  }
  0xcc   :  { %3278 = vmatpush2.bf16.msra.mxu0 %v12044_v12  ;;  %v12129_v12 = vld [vmem:[#allocation5 + $0xdc8] ss:$40 sps:$4 sm:$0xff]  }
  0xcd   :  { %3360 = vmatpush2.bf16.msra.mxu1 %v12047_v14  ;;  %3279 = vmatprep.subr.bf16.mxu0 %v12052_v15  ;;  %v12134_v14 = vld [vmem:[#allocation5 + $0x91c] ss:$40 sps:$4 sm:$0xff]  }
  0xce   :  { %3361 = vmatprep.subr.bf16.mxu1 %v12055_v16  ;;  %v12137_v15 = vld [vmem:[#allocation5 + $0xd7c] ss:$40 sps:$4 sm:$0xff]   ;;  %v12132_v16 = vld [vmem:[#allocation5 + $0x918] ss:$40 sps:$4 sm:$0xff]  }
  0xd0   :  { %3280 = vmatpush2.bf16.msra.mxu0 %v12050_v17  ;;  %v12135_v17 = vld [vmem:[#allocation5 + $0xd78] ss:$40 sps:$4 sm:$0xff]  }
  0xd1   :  { %3362 = vmatpush2.bf16.msra.mxu1 %v12053_v18  ;;  %3281 = vmatprep.subr.bf16.mxu0 %v12058_v20  ;;  %v12140_v18 = vld [vmem:[#allocation5 + $0x8cc] ss:$40 sps:$4 sm:$0xff]  }
  0xd2   :  { %3363 = vmatprep.subr.bf16.mxu1 %v12061_v21  ;;  %v12143_v20 = vld [vmem:[#allocation5 + $0xd2c] ss:$40 sps:$4 sm:$0xff]   ;;  %v12138_v21 = vld [vmem:[#allocation5 + $0x8c8] ss:$40 sps:$4 sm:$0xff]  }
  0xd4   :  { %3282 = vmatpush2.bf16.msra.mxu0 %v12056_v22  ;;  %v12141_v22 = vld [vmem:[#allocation5 + $0xd28] ss:$40 sps:$4 sm:$0xff]  }
  0xd5   :  { %3364 = vmatpush2.bf16.msra.mxu1 %v12059_v24  ;;  %3306 = vmatprep.subr.bf16.mxu0 %v12065_v25  ;;  %v12146_v24 = vld [vmem:[#allocation5 + $0x87c] ss:$40 sps:$4 sm:$0xff]  }
  0xd6   :  { %3415 = vmatprep.subr.bf16.mxu1 %v12068_v26  ;;  %v12149_v25 = vld [vmem:[#allocation5 + $0xcdc] ss:$40 sps:$4 sm:$0xff]   ;;  %v12144_v26 = vld [vmem:[#allocation5 + $0x878] ss:$40 sps:$4 sm:$0xff]  }
  0xd7   :  { %3284 = vmatmul.mubr.bf16.vlgmr.msra.gmra.mxu0 %v14066_v63 }
  0xd8   :  { %3366 = vmatmul.mubr.bf16.vlgmr.msra.gmra.mxu1 %v14075_v13  ;;  %3307 = vmatpush1.bf16.msra.mxu0 %v12063_v27  ;;  %v12147_v27 = vld [vmem:[#allocation5 + $0xcd8] ss:$40 sps:$4 sm:$0xff]  }
  0xd9   :  { %3416 = vmatpush1.bf16.msra.mxu1 %v12066_v28  ;;  %3324 = vmatprep.mubr.bf16.mxu0 %v13992_v32  ;;  %v12152_v28 = vld [vmem:[#allocation5 + $0x82c] ss:$40 sps:$4 sm:$0xff]  }
  0xda   :  { %3417 = vmatprep.subr.bf16.mxu1 %v12071_v29  ;;  %3374 = vmatprep.subr.bf16.mxu0 %v12074_v30  ;;  %v12155_v29 = vld [vmem:[#allocation5 + $0xc8c] ss:$40 sps:$4 sm:$0xff]   ;;  %v12150_v30 = vld [vmem:[#allocation5 + $0x828] ss:$40 sps:$4 sm:$0xff]  }
  0xdb   :  { %3447 = vmatprep.mubr.bf16.mxu1 %v14082_v23 }
  0xdd   :  { %3418 = vmatpush1.bf16.msra.mxu1 %v12069_v31  ;;  %v12153_v31 = vld [vmem:[#allocation5 + $0xc88] ss:$40 sps:$4 sm:$0xff]  }
  0xde   :  { %3419 = vmatprep.subr.bf16.mxu1 %v12077_v33  ;;  %v12158_v33 = vld [vmem:[#allocation5 + $0x7dc] ss:$40 sps:$4 sm:$0xff]  }
  0xdf   :  { %10931 = vmatmul.mubr.msk.bf16.vlgmr.msra.gmra.mxu0 %vm3165_vm0, %v14094_v35 }
  0xe0   :  { %3375 = vmatpush1.bf16.msra.mxu0 %v12072_v34  ;;  %3406 = vmatprep.mubr.bf16.mxu0 %v14070_v3  ;;  %v12161_v34 = vld [vmem:[#allocation5 + $0x744] ss:$40 sps:$4 sm:$0xff]  }
  0xe1   :  { %3420 = vmatpush1.bf16.msra.mxu1 %v12075_v36  ;;  %3376 = vmatprep.subr.bf16.mxu0 %v12080_v37  ;;  %v12156_v36 = vld [vmem:[#allocation5 + $0x7d8] ss:$40 sps:$4 sm:$0xff]  }
  0xe2   :  { %3421 = vmatprep.subr.bf16.mxu1 %v12083_v38  ;;  %v12159_v37 = vld [vmem:[#allocation5 + $0x740] ss:$40 sps:$4 sm:$0xff]   ;;  %v12164_v38 = vld [vmem:[#allocation5 + $0x78c] ss:$40 sps:$4 sm:$0xff]  }
  0xe4   :  { %3377 = vmatpush1.bf16.msra.mxu0 %v12078_v39  ;;  %v12167_v39 = vld [vmem:[#allocation5 + $0x6f4] ss:$40 sps:$4 sm:$0xff]  }
  0xe5   :  { %3422 = vmatpush1.bf16.msra.mxu1 %v12081_v40  ;;  %3378 = vmatprep.subr.bf16.mxu0 %v12086_v41  ;;  %v12162_v40 = vld [vmem:[#allocation5 + $0x788] ss:$40 sps:$4 sm:$0xff]  }
  0xe6   :  { %3423 = vmatprep.subr.bf16.mxu1 %v12089_v43  ;;  %v12165_v41 = vld [vmem:[#allocation5 + $0x6f0] ss:$40 sps:$4 sm:$0xff]   ;;  %v12170_v43 = vld [vmem:[#allocation5 + $0xf0c] ss:$40 sps:$4 sm:$0xff]  }
  0xe8   :  { %3379 = vmatpush1.bf16.msra.mxu0 %v12084_v44  ;;  %v12173_v44 = vld [vmem:[#allocation5 + $0x6a4] ss:$40 sps:$4 sm:$0xff]  }
  0xe9   :  { %3424 = vmatpush1.bf16.msra.mxu1 %v12087_v45  ;;  %3380 = vmatprep.subr.bf16.mxu0 %v12092_v46  ;;  %v12168_v45 = vld [vmem:[#allocation5 + $0xf08] ss:$40 sps:$4 sm:$0xff]  }
  0xea   :  { %3425 = vmatprep.subr.bf16.mxu1 %v12095_v47  ;;  %v12171_v46 = vld [vmem:[#allocation5 + $0x6a0] ss:$40 sps:$4 sm:$0xff]   ;;  %v12176_v47 = vld [vmem:[#allocation5 + $0x654] ss:$40 sps:$4 sm:$0xff]  }
  0xec   :  { %3381 = vmatpush1.bf16.msra.mxu0 %v12090_v48  ;;  %v12179_v48 = vld [vmem:[#allocation5 + $0x244] ss:$40 sps:$4 sm:$0xff]  }
  0xed   :  { %3426 = vmatpush1.bf16.msra.mxu1 %v12093_v49  ;;  %3382 = vmatprep.subr.bf16.mxu0 %v12098_v50  ;;  %v12174_v49 = vld [vmem:[#allocation5 + $0x650] ss:$40 sps:$4 sm:$0xff]   ;;  %v12182_v50 = vld [vmem:[#allocation5 + $0x604] ss:$40 sps:$4 sm:$0xff]  }
  0xee   :  { %3427 = vmatprep.subr.bf16.mxu1 %v12101_v51  ;;  %v12177_v51 = vld [vmem:[#allocation5 + $0x240] ss:$40 sps:$4 sm:$0xff]  }
  0xf0   :  { %3383 = vmatpush1.bf16.msra.mxu0 %v12096_v52  ;;  %v12180_v52 = vld [vmem:[#allocation5 + $0x600] ss:$40 sps:$4 sm:$0xff]  }
  0xf1   :  { %3428 = vmatpush1.bf16.msra.mxu1 %v12099_v53  ;;  %3384 = vmatprep.subr.bf16.mxu0 %v12104_v54  ;;  %v12185_v53 = vld [vmem:[#allocation5 + $0x1f4] ss:$40 sps:$4 sm:$0xff]  }
  0xf2   :  { %3429 = vmatprep.subr.bf16.mxu1 %v12107_v55  ;;  %v12188_v54 = vld [vmem:[#allocation5 + $0x5b4] ss:$40 sps:$4 sm:$0xff]   ;;  %v12183_v55 = vld [vmem:[#allocation5 + $0x1f0] ss:$40 sps:$4 sm:$0xff]  }
  0xf4   :  { %3385 = vmatpush1.bf16.msra.mxu0 %v12102_v56  ;;  %v12186_v56 = vld [vmem:[#allocation5 + $0x5b0] ss:$40 sps:$4 sm:$0xff]  }
  0xf5   :  { %3430 = vmatpush1.bf16.msra.mxu1 %v12105_v57  ;;  %3386 = vmatprep.subr.bf16.mxu0 %v12110_v58  ;;  %v12191_v57 = vld [vmem:[#allocation5 + $0x1a4] ss:$40 sps:$4 sm:$0xff]  }
  0xf6   :  { %3431 = vmatprep.subr.bf16.mxu1 %v12113_v59  ;;  %v12194_v58 = vld [vmem:[#allocation5 + $0x564] ss:$40 sps:$4 sm:$0xff]   ;;  %v12189_v59 = vld [vmem:[#allocation5 + $0x1a0] ss:$40 sps:$4 sm:$0xff]  }
  0xf8   :  { %3387 = vmatpush1.bf16.msra.mxu0 %v12108_v60  ;;  %v12192_v60 = vld [vmem:[#allocation5 + $0x560] ss:$40 sps:$4 sm:$0xff]  }
  0xf9   :  { %3432 = vmatpush2.bf16.msra.mxu1 %v12111_v61  ;;  %3388 = vmatprep.subr.bf16.mxu0 %v12116_v0  ;;  %v12197_v61 = vld [vmem:[#allocation5 + $0x154] ss:$40 sps:$4 sm:$0xff]  }
  0xfa   :  { %3433 = vmatprep.subr.bf16.mxu1 %v12119_v1  ;;  %v12200_v0 = vld [vmem:[#allocation5 + $0x514] ss:$40 sps:$4 sm:$0xff]   ;;  %v12195_v1 = vld [vmem:[#allocation5 + $0x150] ss:$40 sps:$4 sm:$0xff]  }
  0xfc   :  { %3389 = vmatpush1.bf16.msra.mxu0 %v12114_v2  ;;  %v12198_v2 = vld [vmem:[#allocation5 + $0x510] ss:$40 sps:$4 sm:$0xff]  }
  0xfd   :  { %3434 = vmatpush2.bf16.msra.mxu1 %v12117_v4  ;;  %3390 = vmatprep.subr.bf16.mxu0 %v12122_v5  ;;  %v12203_v4 = vld [vmem:[#allocation5 + $0x104] ss:$40 sps:$4 sm:$0xff]  }
  0xfe   :  { %3435 = vmatprep.subr.bf16.mxu1 %v12125_v6  ;;  %v12206_v5 = vld [vmem:[#allocation5 + $0x9c4] ss:$40 sps:$4 sm:$0xff]   ;;  %v12201_v6 = vld [vmem:[#allocation5 + $0x100] ss:$40 sps:$4 sm:$0xff]  }
 0x100   :  { %3391 = vmatpush2.bf16.msra.mxu0 %v12120_v7  ;;  %v12204_v7 = vld [vmem:[#allocation5 + $0x9c0] ss:$40 sps:$4 sm:$0xff]  }
 0x101   :  { %3436 = vmatpush2.bf16.msra.mxu1 %v12123_v8  ;;  %3392 = vmatprep.subr.bf16.mxu0 %v12128_v9  ;;  %v12209_v8 = vld [vmem:[#allocation5 + $0xb4] ss:$40 sps:$4 sm:$0xff]  }
 0x102   :  { %3437 = vmatprep.subr.bf16.mxu1 %v12131_v10  ;;  %v12212_v9 = vld [vmem:[#allocation5 + $0x974] ss:$40 sps:$4 sm:$0xff]   ;;  %v12207_v10 = vld [vmem:[#allocation5 + $0xb0] ss:$40 sps:$4 sm:$0xff]  }
 0x104   :  { %3393 = vmatpush2.bf16.msra.mxu0 %v12126_v11  ;;  %v12210_v11 = vld [vmem:[#allocation5 + $0x970] ss:$40 sps:$4 sm:$0xff]  }
 0x105   :  { %3438 = vmatpush2.bf16.msra.mxu1 %v12129_v12  ;;  %3394 = vmatprep.subr.bf16.mxu0 %v12134_v14  ;;  %v12215_v12 = vld [vmem:[#allocation5 + $0x64] ss:$40 sps:$4 sm:$0xff]  }
 0x106   :  { %3439 = vmatprep.subr.bf16.mxu1 %v12137_v15  ;;  %v12218_v14 = vld [vmem:[#allocation5 + $0x924] ss:$40 sps:$4 sm:$0xff]   ;;  %v12213_v15 = vld [vmem:[#allocation5 + $0x60] ss:$40 sps:$4 sm:$0xff]  }
 0x108   :  { %3395 = vmatpush2.bf16.msra.mxu0 %v12132_v16  ;;  %v12216_v16 = vld [vmem:[#allocation5 + $0x920] ss:$40 sps:$4 sm:$0xff]  }
 0x109   :  { %3440 = vmatpush2.bf16.msra.mxu1 %v12135_v17  ;;  %3396 = vmatprep.subr.bf16.mxu0 %v12140_v18  ;;  %v12221_v17 = vld [vmem:[#allocation5 + $0x14] ss:$40 sps:$4 sm:$0xff]  }
 0x10a   :  { %3441 = vmatprep.subr.bf16.mxu1 %v12143_v20  ;;  %v12224_v18 = vld [vmem:[#allocation5 + $0x8d4] ss:$40 sps:$4 sm:$0xff]   ;;  %v12219_v20 = vld [vmem:[#allocation5 + $0x10] ss:$40 sps:$4 sm:$0xff]  }
 0x10c   :  { %3397 = vmatpush2.bf16.msra.mxu0 %v12138_v21  ;;  %v12222_v21 = vld [vmem:[#allocation5 + $0x8d0] ss:$40 sps:$4 sm:$0xff]  }
 0x10d   :  { %3442 = vmatpush2.bf16.msra.mxu1 %v12141_v22  ;;  %3398 = vmatprep.subr.bf16.mxu0 %v12146_v24  ;;  %v12227_v22 = vld [vmem:[#allocation5 + $0x4c4] ss:$40 sps:$4 sm:$0xff]  }
 0x10e   :  { %3443 = vmatprep.subr.bf16.mxu1 %v12149_v25  ;;  %v12230_v24 = vld [vmem:[#allocation5 + $0x884] ss:$40 sps:$4 sm:$0xff]   ;;  %v12225_v25 = vld [vmem:[#allocation5 + $0x4c0] ss:$40 sps:$4 sm:$0xff]  }
 0x110   :  { %3399 = vmatpush2.bf16.msra.mxu0 %v12144_v26  ;;  %v12228_v26 = vld [vmem:[#allocation5 + $0x880] ss:$40 sps:$4 sm:$0xff]  }
 0x111   :  { %3444 = vmatpush2.bf16.msra.mxu1 %v12147_v27  ;;  %3400 = vmatprep.subr.bf16.mxu0 %v12152_v28  ;;  %v12233_v27 = vld [vmem:[#allocation5 + $0x474] ss:$40 sps:$4 sm:$0xff]  }
 0x112   :  { %3445 = vmatprep.subr.bf16.mxu1 %v12155_v29  ;;  %v12236_v28 = vld [vmem:[#allocation5 + $0x834] ss:$40 sps:$4 sm:$0xff]   ;;  %v12231_v29 = vld [vmem:[#allocation5 + $0x470] ss:$40 sps:$4 sm:$0xff]  }
 0x114   :  { %3401 = vmatpush2.bf16.msra.mxu0 %v12150_v30  ;;  %v12234_v30 = vld [vmem:[#allocation5 + $0x830] ss:$40 sps:$4 sm:$0xff]  }
 0x115   :  { %3446 = vmatpush2.bf16.msra.mxu1 %v12153_v31  ;;  %3402 = vmatprep.subr.bf16.mxu0 %v12158_v33  ;;  %v12239_v31 = vld [vmem:[#allocation5 + $0x424] ss:$40 sps:$4 sm:$0xff]  }
 0x116   :  { %3538 = vmatprep.subr.bf16.mxu1 %v12161_v34  ;;  %v12242_v33 = vld [vmem:[#allocation5 + $0x7e4] ss:$40 sps:$4 sm:$0xff]   ;;  %v12237_v34 = vld [vmem:[#allocation5 + $0x420] ss:$40 sps:$4 sm:$0xff]  }
 0x118   :  { %3448 = vmatmul.mubr.bf16.vlgmr.msra.gmra.mxu1 %v14066_v63  ;;  %3403 = vmatpush2.bf16.msra.mxu0 %v12156_v36  ;;  %v12240_v36 = vld [vmem:[#allocation5 + $0x7e0] ss:$40 sps:$4 sm:$0xff]  }
 0x119   :  { %3539 = vmatpush1.bf16.msra.mxu1 %v12159_v37  ;;  %3404 = vmatprep.subr.bf16.mxu0 %v12164_v38  ;;  %v12245_v37 = vld [vmem:[#allocation5 + $0x3d4] ss:$40 sps:$4 sm:$0xff]  }
 0x11a   :  { %3540 = vmatprep.subr.bf16.mxu1 %v12167_v39  ;;  %3570 = vmatprep.mubr.bf16.mxu1 %v14070_v3  ;;  %v12248_v38 = vld [vmem:[#allocation5 + $0x794] ss:$40 sps:$4 sm:$0xff]   ;;  %v12243_v39 = vld [vmem:[#allocation5 + $0x3d0] ss:$40 sps:$4 sm:$0xff]  }
 0x11c   :  { %3405 = vmatpush2.bf16.msra.mxu0 %v12162_v40  ;;  %v12246_v40 = vld [vmem:[#allocation5 + $0x790] ss:$40 sps:$4 sm:$0xff]  }
 0x11d   :  { %3541 = vmatpush1.bf16.msra.mxu1 %v12165_v41  ;;  %3470 = vmatprep.subr.bf16.mxu0 %v12170_v43  ;;  %v12251_v41 = vld [vmem:[#allocation5 + $0x384] ss:$40 sps:$4 sm:$0xff]   ;;  %v606_v43 = vld [vmem:[#allocation7] sm:$0xff] }
 0x11e   :  { %3542 = vmatprep.subr.bf16.mxu1 %v12173_v44  ;;  %v14107_v44 = vsub.s32 0, %v14055_v42 }
 0x11f   :  { %3407 = vmatmul.mubr.bf16.vlgmr.msra.gmra.mxu0 %v14079_v19 }
 0x120   :  { %3471 = vmatpush1.bf16.msra.mxu0 %v12168_v45  ;;  %3488 = vmatprep.mubr.bf16.mxu0 %v13992_v32  ;;  %v12254_v45 = vld [vmem:[#allocation5 + $0x24c] ss:$40 sps:$4 sm:$0xff]  }
 0x121   :  { %3543 = vmatpush1.bf16.msra.mxu1 %v12171_v46  ;;  %3497 = vmatprep.subr.bf16.mxu0 %v12179_v48  ;;  %v14110_v46 = vsub.s32 1, %v14055_v42  ;;  %v613_v48 = vrot.slane %v606_v43, %v14107_v44 }
 0x122   :  { %3544 = vmatprep.subr.bf16.mxu1 %v12176_v47  ;;  %v12249_v47 = vld [vmem:[#allocation5 + $0x380] ss:$40 sps:$4 sm:$0xff]  }
 0x125   :  { %3545 = vmatpush1.bf16.msra.mxu1 %v12174_v49  ;;  %v12252_v49 = vld [vmem:[#allocation5 + $0x248] ss:$40 sps:$4 sm:$0xff]  }
 0x126   :  { %3546 = vmatprep.subr.bf16.mxu1 %v12182_v50  ;;  %v12257_v50 = vld [vmem:[#allocation5 + $0x334] ss:$40 sps:$4 sm:$0xff]  }
 0x127   :  { %10932 = vmatmul.mubr.msk.bf16.vlgmr.msra.gmra.mxu0 %vm3165_vm0, %v14094_v35 }
 0x128   :  { %3498 = vmatpush1.bf16.msra.mxu0 %v12177_v51  ;;  %3529 = vmatprep.mubr.bf16.mxu0 %v14063_v62  ;;  %v12260_v51 = vld [vmem:[#allocation5 + $0x1fc] ss:$40 sps:$4 sm:$0xff]  }
 0x129   :  { %3547 = vmatpush1.bf16.msra.mxu1 %v12180_v52  ;;  %3499 = vmatprep.subr.bf16.mxu0 %v12185_v53  ;;  %v617_v52 = vrot.slane %v606_v43, %v14110_v46  ;;  %v12306_v43 = vld [vmem:[#allocation5 + $0x478] ss:$40 sps:$4 sm:$0xff]  }
 0x12a   :  { %3548 = vmatprep.subr.bf16.mxu1 %v12188_v54 }
 0x12c   :  { %3500 = vmatpush1.bf16.msra.mxu0 %v12183_v55 }
 0x12d   :  { %3549 = vmatpush1.bf16.msra.mxu1 %v12186_v56  ;;  %3501 = vmatprep.subr.bf16.mxu0 %v12191_v57  ;;  %v12255_v56 = vld [vmem:[#allocation5 + $0x330] ss:$40 sps:$4 sm:$0xff]  }
 0x12e   :  { %3550 = vmatprep.subr.bf16.mxu1 %v12194_v58  ;;  %v12258_v57 = vld [vmem:[#allocation5 + $0x1f8] ss:$40 sps:$4 sm:$0xff]  }
 0x130   :  { %3502 = vmatpush1.bf16.msra.mxu0 %v12189_v59 }
 0x131   :  { %3551 = vmatpush1.bf16.msra.mxu1 %v12192_v60  ;;  %3503 = vmatprep.subr.bf16.mxu0 %v12197_v61  ;;  %v12263_v60 = vld [vmem:[#allocation5 + $0x2e4] ss:$40 sps:$4 sm:$0xff]  }
 0x132   :  { %3552 = vmatprep.subr.bf16.mxu1 %v12200_v0  ;;  %v12266_v61 = vld [vmem:[#allocation5 + $0x1ac] ss:$40 sps:$4 sm:$0xff]  }
 0x134   :  { %3504 = vmatpush1.bf16.msra.mxu0 %v12195_v1 }
 0x135   :  { %3553 = vmatpush1.bf16.msra.mxu1 %v12198_v2  ;;  %3505 = vmatprep.subr.bf16.mxu0 %v12203_v4 }
 0x136   :  { %3554 = vmatprep.subr.bf16.mxu1 %v12206_v5 }
 0x138   :  { %3506 = vmatpush1.bf16.msra.mxu0 %v12201_v6  ;;  %v12261_v6 = vld [vmem:[#allocation5 + $0x2e0] ss:$40 sps:$4 sm:$0xff]  }
 0x139   :  { %3555 = vmatpush2.bf16.msra.mxu1 %v12204_v7  ;;  %3507 = vmatprep.subr.bf16.mxu0 %v12209_v8  ;;  %v12264_v7 = vld [vmem:[#allocation5 + $0x1a8] ss:$40 sps:$4 sm:$0xff]  }
 0x13a   :  { %3556 = vmatprep.subr.bf16.mxu1 %v12212_v9  ;;  %v12269_v9 = vld [vmem:[#allocation5 + $0x294] ss:$40 sps:$4 sm:$0xff]  }
 0x13c   :  { %3508 = vmatpush1.bf16.msra.mxu0 %v12207_v10  ;;  %v12272_v10 = vld [vmem:[#allocation5 + $0x15c] ss:$40 sps:$4 sm:$0xff]  }
 0x13d   :  { %3557 = vmatpush2.bf16.msra.mxu1 %v12210_v11  ;;  %3509 = vmatprep.subr.bf16.mxu0 %v12215_v12  ;;  %v12267_v12 = vld [vmem:[#allocation5 + $0x290] ss:$40 sps:$4 sm:$0xff]  }
 0x13e   :  { %3558 = vmatprep.subr.bf16.mxu1 %v12218_v14  ;;  %v12270_v14 = vld [vmem:[#allocation5 + $0x158] ss:$40 sps:$4 sm:$0xff]  }
 0x140   :  { %3510 = vmatpush1.bf16.msra.mxu0 %v12213_v15  ;;  %v12275_v15 = vld [vmem:[#allocation5 + $0xc44] ss:$40 sps:$4 sm:$0xff]  }
 0x141   :  { %3559 = vmatpush2.bf16.msra.mxu1 %v12216_v16  ;;  %3511 = vmatprep.subr.bf16.mxu0 %v12221_v17  ;;  %v12278_v16 = vld [vmem:[#allocation5 + $0x10c] ss:$40 sps:$4 sm:$0xff]   ;;  %v12273_v17 = vld [vmem:[#allocation5 + $0xc40] ss:$40 sps:$4 sm:$0xff]  }
 0x142   :  { %3560 = vmatprep.subr.bf16.mxu1 %v12224_v18  ;;  %v12276_v18 = vld [vmem:[#allocation5 + $0x108] ss:$40 sps:$4 sm:$0xff]  }
 0x144   :  { %3512 = vmatpush1.bf16.msra.mxu0 %v12219_v20  ;;  %v12281_v20 = vld [vmem:[#allocation5 + $0xbf4] ss:$40 sps:$4 sm:$0xff]  }
 0x145   :  { %3561 = vmatpush2.bf16.msra.mxu1 %v12222_v21  ;;  %3513 = vmatprep.subr.bf16.mxu0 %v12227_v22  ;;  %v12284_v21 = vld [vmem:[#allocation5 + $0xbc] ss:$40 sps:$4 sm:$0xff]   ;;  %v12279_v22 = vld [vmem:[#allocation5 + $0xbf0] ss:$40 sps:$4 sm:$0xff]  }
 0x146   :  { %3562 = vmatprep.subr.bf16.mxu1 %v12230_v24  ;;  %v12282_v24 = vld [vmem:[#allocation5 + $0xb8] ss:$40 sps:$4 sm:$0xff]  }
 0x148   :  { %3514 = vmatpush2.bf16.msra.mxu0 %v12225_v25  ;;  %v12287_v25 = vld [vmem:[#allocation5 + $0xba4] ss:$40 sps:$4 sm:$0xff]  }
 0x149   :  { %3563 = vmatpush2.bf16.msra.mxu1 %v12228_v26  ;;  %3515 = vmatprep.subr.bf16.mxu0 %v12233_v27  ;;  %v12290_v26 = vld [vmem:[#allocation5 + $0x6c] ss:$40 sps:$4 sm:$0xff]   ;;  %v12285_v27 = vld [vmem:[#allocation5 + $0xba0] ss:$40 sps:$4 sm:$0xff]  }
 0x14a   :  { %3564 = vmatprep.subr.bf16.mxu1 %v12236_v28  ;;  %v12288_v28 = vld [vmem:[#allocation5 + $0x68] ss:$40 sps:$4 sm:$0xff]  }
 0x14c   :  { %3516 = vmatpush2.bf16.msra.mxu0 %v12231_v29  ;;  %v12293_v29 = vld [vmem:[#allocation5 + $0xb54] ss:$40 sps:$4 sm:$0xff]  }
 0x14d   :  { %3565 = vmatpush2.bf16.msra.mxu1 %v12234_v30  ;;  %3517 = vmatprep.subr.bf16.mxu0 %v12239_v31  ;;  %v12296_v30 = vld [vmem:[#allocation5 + $0x1c] ss:$40 sps:$4 sm:$0xff]   ;;  %v12291_v31 = vld [vmem:[#allocation5 + $0xb50] ss:$40 sps:$4 sm:$0xff]  }
 0x14e   :  { %3566 = vmatprep.subr.bf16.mxu1 %v12242_v33  ;;  %v12294_v33 = vld [vmem:[#allocation5 + $0x18] ss:$40 sps:$4 sm:$0xff]  }
 0x150   :  { %3518 = vmatpush2.bf16.msra.mxu0 %v12237_v34  ;;  %v12299_v34 = vld [vmem:[#allocation5 + $0xb04] ss:$40 sps:$4 sm:$0xff]  }
 0x151   :  { %3567 = vmatpush2.bf16.msra.mxu1 %v12240_v36  ;;  %3519 = vmatprep.subr.bf16.mxu0 %v12245_v37  ;;  %v12302_v36 = vld [vmem:[#allocation5 + $0x4cc] ss:$40 sps:$4 sm:$0xff]   ;;  %v12297_v37 = vld [vmem:[#allocation5 + $0xb00] ss:$40 sps:$4 sm:$0xff]  }
 0x152   :  { %3568 = vmatprep.subr.bf16.mxu1 %v12248_v38  ;;  %v12300_v38 = vld [vmem:[#allocation5 + $0x4c8] ss:$40 sps:$4 sm:$0xff]  }
 0x154   :  { %3520 = vmatpush2.bf16.msra.mxu0 %v12243_v39  ;;  %v12305_v39 = vld [vmem:[#allocation5 + $0xab4] ss:$40 sps:$4 sm:$0xff]  }
 0x155   :  { %3569 = vmatpush2.bf16.msra.mxu1 %v12246_v40  ;;  %3521 = vmatprep.subr.bf16.mxu0 %v12251_v41  ;;  %v12308_v40 = vld [vmem:[#allocation5 + $0x47c] ss:$40 sps:$4 sm:$0xff]   ;;  %v12303_v41 = vld [vmem:[#allocation5 + $0xab0] ss:$40 sps:$4 sm:$0xff]  }
 0x156   :  { %3661 = vmatprep.subr.bf16.mxu1 %v12254_v45  ;;  %v12311_v45 = vld [vmem:[#allocation5 + $0xa64] ss:$40 sps:$4 sm:$0xff]  }
 0x157   :  { %v3203_v53 = vpop.f32.mrf.mxu0 }
 0x158   :  { %3571 = vmatmul.mubr.bf16.vlgmr.msra.gmra.mxu1 %v14079_v19  ;;  %v3244_v54 = vpop.f32.mrf.mxu1  ;;  %3522 = vmatpush2.bf16.msra.mxu0 %v12249_v47  ;;  %v3204_v55 = vadd.f32 %v3203_v53, %v613_v48  ;;  %v12314_v47 = vld [vmem:[#allocation5 + $0x42c] ss:$40 sps:$4 sm:$0xff]   ;;  %v12309_v48 = vld [vmem:[#allocation5 + $0xa60] ss:$40 sps:$4 sm:$0xff]  }
 0x159   :  { %3662 = vmatpush1.bf16.msra.mxu1 %v12252_v49  ;;  %v3205_v58 = vpop.f32.mrf.mxu0  ;;  %3523 = vmatprep.subr.bf16.mxu0 %v12257_v50  ;;  %v12312_v49 = vld [vmem:[#allocation5 + $0x428] ss:$40 sps:$4 sm:$0xff]   ;;  %v12317_v50 = vld [vmem:[#allocation5 + $0xa14] ss:$40 sps:$4 sm:$0xff]   ;;  %v12318_v53 = vld [vmem:[#allocation5 + $0x3d8] ss:$40 sps:$4 sm:$0xff]  }
 0x15a   :  { %v3246_v59 = vpop.f32.mrf.mxu1  ;;  %3663 = vmatprep.subr.bf16.mxu1 %v12260_v51  ;;  %v3206_v0 = vadd.f32 %v3205_v58, %v617_v52  ;;  %v14115_v1 = vadd.f32 %v3244_v54, %v3204_v55  ;;  %3693 = vmatprep.mubr.bf16.mxu1 %v14063_v62  ;;  %v12320_v51 = vld [vmem:[#allocation5 + $0x3dc] ss:$40 sps:$4 sm:$0xff]   ;;  %v12315_v52 = vld [vmem:[#allocation5 + $0xa10] ss:$40 sps:$4 sm:$0xff]   ;;  %v12326_v55 = vld [vmem:[#allocation5 + $0x38c] ss:$40 sps:$4 sm:$0xff]  }
 0x15b   :  { %v3207_v2 = vpop.f32.mrf.mxu0  ;;  %v12323_v54 = vld [vmem:[#allocation5 + $0xec4] ss:$40 sps:$4 sm:$0xff]   ;;  %v12329_v58 = vld [vmem:[#allocation5 + $0xe74] ss:$40 sps:$4 sm:$0xff]  }
 0x15c   :  { %v3248_v4 = vpop.f32.mrf.mxu1  ;;  %3524 = vmatpush2.bf16.msra.mxu0 %v12255_v56  ;;  %v14118_v5 = vadd.f32 %v3246_v59, %v3206_v0  ;;  %v12321_v56 = vld [vmem:[#allocation5 + $0xec0] ss:$40 sps:$4 sm:$0xff]   ;;  %v12332_v59 = vld [vmem:[#allocation5 + $0x33c] ss:$40 sps:$4 sm:$0xff]   ;;  %v12338_v2 = vld [vmem:[#allocation5 + $0x2ec] ss:$40 sps:$4 sm:$0xff]  }
 0x15d   :  { %3664 = vmatpush1.bf16.msra.mxu1 %v12258_v57  ;;  %v3208_v8 = vpop.f32.mrf.mxu0  ;;  %3525 = vmatprep.subr.bf16.mxu0 %v12263_v60  ;;  %v12324_v57 = vld [vmem:[#allocation5 + $0x388] ss:$40 sps:$4 sm:$0xff]   ;;  %v12335_v0 = vld [vmem:[#allocation5 + $0xe24] ss:$40 sps:$4 sm:$0xff]  }
 0x15e   :  { %3665 = vmatprep.subr.bf16.mxu1 %v12266_v61  ;;  %v3249_v11 = vpop.f32.mrf.mxu1  ;;  %v12327_v60 = vld [vmem:[#allocation5 + $0xe70] ss:$40 sps:$4 sm:$0xff]   ;;  %v12333_v4 = vld [vmem:[#allocation5 + $0xe20] ss:$40 sps:$4 sm:$0xff]   ;;  %v12344_v8 = vld [vmem:[#allocation5 + $0x29c] ss:$40 sps:$4 sm:$0xff]  }
 0x15f   :  { %v12330_v61 = vld [vmem:[#allocation5 + $0x338] ss:$40 sps:$4 sm:$0xff]   ;;  %v12347_v11 = vld [vmem:[#allocation5 + $0xd84] ss:$40 sps:$4 sm:$0xff]  }
 0x160   :  { %3526 = vmatpush2.bf16.msra.mxu0 %v12261_v6  ;;  %v12336_v6 = vld [vmem:[#allocation5 + $0x2e8] ss:$40 sps:$4 sm:$0xff]  }
 0x161   :  { %3666 = vmatpush1.bf16.msra.mxu1 %v12264_v7  ;;  %3527 = vmatprep.subr.bf16.mxu0 %v12269_v9  ;;  %v12341_v7 = vld [vmem:[#allocation5 + $0xdd4] ss:$40 sps:$4 sm:$0xff]   ;;  %v12339_v9 = vld [vmem:[#allocation5 + $0xdd0] ss:$40 sps:$4 sm:$0xff]  }
 0x162   :  { %3667 = vmatprep.subr.bf16.mxu1 %v12272_v10  ;;  %v12342_v10 = vld [vmem:[#allocation5 + $0x298] ss:$40 sps:$4 sm:$0xff]  }
 0x164   :  { %3528 = vmatpush2.bf16.msra.mxu0 %v12267_v12  ;;  %v12350_v12 = vld [vmem:[#allocation5 + $0xc4c] ss:$40 sps:$4 sm:$0xff]  }
 0x165   :  { %3668 = vmatpush1.bf16.msra.mxu1 %v12270_v14  ;;  %3579 = vmatprep.subr.bf16.mxu0 %v12275_v15  ;;  %v12345_v14 = vld [vmem:[#allocation5 + $0xd80] ss:$40 sps:$4 sm:$0xff]  }
 0x166   :  { %3669 = vmatprep.subr.bf16.mxu1 %v12278_v16  ;;  %v12348_v15 = vld [vmem:[#allocation5 + $0xc48] ss:$40 sps:$4 sm:$0xff]   ;;  %v12353_v16 = vld [vmem:[#allocation5 + $0xd34] ss:$40 sps:$4 sm:$0xff]  }
 0x167   :  { %3530 = vmatmul.mubr.bf16.vlgmr.msra.gmra.mxu0 %v14075_v13 }
 0x168   :  { %3580 = vmatpush1.bf16.msra.mxu0 %v12273_v17  ;;  %3611 = vmatprep.mubr.bf16.mxu0 %v14082_v23  ;;  %v12356_v17 = vld [vmem:[#allocation5 + $0xbfc] ss:$40 sps:$4 sm:$0xff]  }
 0x169   :  { %3670 = vmatpush1.bf16.msra.mxu1 %v12276_v18  ;;  %3581 = vmatprep.subr.bf16.mxu0 %v12281_v20  ;;  %v12351_v18 = vld [vmem:[#allocation5 + $0xd30] ss:$40 sps:$4 sm:$0xff]  }
 0x16a   :  { %3671 = vmatprep.subr.bf16.mxu1 %v12284_v21  ;;  %v12354_v20 = vld [vmem:[#allocation5 + $0xbf8] ss:$40 sps:$4 sm:$0xff]  }
 0x16c   :  { %3582 = vmatpush1.bf16.msra.mxu0 %v12279_v22 }
 0x16d   :  { %3672 = vmatpush1.bf16.msra.mxu1 %v12282_v24  ;;  %3583 = vmatprep.subr.bf16.mxu0 %v12287_v25  ;;  %v12359_v25 = vld [vmem:[#allocation5 + $0xce4] ss:$40 sps:$4 sm:$0xff]  }
 0x16e   :  { %3673 = vmatprep.subr.bf16.mxu1 %v12290_v26  ;;  %v12362_v26 = vld [vmem:[#allocation5 + $0xbac] ss:$40 sps:$4 sm:$0xff]  }
 0x170   :  { %3584 = vmatpush1.bf16.msra.mxu0 %v12285_v27 }
 0x171   :  { %3674 = vmatpush1.bf16.msra.mxu1 %v12288_v28  ;;  %3585 = vmatprep.subr.bf16.mxu0 %v12293_v29 }
 0x172   :  { %3675 = vmatprep.subr.bf16.mxu1 %v12296_v30 }
 0x174   :  { %3586 = vmatpush1.bf16.msra.mxu0 %v12291_v31 }
 0x175   :  { %3676 = vmatpush1.bf16.msra.mxu1 %v12294_v33  ;;  %3587 = vmatprep.subr.bf16.mxu0 %v12299_v34  ;;  %v12357_v33 = vld [vmem:[#allocation5 + $0xce0] ss:$40 sps:$4 sm:$0xff]  }
 0x176   :  { %3677 = vmatprep.subr.bf16.mxu1 %v12302_v36  ;;  %v12360_v34 = vld [vmem:[#allocation5 + $0xba8] ss:$40 sps:$4 sm:$0xff]   ;;  %v12365_v36 = vld [vmem:[#allocation5 + $0xc94] ss:$40 sps:$4 sm:$0xff]  }
 0x178   :  { %3588 = vmatpush1.bf16.msra.mxu0 %v12297_v37  ;;  %v12368_v37 = vld [vmem:[#allocation5 + $0xb5c] ss:$40 sps:$4 sm:$0xff]  }
 0x179   :  { %3678 = vmatpush2.bf16.msra.mxu1 %v12300_v38  ;;  %3589 = vmatprep.subr.bf16.mxu0 %v12305_v39 }
 0x17a   :  { %3679 = vmatprep.subr.bf16.mxu1 %v12308_v40 }
 0x17c   :  { %3590 = vmatpush1.bf16.msra.mxu0 %v12303_v41  ;;  %v12366_v41 = vld [vmem:[#allocation5 + $0xb58] ss:$40 sps:$4 sm:$0xff]  }
 0x17d   :  { %3680 = vmatpush2.bf16.msra.mxu1 %v12306_v43  ;;  %3591 = vmatprep.subr.bf16.mxu0 %v12311_v45  ;;  %v12371_v43 = vld [vmem:[#allocation5 + $0xf14] ss:$40 sps:$4 sm:$0xff]  }
 0x17e   :  { %3681 = vmatprep.subr.bf16.mxu1 %v12314_v47  ;;  %v12374_v47 = vld [vmem:[#allocation5 + $0xb0c] ss:$40 sps:$4 sm:$0xff]  }
 0x180   :  { %3592 = vmatpush1.bf16.msra.mxu0 %v12309_v48 }
 0x181   :  { %3682 = vmatpush2.bf16.msra.mxu1 %v12312_v49  ;;  %3593 = vmatprep.subr.bf16.mxu0 %v12317_v50  ;;  %v12369_v50 = vld [vmem:[#allocation5 + $0xf10] ss:$40 sps:$4 sm:$0xff]  }
 0x182   :  { %3683 = vmatprep.subr.bf16.mxu1 %v12320_v51  ;;  %v12372_v51 = vld [vmem:[#allocation5 + $0xb08] ss:$40 sps:$4 sm:$0xff]  }
 0x184   :  { %3594 = vmatpush1.bf16.msra.mxu0 %v12315_v52 }
 0x185   :  { %3684 = vmatpush2.bf16.msra.mxu1 %v12318_v53  ;;  %3595 = vmatprep.subr.bf16.mxu0 %v12323_v54  ;;  %v12377_v53 = vld [vmem:[#allocation5 + $0xabc] ss:$40 sps:$4 sm:$0xff]   ;;  %v12380_v54 = vld [vmem:[#allocation5 + $0x74c] ss:$40 sps:$4 sm:$0xff]  }
 0x186   :  { %3685 = vmatprep.subr.bf16.mxu1 %v12326_v55  ;;  %v12375_v55 = vld [vmem:[#allocation5 + $0xab8] ss:$40 sps:$4 sm:$0xff]  }
 0x188   :  { %3596 = vmatpush2.bf16.msra.mxu0 %v12321_v56  ;;  %v12383_v56 = vld [vmem:[#allocation5 + $0xa6c] ss:$40 sps:$4 sm:$0xff]  }
 0x189   :  { %3686 = vmatpush2.bf16.msra.mxu1 %v12324_v57  ;;  %3597 = vmatprep.subr.bf16.mxu0 %v12329_v58  ;;  %v12378_v57 = vld [vmem:[#allocation5 + $0x748] ss:$40 sps:$4 sm:$0xff]  }
 0x18a   :  { %3687 = vmatprep.subr.bf16.mxu1 %v12332_v59  ;;  %v12381_v58 = vld [vmem:[#allocation5 + $0xa68] ss:$40 sps:$4 sm:$0xff]   ;;  %v12386_v59 = vld [vmem:[#allocation5 + $0x6fc] ss:$40 sps:$4 sm:$0xff]  }
 0x18c   :  { %3598 = vmatpush2.bf16.msra.mxu0 %v12327_v60  ;;  %v12389_v60 = vld [vmem:[#allocation5 + $0xa1c] ss:$40 sps:$4 sm:$0xff]  }
 0x18d   :  { %3688 = vmatpush2.bf16.msra.mxu1 %v12330_v61  ;;  %3599 = vmatprep.subr.bf16.mxu0 %v12335_v0  ;;  %v12384_v61 = vld [vmem:[#allocation5 + $0x6f8] ss:$40 sps:$4 sm:$0xff]  }
 0x18e   :  { %3689 = vmatprep.subr.bf16.mxu1 %v12338_v2  ;;  %v12387_v0 = vld [vmem:[#allocation5 + $0xa18] ss:$40 sps:$4 sm:$0xff]   ;;  %v12392_v2 = vld [vmem:[#allocation5 + $0x6ac] ss:$40 sps:$4 sm:$0xff]  }
 0x190   :  { %3600 = vmatpush2.bf16.msra.mxu0 %v12333_v4  ;;  %v12395_v4 = vld [vmem:[#allocation5 + $0xecc] ss:$40 sps:$4 sm:$0xff]  }
 0x191   :  { %3690 = vmatpush2.bf16.msra.mxu1 %v12336_v6  ;;  %3601 = vmatprep.subr.bf16.mxu0 %v12341_v7  ;;  %v12390_v6 = vld [vmem:[#allocation5 + $0x6a8] ss:$40 sps:$4 sm:$0xff]  }
 0x192   :  { %3691 = vmatprep.subr.bf16.mxu1 %v12344_v8  ;;  %v12393_v7 = vld [vmem:[#allocation5 + $0xec8] ss:$40 sps:$4 sm:$0xff]   ;;  %v12398_v8 = vld [vmem:[#allocation5 + $0x65c] ss:$40 sps:$4 sm:$0xff]  }
 0x194   :  { %3602 = vmatpush2.bf16.msra.mxu0 %v12339_v9  ;;  %v12401_v9 = vld [vmem:[#allocation5 + $0xe7c] ss:$40 sps:$4 sm:$0xff]  }
 0x195   :  { %3692 = vmatpush2.bf16.msra.mxu1 %v12342_v10  ;;  %3603 = vmatprep.subr.bf16.mxu0 %v12347_v11  ;;  %v12396_v10 = vld [vmem:[#allocation5 + $0x658] ss:$40 sps:$4 sm:$0xff]  }
 0x196   :  { %3743 = vmatprep.subr.bf16.mxu1 %v12350_v12  ;;  %v12399_v11 = vld [vmem:[#allocation5 + $0xe78] ss:$40 sps:$4 sm:$0xff]   ;;  %v12404_v12 = vld [vmem:[#allocation5 + $0x60c] ss:$40 sps:$4 sm:$0xff]  }
 0x197   :  { %v3285_v21 = vpop.f32.mrf.mxu0 }
 0x198   :  { %3694 = vmatmul.mubr.bf16.vlgmr.msra.gmra.mxu1 %v14075_v13  ;;  %v14123_v22 = vpop.f32.mrf.mxu1  ;;  %3604 = vmatpush2.bf16.msra.mxu0 %v12345_v14  ;;  %v3286_v24 = vadd.f32 %v3285_v21, %v14115_v1  ;;  %v12407_v14 = vld [vmem:[#allocation5 + $0xe2c] ss:$40 sps:$4 sm:$0xff]   ;;  %v12411_v21 = vld [vmem:[#allocation5 + $0xdd8] ss:$40 sps:$4 sm:$0xff]  }
 0x199   :  { %3744 = vmatpush1.bf16.msra.mxu1 %v12348_v15  ;;  %v3287_v27 = vpop.f32.mrf.mxu0  ;;  %3605 = vmatprep.subr.bf16.mxu0 %v12353_v16  ;;  %v12402_v15 = vld [vmem:[#allocation5 + $0x608] ss:$40 sps:$4 sm:$0xff]  }
 0x19a   :  { %3745 = vmatprep.subr.bf16.mxu1 %v12356_v17  ;;  %v14126_v28 = vpop.f32.mrf.mxu1  ;;  %v3288_v29 = vadd.f32 %v3287_v27, %v14118_v5  ;;  %3775 = vmatprep.mubr.bf16.mxu1 %v14082_v23  ;;  %v12363_v5 = vld [vmem:[#allocation5 + $0xc90] ss:$40 sps:$4 sm:$0xff]   ;;  %v12410_v17 = vld [vmem:[#allocation5 + $0x5bc] ss:$40 sps:$4 sm:$0xff]  }
 0x19b   :  { %v3289_v30 = vpop.f32.mrf.mxu0  ;;  %v12405_v16 = vld [vmem:[#allocation5 + $0xe28] ss:$40 sps:$4 sm:$0xff]  }
 0x19c   :  { %v3371_v31 = vpop.f32.mrf.mxu1  ;;  %3606 = vmatpush2.bf16.msra.mxu0 %v12351_v18  ;;  %v12413_v18 = vld [vmem:[#allocation5 + $0xddc] ss:$40 sps:$4 sm:$0xff]   ;;  %v12417_v27 = vld [vmem:[#allocation5 + $0xd88] ss:$40 sps:$4 sm:$0xff]  }
 0x19d   :  { %3746 = vmatpush1.bf16.msra.mxu1 %v12354_v20  ;;  %v3290_v1 = vpop.f32.mrf.mxu0  ;;  %3607 = vmatprep.subr.bf16.mxu0 %v12359_v25  ;;  %v12408_v20 = vld [vmem:[#allocation5 + $0x5b8] ss:$40 sps:$4 sm:$0xff]   ;;  %v12419_v25 = vld [vmem:[#allocation5 + $0xd8c] ss:$40 sps:$4 sm:$0xff]   ;;  %v12425_v30 = vld [vmem:[#allocation5 + $0xd3c] ss:$40 sps:$4 sm:$0xff]  }
 0x19e   :  { %3747 = vmatprep.subr.bf16.mxu1 %v12362_v26  ;;  %v3372_v38 = vpop.f32.mrf.mxu1  ;;  %v12414_v26 = vld [vmem:[#allocation5 + $0x568] ss:$40 sps:$4 sm:$0xff]   ;;  %v12420_v31 = vld [vmem:[#allocation5 + $0x518] ss:$40 sps:$4 sm:$0xff]  }
 0x19f   :  { %v3326_v39 = vpop.f32.mrf.mxu0  ;;  %v12426_v1 = vld [vmem:[#allocation5 + $0x9c8] ss:$40 sps:$4 sm:$0xff]   ;;  %v12434_v38 = vld [vmem:[#allocation5 + $0x97c] ss:$40 sps:$4 sm:$0xff]  }
 0x1a0   :  { %3608 = vmatpush2.bf16.msra.mxu0 %v12357_v33  ;;  %v14130_v40 = vadd.f32 %v3326_v39, %v3286_v24  ;;  %v12416_v24 = vld [vmem:[#allocation5 + $0x56c] ss:$40 sps:$4 sm:$0xff]   ;;  %v12423_v33 = vld [vmem:[#allocation5 + $0xd38] ss:$40 sps:$4 sm:$0xff]   ;;  %v12437_v39 = vld [vmem:[#allocation5 + $0xc9c] ss:$40 sps:$4 sm:$0xff]  }
 0x1a1   :  { %3748 = vmatpush1.bf16.msra.mxu1 %v12360_v34  ;;  %v3328_v45 = vpop.f32.mrf.mxu0  ;;  %3609 = vmatprep.subr.bf16.mxu0 %v12365_v36  ;;  %v12428_v34 = vld [vmem:[#allocation5 + $0x9cc] ss:$40 sps:$4 sm:$0xff]  }
 0x1a2   :  { %3749 = vmatprep.subr.bf16.mxu1 %v12368_v37  ;;  %v14132_v48 = vadd.f32 %v3328_v45, %v3288_v29  ;;  %v12422_v29 = vld [vmem:[#allocation5 + $0x51c] ss:$40 sps:$4 sm:$0xff]   ;;  %v12431_v36 = vld [vmem:[#allocation5 + $0xcec] ss:$40 sps:$4 sm:$0xff]   ;;  %v12429_v37 = vld [vmem:[#allocation5 + $0xce8] ss:$40 sps:$4 sm:$0xff]  }
 0x1a3   :  { %v3330_v49 = vpop.f32.mrf.mxu0  ;;  %v12443_v45 = vld [vmem:[#allocation5 + $0x754] ss:$40 sps:$4 sm:$0xff]  }
 0x1a4   :  { %3610 = vmatpush2.bf16.msra.mxu0 %v12363_v5  ;;  %v12432_v5 = vld [vmem:[#allocation5 + $0x978] ss:$40 sps:$4 sm:$0xff]  }
 0x1a5   :  { %3750 = vmatpush1.bf16.msra.mxu1 %v12366_v41  ;;  %v3331_v52 = vpop.f32.mrf.mxu0  ;;  %3634 = vmatprep.subr.bf16.mxu0 %v12371_v43  ;;  %v12435_v41 = vld [vmem:[#allocation5 + $0xc98] ss:$40 sps:$4 sm:$0xff]   ;;  %v12440_v43 = vld [vmem:[#allocation5 + $0x92c] ss:$40 sps:$4 sm:$0xff]  }
 0x1a6   :  { %3751 = vmatprep.subr.bf16.mxu1 %v12374_v47  ;;  %v12438_v47 = vld [vmem:[#allocation5 + $0x928] ss:$40 sps:$4 sm:$0xff]   ;;  %v12449_v52 = vld [vmem:[#allocation5 + $0x704] ss:$40 sps:$4 sm:$0xff]  }
 0x1a7   :  { %3612 = vmatmul.mubr.bf16.vlgmr.msra.gmra.mxu0 %v14066_v63  ;;  %v12441_v49 = vld [vmem:[#allocation5 + $0x750] ss:$40 sps:$4 sm:$0xff]  }
 0x1a8   :  { %3635 = vmatpush1.bf16.msra.mxu0 %v12369_v50  ;;  %3652 = vmatprep.mubr.bf16.mxu0 %v13992_v32  ;;  %v620_v50 = vsub.s32 2, %v14055_v42 }
 0x1a9   :  { %3752 = vmatpush1.bf16.msra.mxu1 %v12372_v51  ;;  %3702 = vmatprep.subr.bf16.mxu0 %v12380_v54  ;;  %v12446_v51 = vld [vmem:[#allocation5 + $0x8dc] ss:$40 sps:$4 sm:$0xff]  }
 0x1aa   :  { %3753 = vmatprep.subr.bf16.mxu1 %v12377_v53  ;;  %v624_v53 = vsub.s32 3, %v14055_v42 }
 0x1ad   :  { %3754 = vmatpush1.bf16.msra.mxu1 %v12375_v55  ;;  %v14142_v55 = vld [vmem:[#allocation7] sm:$0xff] }
 0x1ae   :  { %3755 = vmatprep.subr.bf16.mxu1 %v12383_v56  ;;  %v621_v56 = vrot.slane %v14142_v55, %v620_v50 }
 0x1af   :  { %10933 = vmatmul.mubr.msk.bf16.vlgmr.msra.gmra.mxu0 %vm3165_vm0, %v14094_v35 }
 0x1b0   :  { %3703 = vmatpush1.bf16.msra.mxu0 %v12378_v57  ;;  %3734 = vmatprep.mubr.bf16.mxu0 %v14070_v3  ;;  %v12444_v57 = vld [vmem:[#allocation5 + $0x8d8] ss:$40 sps:$4 sm:$0xff]  }
 0x1b1   :  { %3756 = vmatpush1.bf16.msra.mxu1 %v12381_v58  ;;  %3704 = vmatprep.subr.bf16.mxu0 %v12386_v59  ;;  %v12447_v58 = vld [vmem:[#allocation5 + $0x700] ss:$40 sps:$4 sm:$0xff]   ;;  %v12452_v59 = vld [vmem:[#allocation5 + $0x88c] ss:$40 sps:$4 sm:$0xff]  }
 0x1b2   :  { %3757 = vmatprep.subr.bf16.mxu1 %v12389_v60  ;;  %v12455_v60 = vld [vmem:[#allocation5 + $0x6b4] ss:$40 sps:$4 sm:$0xff]  }
 0x1b4   :  { %3705 = vmatpush1.bf16.msra.mxu0 %v12384_v61 }
 0x1b5   :  { %3758 = vmatpush1.bf16.msra.mxu1 %v12387_v0  ;;  %3706 = vmatprep.subr.bf16.mxu0 %v12392_v2  ;;  %v625_v0 = vrot.slane %v14142_v55, %v624_v53 }
 0x1b6   :  { %3759 = vmatprep.subr.bf16.mxu1 %v12395_v4  ;;  %v3368_v4 = vadd.f32 %v14123_v22, %v621_v56  ;;  %v12467_v22 = vld [vmem:[#allocation5 + $0x614] ss:$40 sps:$4 sm:$0xff]   ;;  %v12488_v56 = vld [vmem:[#allocation5 + $0x204] ss:$40 sps:$4 sm:$0xff]  }
 0x1b8   :  { %3707 = vmatpush1.bf16.msra.mxu0 %v12390_v6  ;;  %v12450_v6 = vld [vmem:[#allocation5 + $0x888] ss:$40 sps:$4 sm:$0xff]  }
 0x1b9   :  { %3760 = vmatpush2.bf16.msra.mxu1 %v12393_v7  ;;  %3708 = vmatprep.subr.bf16.mxu0 %v12398_v8  ;;  %v12453_v7 = vld [vmem:[#allocation5 + $0x6b0] ss:$40 sps:$4 sm:$0xff]   ;;  %v12458_v8 = vld [vmem:[#allocation5 + $0x83c] ss:$40 sps:$4 sm:$0xff]  }
 0x1ba   :  { %3761 = vmatprep.subr.bf16.mxu1 %v12401_v9  ;;  %v12461_v9 = vld [vmem:[#allocation5 + $0x664] ss:$40 sps:$4 sm:$0xff]  }
 0x1bc   :  { %3709 = vmatpush1.bf16.msra.mxu0 %v12396_v10 }
 0x1bd   :  { %3762 = vmatpush2.bf16.msra.mxu1 %v12399_v11  ;;  %3710 = vmatprep.subr.bf16.mxu0 %v12404_v12  ;;  %v3370_v11 = vadd.f32 %v14126_v28, %v625_v0  ;;  %v12470_v28 = vld [vmem:[#allocation5 + $0x79c] ss:$40 sps:$4 sm:$0xff]   ;;  %v12492_v0 = vld [vmem:[#allocation5 + $0x1b0] ss:$40 sps:$4 sm:$0xff]  }
 0x1be   :  { %3763 = vmatprep.subr.bf16.mxu1 %v12407_v14 }
 0x1c0   :  { %3711 = vmatpush1.bf16.msra.mxu0 %v12402_v15  ;;  %v12456_v15 = vld [vmem:[#allocation5 + $0x838] ss:$40 sps:$4 sm:$0xff]  }
 0x1c1   :  { %3764 = vmatpush2.bf16.msra.mxu1 %v12405_v16  ;;  %3712 = vmatprep.subr.bf16.mxu0 %v12410_v17  ;;  %v12464_v16 = vld [vmem:[#allocation5 + $0x7ec] ss:$40 sps:$4 sm:$0xff]  }
 0x1c2   :  { %3765 = vmatprep.subr.bf16.mxu1 %v12413_v18 }
 0x1c4   :  { %3713 = vmatpush1.bf16.msra.mxu0 %v12408_v20 }
 0x1c5   :  { %3766 = vmatpush2.bf16.msra.mxu1 %v12411_v21  ;;  %3714 = vmatprep.subr.bf16.mxu0 %v12416_v24 }
 0x1c6   :  { %3767 = vmatprep.subr.bf16.mxu1 %v12419_v25  ;;  %v12462_v25 = vld [vmem:[#allocation5 + $0x7e8] ss:$40 sps:$4 sm:$0xff]  }
 0x1c8   :  { %3715 = vmatpush1.bf16.msra.mxu0 %v12414_v26  ;;  %v12465_v26 = vld [vmem:[#allocation5 + $0x610] ss:$40 sps:$4 sm:$0xff]  }
 0x1c9   :  { %3768 = vmatpush2.bf16.msra.mxu1 %v12417_v27  ;;  %3716 = vmatprep.subr.bf16.mxu0 %v12422_v29  ;;  %v12473_v29 = vld [vmem:[#allocation5 + $0x5c4] ss:$40 sps:$4 sm:$0xff]  }
 0x1ca   :  { %3769 = vmatprep.subr.bf16.mxu1 %v12425_v30  ;;  %v12468_v30 = vld [vmem:[#allocation5 + $0x798] ss:$40 sps:$4 sm:$0xff]  }
 0x1cc   :  { %3717 = vmatpush1.bf16.msra.mxu0 %v12420_v31 }
 0x1cd   :  { %3770 = vmatpush2.bf16.msra.mxu1 %v12423_v33  ;;  %3718 = vmatprep.subr.bf16.mxu0 %v12428_v34  ;;  %v12471_v34 = vld [vmem:[#allocation5 + $0x5c0] ss:$40 sps:$4 sm:$0xff]  }
 0x1ce   :  { %3771 = vmatprep.subr.bf16.mxu1 %v12431_v36  ;;  %v12476_v36 = vld [vmem:[#allocation5 + $0xf1c] ss:$40 sps:$4 sm:$0xff]  }
 0x1d0   :  { %3719 = vmatpush2.bf16.msra.mxu0 %v12426_v1 }
 0x1d1   :  { %3772 = vmatpush2.bf16.msra.mxu1 %v12429_v37  ;;  %3720 = vmatprep.subr.bf16.mxu0 %v12434_v38  ;;  %v12479_v37 = vld [vmem:[#allocation5 + $0x574] ss:$40 sps:$4 sm:$0xff]  }
 0x1d2   :  { %3773 = vmatprep.subr.bf16.mxu1 %v12437_v39 }
 0x1d4   :  { %3721 = vmatpush2.bf16.msra.mxu0 %v12432_v5  ;;  %v12474_v5 = vld [vmem:[#allocation5 + $0xf18] ss:$40 sps:$4 sm:$0xff]  }
 0x1d5   :  { %3774 = vmatpush2.bf16.msra.mxu1 %v12435_v41  ;;  %3722 = vmatprep.subr.bf16.mxu0 %v12440_v43  ;;  %v12477_v41 = vld [vmem:[#allocation5 + $0x570] ss:$40 sps:$4 sm:$0xff]  }
 0x1d6   :  { %3866 = vmatprep.subr.bf16.mxu1 %v12443_v45  ;;  %v12482_v45 = vld [vmem:[#allocation5 + $0x254] ss:$40 sps:$4 sm:$0xff]  }
 0x1d8   :  { %3776 = vmatmul.mubr.bf16.vlgmr.msra.gmra.mxu1 %v14066_v63  ;;  %v3449_v54 = vpop.f32.mrf.mxu1  ;;  %3723 = vmatpush2.bf16.msra.mxu0 %v12438_v47  ;;  %v12485_v47 = vld [vmem:[#allocation5 + $0x524] ss:$40 sps:$4 sm:$0xff]  }
 0x1d9   :  { %3867 = vmatpush1.bf16.msra.mxu1 %v12441_v49  ;;  %3724 = vmatprep.subr.bf16.mxu0 %v12446_v51  ;;  %v12483_v49 = vld [vmem:[#allocation5 + $0x520] ss:$40 sps:$4 sm:$0xff]   ;;  %v12491_v51 = vld [vmem:[#allocation5 + $0x9d4] ss:$40 sps:$4 sm:$0xff]  }
 0x1da   :  { %3868 = vmatprep.subr.bf16.mxu1 %v12449_v52  ;;  %v3451_v61 = vpop.f32.mrf.mxu1  ;;  %3898 = vmatprep.mubr.bf16.mxu1 %v14070_v3  ;;  %v12459_v3 = vld [vmem:[#allocation5 + $0x660] ss:$40 sps:$4 sm:$0xff]   ;;  %v12480_v52 = vld [vmem:[#allocation5 + $0x250] ss:$40 sps:$4 sm:$0xff]  }
 0x1dc   :  { %v3453_v2 = vpop.f32.mrf.mxu1  ;;  %3725 = vmatpush2.bf16.msra.mxu0 %v12444_v57  ;;  %v12497_v57 = vld [vmem:[#allocation5 + $0x984] ss:$40 sps:$4 sm:$0xff]  }
 0x1dd   :  { %3869 = vmatpush1.bf16.msra.mxu1 %v12447_v58  ;;  %3726 = vmatprep.subr.bf16.mxu0 %v12452_v59  ;;  %v12486_v58 = vld [vmem:[#allocation5 + $0x200] ss:$40 sps:$4 sm:$0xff]   ;;  %v12500_v2 = vld [vmem:[#allocation5 + $0x164] ss:$40 sps:$4 sm:$0xff]  }
 0x1de   :  { %3870 = vmatprep.subr.bf16.mxu1 %v12455_v60  ;;  %v3454_v10 = vpop.f32.mrf.mxu1  ;;  %v12495_v59 = vld [vmem:[#allocation5 + $0x980] ss:$40 sps:$4 sm:$0xff]   ;;  %v12494_v60 = vld [vmem:[#allocation5 + $0x1b4] ss:$40 sps:$4 sm:$0xff]  }
 0x1df   :  { %v3408_v12 = vpop.f32.mrf.mxu0  ;;  %v12515_v10 = vld [vmem:[#allocation5 + $0x894] ss:$40 sps:$4 sm:$0xff]  }
 0x1e0   :  { %3727 = vmatpush2.bf16.msra.mxu0 %v12450_v6  ;;  %v3409_v14 = vadd.f32 %v3408_v12, %v3368_v4  ;;  %v12501_v4 = vld [vmem:[#allocation5 + $0x930] ss:$40 sps:$4 sm:$0xff]   ;;  %v12509_v6 = vld [vmem:[#allocation5 + $0x8e4] ss:$40 sps:$4 sm:$0xff]  }
 0x1e1   :  { %3871 = vmatpush1.bf16.msra.mxu1 %v12453_v7  ;;  %v3410_v17 = vpop.f32.mrf.mxu0  ;;  %3728 = vmatprep.subr.bf16.mxu0 %v12458_v8  ;;  %v12498_v7 = vld [vmem:[#allocation5 + $0x160] ss:$40 sps:$4 sm:$0xff]   ;;  %v12506_v8 = vld [vmem:[#allocation5 + $0x114] ss:$40 sps:$4 sm:$0xff]   ;;  %v12513_v12 = vld [vmem:[#allocation5 + $0x890] ss:$40 sps:$4 sm:$0xff]  }
 0x1e2   :  { %3872 = vmatprep.subr.bf16.mxu1 %v12461_v9  ;;  %v3411_v18 = vadd.f32 %v3410_v17, %v3370_v11  ;;  %v3450_v20 = vadd.f32 %v3449_v54, %v3409_v14  ;;  %v12489_v54 = vld [vmem:[#allocation5 + $0x9d0] ss:$40 sps:$4 sm:$0xff]   ;;  %v12507_v9 = vld [vmem:[#allocation5 + $0x8e0] ss:$40 sps:$4 sm:$0xff]   ;;  %v12521_v14 = vld [vmem:[#allocation5 + $0x844] ss:$40 sps:$4 sm:$0xff]  }
 0x1e3   :  { %v3412_v21 = vpop.f32.mrf.mxu0  ;;  %v12504_v11 = vld [vmem:[#allocation5 + $0x110] ss:$40 sps:$4 sm:$0xff]   ;;  %v12527_v17 = vld [vmem:[#allocation5 + $0x7f4] ss:$40 sps:$4 sm:$0xff]  }
 0x1e4   :  { %3729 = vmatpush2.bf16.msra.mxu0 %v12456_v15  ;;  %v3452_v24 = vadd.f32 %v3451_v61, %v3411_v18  ;;  %v12503_v61 = vld [vmem:[#allocation5 + $0x934] ss:$40 sps:$4 sm:$0xff]   ;;  %v12510_v15 = vld [vmem:[#allocation5 + $0xc0] ss:$40 sps:$4 sm:$0xff]   ;;  %v12524_v18 = vld [vmem:[#allocation5 + $0x24] ss:$40 sps:$4 sm:$0xff]  }
 0x1e5   :  { %3873 = vmatpush1.bf16.msra.mxu1 %v12459_v3  ;;  %v3413_v27 = vpop.f32.mrf.mxu0  ;;  %3730 = vmatprep.subr.bf16.mxu0 %v12464_v16  ;;  %v12518_v3 = vld [vmem:[#allocation5 + $0x74] ss:$40 sps:$4 sm:$0xff]   ;;  %v12519_v16 = vld [vmem:[#allocation5 + $0x840] ss:$40 sps:$4 sm:$0xff]   ;;  %v12533_v21 = vld [vmem:[#allocation5 + $0x7a4] ss:$40 sps:$4 sm:$0xff]  }
 0x1e6   :  { %3874 = vmatprep.subr.bf16.mxu1 %v12467_v22  ;;  %v12516_v22 = vld [vmem:[#allocation5 + $0x70] ss:$40 sps:$4 sm:$0xff]  }
 0x1e7   :  { %v3490_v31 = vpop.f32.mrf.mxu0  ;;  %v12528_v27 = vld [vmem:[#allocation5 + $0x4d0] ss:$40 sps:$4 sm:$0xff]  }
 0x1e8   :  { %3731 = vmatpush2.bf16.msra.mxu0 %v12462_v25  ;;  %v14153_v33 = vadd.f32 %v3490_v31, %v3450_v20  ;;  %v12525_v20 = vld [vmem:[#allocation5 + $0x7f0] ss:$40 sps:$4 sm:$0xff]   ;;  %v12530_v25 = vld [vmem:[#allocation5 + $0x4d4] ss:$40 sps:$4 sm:$0xff]  }
 0x1e9   :  { %3875 = vmatpush1.bf16.msra.mxu1 %v12465_v26  ;;  %v3492_v1 = vpop.f32.mrf.mxu0  ;;  %3732 = vmatprep.subr.bf16.mxu0 %v12470_v28  ;;  %v12531_v26 = vld [vmem:[#allocation5 + $0x7a0] ss:$40 sps:$4 sm:$0xff]   ;;  %v12539_v28 = vld [vmem:[#allocation5 + $0xf24] ss:$40 sps:$4 sm:$0xff]  }
 0x1ea   :  { %3876 = vmatprep.subr.bf16.mxu1 %v12473_v29  ;;  %v14155_v38 = vadd.f32 %v3492_v1, %v3452_v24  ;;  %v12522_v24 = vld [vmem:[#allocation5 + $0x20] ss:$40 sps:$4 sm:$0xff]   ;;  %v12536_v29 = vld [vmem:[#allocation5 + $0x484] ss:$40 sps:$4 sm:$0xff]   ;;  %v12542_v1 = vld [vmem:[#allocation5 + $0x434] ss:$40 sps:$4 sm:$0xff]  }
 0x1eb   :  { %v3494_v39 = vpop.f32.mrf.mxu0  ;;  %v12545_v31 = vld [vmem:[#allocation8 + $0x234] ss:$40 sps:$4 sm:$0xff]  }
 0x1ec   :  { %3733 = vmatpush2.bf16.msra.mxu0 %v12468_v30  ;;  %v12537_v30 = vld [vmem:[#allocation5 + $0xf20] ss:$40 sps:$4 sm:$0xff]   ;;  %v3990_v39 = vmax.f32 %v14132_v48, 0.0  ;;  %v12554_v48 = vld [vmem:[#allocation5 + $0x394] ss:$40 sps:$4 sm:$0xff]  }
 0x1ed   :  { %3877 = vmatpush1.bf16.msra.mxu1 %v12471_v34  ;;  %v3495_v43 = vpop.f32.mrf.mxu0  ;;  %3798 = vmatprep.subr.bf16.mxu0 %v12476_v36  ;;  %v12534_v36 = vld [vmem:[#allocation5 + $0x480] ss:$40 sps:$4 sm:$0xff]  }
 0x1ee   :  { %3878 = vmatprep.subr.bf16.mxu1 %v12479_v37  ;;  %v12543_v43 = vld [vmem:[#allocation8 + $0x230] ss:$40 sps:$4 sm:$0xff]  }
 0x1ef   :  { %3735 = vmatmul.mubr.bf16.vlgmr.msra.gmra.mxu0 %v14079_v19 }
 0x1f0   :  { %3799 = vmatpush1.bf16.msra.mxu0 %v12474_v5  ;;  %3816 = vmatprep.mubr.bf16.mxu0 %v13992_v32 }
 0x1f1   :  { %3879 = vmatpush1.bf16.msra.mxu1 %v12477_v41  ;;  %3825 = vmatprep.subr.bf16.mxu0 %v12482_v45  ;;  %v12540_v41 = vld [vmem:[#allocation5 + $0x430] ss:$40 sps:$4 sm:$0xff]   ;;  %v12548_v45 = vld [vmem:[#allocation5 + $0x3e4] ss:$40 sps:$4 sm:$0xff]  }
 0x1f2   :  { %3880 = vmatprep.subr.bf16.mxu1 %v12485_v47  ;;  %v12551_v47 = vld [vmem:[#allocation8 + $0x1e4] ss:$40 sps:$4 sm:$0xff]  }
 0x1f5   :  { %3881 = vmatpush1.bf16.msra.mxu1 %v12483_v49  ;;  %v12546_v49 = vld [vmem:[#allocation5 + $0x3e0] ss:$40 sps:$4 sm:$0xff]  }
 0x1f6   :  { %3882 = vmatprep.subr.bf16.mxu1 %v12491_v51  ;;  %v12549_v51 = vld [vmem:[#allocation8 + $0x1e0] ss:$40 sps:$4 sm:$0xff]  }
 0x1f7   :  { %10934 = vmatmul.mubr.msk.bf16.vlgmr.msra.gmra.mxu0 %vm3165_vm0, %v14094_v35 }
 0x1f8   :  { %3826 = vmatpush1.bf16.msra.mxu0 %v12480_v52  ;;  %3857 = vmatprep.mubr.bf16.mxu0 %v14063_v62  ;;  %v12512_v62 = vld [vmem:[#allocation5 + $0xc4] ss:$40 sps:$4 sm:$0xff]   ;;  %v14165_v52 = vpack.c.bf16 %v3990_v39, %v3990_v39  ;;  %v12594_v39 = vld [vmem:[#allocation5 + $0xb60] ss:$40 sps:$4 sm:$0xff]  }
 0x1f9   :  { %3883 = vmatpush2.bf16.msra.mxu1 %v12489_v54  ;;  %3827 = vmatprep.subr.bf16.mxu0 %v12488_v56  ;;  %v628_v54 = vsub.s32 4, %v14055_v42  ;;  %v12557_v56 = vld [vmem:[#allocation8 + $0x194] ss:$40 sps:$4 sm:$0xff]  }
 0x1fa   :  { %3884 = vmatprep.subr.bf16.mxu1 %v12497_v57  ;;  %v12552_v57 = vld [vmem:[#allocation5 + $0x390] ss:$40 sps:$4 sm:$0xff]  }
 0x1fc   :  { %3828 = vmatpush1.bf16.msra.mxu0 %v12486_v58  ;;  %v12555_v58 = vld [vmem:[#allocation8 + $0x190] ss:$40 sps:$4 sm:$0xff]  }
 0x1fd   :  { %3885 = vmatpush2.bf16.msra.mxu1 %v12495_v59  ;;  %3829 = vmatprep.subr.bf16.mxu0 %v12494_v60  ;;  %v632_v59 = vsub.s32 5, %v14055_v42  ;;  %v12560_v60 = vld [vmem:[#allocation5 + $0x344] ss:$40 sps:$4 sm:$0xff]  }
 0x1fe   :  { %3886 = vmatprep.subr.bf16.mxu1 %v12503_v61  ;;  %v12563_v61 = vld [vmem:[#allocation8 + $0x144] ss:$40 sps:$4 sm:$0xff]  }
 0x200   :  { %3830 = vmatpush1.bf16.msra.mxu0 %v12492_v0  ;;  %v633_v0 = vrot.slane %v14142_v55, %v632_v59 }
 0x201   :  { %3887 = vmatpush2.bf16.msra.mxu1 %v12501_v4  ;;  %3831 = vmatprep.subr.bf16.mxu0 %v12500_v2  ;;  %v12558_v2 = vld [vmem:[#allocation5 + $0x340] ss:$40 sps:$4 sm:$0xff]  }
 0x202   :  { %3888 = vmatprep.subr.bf16.mxu1 %v12509_v6  ;;  %v12561_v4 = vld [vmem:[#allocation8 + $0x140] ss:$40 sps:$4 sm:$0xff]  }
 0x204   :  { %3832 = vmatpush1.bf16.msra.mxu0 %v12498_v7 }
 0x205   :  { %3889 = vmatpush2.bf16.msra.mxu1 %v12507_v9  ;;  %3833 = vmatprep.subr.bf16.mxu0 %v12506_v8  ;;  %v12566_v8 = vld [vmem:[#allocation5 + $0x2f4] ss:$40 sps:$4 sm:$0xff]  }
 0x206   :  { %3890 = vmatprep.subr.bf16.mxu1 %v12515_v10  ;;  %v12569_v9 = vld [vmem:[#allocation8 + $0xf4] ss:$40 sps:$4 sm:$0xff]  }
 0x208   :  { %3834 = vmatpush1.bf16.msra.mxu0 %v12504_v11 }
 0x209   :  { %3891 = vmatpush2.bf16.msra.mxu1 %v12513_v12  ;;  %3835 = vmatprep.subr.bf16.mxu0 %v12512_v62  ;;  %v12564_v12 = vld [vmem:[#allocation5 + $0x2f0] ss:$40 sps:$4 sm:$0xff]  }
 0x20a   :  { %3892 = vmatprep.subr.bf16.mxu1 %v12521_v14  ;;  %v12567_v14 = vld [vmem:[#allocation8 + $0xf0] ss:$40 sps:$4 sm:$0xff]  }
 0x20c   :  { %3836 = vmatpush1.bf16.msra.mxu0 %v12510_v15 }
 0x20d   :  { %3893 = vmatpush2.bf16.msra.mxu1 %v12519_v16  ;;  %3837 = vmatprep.subr.bf16.mxu0 %v12518_v3  ;;  %v12575_v16 = vld [vmem:[#allocation8 + $0xa4] ss:$40 sps:$4 sm:$0xff]  }
 0x20e   :  { %3894 = vmatprep.subr.bf16.mxu1 %v12527_v17 }
 0x210   :  { %3838 = vmatpush1.bf16.msra.mxu0 %v12516_v22  ;;  %v12570_v22 = vld [vmem:[#allocation5 + $0x2a0] ss:$40 sps:$4 sm:$0xff]  }
 0x211   :  { %3895 = vmatpush2.bf16.msra.mxu1 %v12525_v20  ;;  %3839 = vmatprep.subr.bf16.mxu0 %v12524_v18  ;;  %v12573_v18 = vld [vmem:[#allocation8 + $0xa0] ss:$40 sps:$4 sm:$0xff]  }
 0x212   :  { %3896 = vmatprep.subr.bf16.mxu1 %v12533_v21  ;;  %v12578_v20 = vld [vmem:[#allocation5 + $0xc54] ss:$40 sps:$4 sm:$0xff]  }
 0x213   :  { %v12581_v21 = vld [vmem:[#allocation8 + $0x54] ss:$40 sps:$4 sm:$0xff]  }
 0x214   :  { %3840 = vmatpush1.bf16.msra.mxu0 %v12522_v24  ;;  %v12576_v24 = vld [vmem:[#allocation5 + $0xc50] ss:$40 sps:$4 sm:$0xff]  }
 0x215   :  { %3897 = vmatpush2.bf16.msra.mxu1 %v12531_v26  ;;  %3841 = vmatprep.subr.bf16.mxu0 %v12530_v25  ;;  %v12579_v25 = vld [vmem:[#allocation8 + $0x50] ss:$40 sps:$4 sm:$0xff]  }
 0x216   :  { %3962 = vmatprep.subr.bf16.mxu1 %v12539_v28  ;;  %v12584_v26 = vld [vmem:[#allocation5 + $0xc04] ss:$40 sps:$4 sm:$0xff]  }
 0x217   :  { %v12587_v28 = vld [vmem:[#allocation8 + $0x4] ss:$40 sps:$4 sm:$0xff]  }
 0x218   :  { %3899 = vmatmul.mubr.bf16.vlgmr.msra.gmra.mxu1 %v14079_v19  ;;  %v3572_v34 = vpop.f32.mrf.mxu1  ;;  %3842 = vmatpush2.bf16.msra.mxu0 %v12528_v27  ;;  %v12582_v27 = vld [vmem:[#allocation5 + $0xc00] ss:$40 sps:$4 sm:$0xff]  }
 0x219   :  { %3963 = vmatpush1.bf16.msra.mxu1 %v12537_v30  ;;  %3843 = vmatprep.subr.bf16.mxu0 %v12536_v29  ;;  %v12585_v29 = vld [vmem:[#allocation8] ss:$40 sps:$4 sm:$0xff]  }
 0x21a   :  { %3980 = vmatprep.mubr.bf16.mxu1 %v13992_v32  ;;  %v3574_v37 = vpop.f32.mrf.mxu1  ;;  %8567 = vmatprep.subr.bf16.mxu1 %v12545_v31  ;;  %v12590_v30 = vld [vmem:[#allocation5 + $0xbb4] ss:$40 sps:$4 sm:$0xff]  }
 0x21b   :  { %v12593_v31 = vld [vmem:[#allocation8 + $0x4b4] ss:$40 sps:$4 sm:$0xff]  }
 0x21c   :  { %v3576_v5 = vpop.f32.mrf.mxu1  ;;  %3844 = vmatpush2.bf16.msra.mxu0 %v12534_v36  ;;  %v12591_v36 = vld [vmem:[#allocation8 + $0x4b0] ss:$40 sps:$4 sm:$0xff]  }
 0x21d   :  { %3845 = vmatprep.subr.bf16.mxu0 %v12542_v1  ;;  %v12596_v1 = vld [vmem:[#allocation5 + $0xb64] ss:$40 sps:$4 sm:$0xff]  }
 0x21e   :  { %v3577_v19 = vpop.f32.mrf.mxu1  ;;  %v12597_v5 = vld [vmem:[#allocation8 + $0x460] ss:$40 sps:$4 sm:$0xff]  }
 0x21f   :  { %v12606_v19 = vld [vmem:[#allocation5 + $0xac0] ss:$40 sps:$4 sm:$0xff]  }
 0x220   :  { %10935 = vmatmul.mubr.msk.bf16.vlgmr.msra.gmra.mxu1 %vm3165_vm0, %v14094_v35  ;;  %3846 = vmatpush2.bf16.msra.mxu0 %v12540_v41  ;;  %v629_v35 = vrot.slane %v14142_v55, %v628_v54  ;;  %v12572_v55 = vld [vmem:[#allocation5 + $0x2a4] ss:$40 sps:$4 sm:$0xff]  }
 0x221   :  { %8568 = vmatpush1.bf16.msra.mxu1 %v12543_v43  ;;  %3847 = vmatprep.subr.bf16.mxu0 %v12548_v45  ;;  %v12605_v41 = vld [vmem:[#allocation8 + $0x414] ss:$40 sps:$4 sm:$0xff]   ;;  %v12603_v45 = vld [vmem:[#allocation8 + $0x410] ss:$40 sps:$4 sm:$0xff]  }
 0x222   :  { %8599 = vmatprep.mubr.bf16.mxu1 %v14165_v52  ;;  %8569 = vmatprep.subr.bf16.mxu1 %v12551_v47  ;;  %v12600_v43 = vld [vmem:[#allocation5 + $0xb10] ss:$40 sps:$4 sm:$0xff]   ;;  %v12608_v47 = vld [vmem:[#allocation5 + $0xac4] ss:$40 sps:$4 sm:$0xff]  }
 0x224   :  { %3848 = vmatpush2.bf16.msra.mxu0 %v12546_v49  ;;  %v12609_v49 = vld [vmem:[#allocation8 + $0x3c0] ss:$40 sps:$4 sm:$0xff]  }
 0x225   :  { %8570 = vmatpush1.bf16.msra.mxu1 %v12549_v51  ;;  %3849 = vmatprep.subr.bf16.mxu0 %v12554_v48  ;;  %v12614_v51 = vld [vmem:[#allocation5 + $0xa74] ss:$40 sps:$4 sm:$0xff]  }
 0x226   :  { %8571 = vmatprep.subr.bf16.mxu1 %v12557_v56  ;;  %v12617_v48 = vld [vmem:[#allocation8 + $0x374] ss:$40 sps:$4 sm:$0xff]  }
 0x227   :  { %v3531_v6 = vpop.f32.mrf.mxu0  ;;  %v12612_v56 = vld [vmem:[#allocation5 + $0xa70] ss:$40 sps:$4 sm:$0xff]  }
 0x228   :  { %3850 = vmatpush2.bf16.msra.mxu0 %v12552_v57  ;;  %v3532_v7 = vadd.f32 %v3531_v6, %v629_v35  ;;  %v12615_v57 = vld [vmem:[#allocation8 + $0x370] ss:$40 sps:$4 sm:$0xff]   ;;  %v12623_v35 = vld [vmem:[#allocation8 + $0x324] ss:$40 sps:$4 sm:$0xff]  }
 0x229   :  { %8572 = vmatpush1.bf16.msra.mxu1 %v12555_v58  ;;  %v3533_v10 = vpop.f32.mrf.mxu0  ;;  %3851 = vmatprep.subr.bf16.mxu0 %v12560_v60  ;;  %v12620_v58 = vld [vmem:[#allocation5 + $0xa24] ss:$40 sps:$4 sm:$0xff]   ;;  %v12618_v60 = vld [vmem:[#allocation5 + $0xa20] ss:$40 sps:$4 sm:$0xff]  }
 0x22a   :  { %8573 = vmatprep.subr.bf16.mxu1 %v12563_v61  ;;  %v3534_v11 = vadd.f32 %v3533_v10, %v633_v0  ;;  %v14178_v62 = vadd.f32 %v3572_v34, %v3532_v7  ;;  %v12588_v34 = vld [vmem:[#allocation5 + $0xbb0] ss:$40 sps:$4 sm:$0xff]   ;;  %v12626_v0 = vld [vmem:[#allocation5 + $0xed4] ss:$40 sps:$4 sm:$0xff]   ;;  %v12632_v7 = vld [vmem:[#allocation5 + $0xe84] ss:$40 sps:$4 sm:$0xff]  }
 0x22b   :  { %v3535_v15 = vpop.f32.mrf.mxu0  ;;  %v12621_v61 = vld [vmem:[#allocation8 + $0x320] ss:$40 sps:$4 sm:$0xff]   ;;  %v12627_v6 = vld [vmem:[#allocation8 + $0x2d0] ss:$40 sps:$4 sm:$0xff]  }
 0x22c   :  { %3852 = vmatpush2.bf16.msra.mxu0 %v12558_v2  ;;  %v14180_v3 = vadd.f32 %v3574_v37, %v3534_v11  ;;  %v12599_v37 = vld [vmem:[#allocation8 + $0x464] ss:$40 sps:$4 sm:$0xff]   ;;  %v12629_v2 = vld [vmem:[#allocation8 + $0x2d4] ss:$40 sps:$4 sm:$0xff]   ;;  %v12633_v10 = vld [vmem:[#allocation8 + $0x280] ss:$40 sps:$4 sm:$0xff]  }
 0x22d   :  { %8574 = vmatpush1.bf16.msra.mxu1 %v12561_v4  ;;  %v3536_v17 = vpop.f32.mrf.mxu0  ;;  %3853 = vmatprep.subr.bf16.mxu0 %v12566_v8  ;;  %v12624_v4 = vld [vmem:[#allocation5 + $0xed0] ss:$40 sps:$4 sm:$0xff]   ;;  %v12635_v8 = vld [vmem:[#allocation8 + $0x284] ss:$40 sps:$4 sm:$0xff]   ;;  %v3989_v15 = vmax.f32 %v14130_v40, 0.0 }
 0x22e   :  { %8575 = vmatprep.subr.bf16.mxu1 %v12569_v9  ;;  %v12630_v9 = vld [vmem:[#allocation5 + $0xe80] ss:$40 sps:$4 sm:$0xff]   ;;  %v12650_v40 = vld [vmem:[#allocation5 + $0xd94] ss:$40 sps:$4 sm:$0xff]  }
 0x22f   :  { %v12639_v17 = vld [vmem:[#allocation8 + $0xc30] ss:$40 sps:$4 sm:$0xff]  }
 0x230   :  { %3854 = vmatpush2.bf16.msra.mxu0 %v12564_v12  ;;  %v12638_v12 = vld [vmem:[#allocation5 + $0xe34] ss:$40 sps:$4 sm:$0xff]  }
 0x231   :  { %8576 = vmatpush1.bf16.msra.mxu1 %v12567_v14  ;;  %3855 = vmatprep.subr.bf16.mxu0 %v12572_v55  ;;  %v12641_v14 = vld [vmem:[#allocation8 + $0xc34] ss:$40 sps:$4 sm:$0xff]  }
 0x232   :  { %8577 = vmatprep.subr.bf16.mxu1 %v12575_v16  ;;  %v12636_v16 = vld [vmem:[#allocation5 + $0xe30] ss:$40 sps:$4 sm:$0xff]  }
 0x234   :  { %3856 = vmatpush2.bf16.msra.mxu0 %v12570_v22 }
 0x235   :  { %8578 = vmatpush1.bf16.msra.mxu1 %v12573_v18  ;;  %3907 = vmatprep.subr.bf16.mxu0 %v12578_v20  ;;  %v12644_v18 = vld [vmem:[#allocation5 + $0xde4] ss:$40 sps:$4 sm:$0xff]  }
 0x236   :  { %8579 = vmatprep.subr.bf16.mxu1 %v12581_v21  ;;  %v12647_v20 = vld [vmem:[#allocation8 + $0xbe4] ss:$40 sps:$4 sm:$0xff]   ;;  %v14189_v21 = vpack.c.bf16 %v3989_v15, %v3989_v15  ;;  %v12689_v15 = vld [vmem:[#allocation8 + $0xeb4] ss:$40 sps:$4 sm:$0xff]  }
 0x237   :  { %3858 = vmatmul.mubr.bf16.vlgmr.msra.gmra.mxu0 %v14075_v13  ;;  %v12602_v13 = vld [vmem:[#allocation5 + $0xb14] ss:$40 sps:$4 sm:$0xff]  }
 0x238   :  { %3908 = vmatpush1.bf16.msra.mxu0 %v12576_v24  ;;  %3939 = vmatprep.mubr.bf16.mxu0 %v14082_v23  ;;  %v12611_v23 = vld [vmem:[#allocation8 + $0x3c4] ss:$40 sps:$4 sm:$0xff]  }
 0x239   :  { %8580 = vmatpush1.bf16.msra.mxu1 %v12579_v25  ;;  %3909 = vmatprep.subr.bf16.mxu0 %v12584_v26  ;;  %v12642_v25 = vld [vmem:[#allocation5 + $0xde0] ss:$40 sps:$4 sm:$0xff]  }
 0x23a   :  { %8581 = vmatprep.subr.bf16.mxu1 %v12587_v28  ;;  %v12645_v26 = vld [vmem:[#allocation8 + $0xbe0] ss:$40 sps:$4 sm:$0xff]   ;;  %v12653_v28 = vld [vmem:[#allocation8 + $0xb94] ss:$40 sps:$4 sm:$0xff]  }
 0x23c   :  { %3910 = vmatpush1.bf16.msra.mxu0 %v12582_v27  ;;  %v12648_v27 = vld [vmem:[#allocation5 + $0xd90] ss:$40 sps:$4 sm:$0xff]  }
 0x23d   :  { %8582 = vmatpush1.bf16.msra.mxu1 %v12585_v29  ;;  %3911 = vmatprep.subr.bf16.mxu0 %v12590_v30  ;;  %v12651_v29 = vld [vmem:[#allocation8 + $0xb90] ss:$40 sps:$4 sm:$0xff]  }
 0x23e   :  { %8583 = vmatprep.subr.bf16.mxu1 %v12593_v31  ;;  %v12656_v30 = vld [vmem:[#allocation5 + $0xd44] ss:$40 sps:$4 sm:$0xff]  }
 0x23f   :  { %v12659_v31 = vld [vmem:[#allocation8 + $0xb44] ss:$40 sps:$4 sm:$0xff]  }
 0x240   :  { %3912 = vmatpush1.bf16.msra.mxu0 %v12588_v34  ;;  %v12654_v34 = vld [vmem:[#allocation5 + $0xd40] ss:$40 sps:$4 sm:$0xff]  }
 0x241   :  { %8584 = vmatpush2.bf16.msra.mxu1 %v12591_v36  ;;  %3913 = vmatprep.subr.bf16.mxu0 %v12596_v1  ;;  %v12657_v36 = vld [vmem:[#allocation8 + $0xb40] ss:$40 sps:$4 sm:$0xff]  }
 0x242   :  { %8585 = vmatprep.subr.bf16.mxu1 %v12599_v37  ;;  %v12662_v37 = vld [vmem:[#allocation5 + $0xcf4] ss:$40 sps:$4 sm:$0xff]  }
 0x244   :  { %3914 = vmatpush1.bf16.msra.mxu0 %v12594_v39  ;;  %v12665_v39 = vld [vmem:[#allocation8 + $0xaf4] ss:$40 sps:$4 sm:$0xff]  }
 0x245   :  { %8586 = vmatpush2.bf16.msra.mxu1 %v12597_v5  ;;  %3915 = vmatprep.subr.bf16.mxu0 %v12602_v13  ;;  %v12660_v13 = vld [vmem:[#allocation5 + $0xcf0] ss:$40 sps:$4 sm:$0xff]  }
 0x246   :  { %8587 = vmatprep.subr.bf16.mxu1 %v12605_v41  ;;  %v12663_v41 = vld [vmem:[#allocation8 + $0xaf0] ss:$40 sps:$4 sm:$0xff]  }
 0x248   :  { %3916 = vmatpush1.bf16.msra.mxu0 %v12600_v43 }
 0x249   :  { %8588 = vmatpush2.bf16.msra.mxu1 %v12603_v45  ;;  %3917 = vmatprep.subr.bf16.mxu0 %v12608_v47  ;;  %v12668_v45 = vld [vmem:[#allocation5 + $0xca4] ss:$40 sps:$4 sm:$0xff]  }
 0x24a   :  { %8589 = vmatprep.subr.bf16.mxu1 %v12611_v23  ;;  %v12671_v47 = vld [vmem:[#allocation8 + $0xaa4] ss:$40 sps:$4 sm:$0xff]  }
 0x24c   :  { %3918 = vmatpush1.bf16.msra.mxu0 %v12606_v19  ;;  %v12666_v19 = vld [vmem:[#allocation5 + $0xca0] ss:$40 sps:$4 sm:$0xff]  }
 0x24d   :  { %8590 = vmatpush2.bf16.msra.mxu1 %v12609_v49  ;;  %3919 = vmatprep.subr.bf16.mxu0 %v12614_v51  ;;  %v12669_v49 = vld [vmem:[#allocation8 + $0xaa0] ss:$40 sps:$4 sm:$0xff]  }
 0x24e   :  { %8591 = vmatprep.subr.bf16.mxu1 %v12617_v48 }
 0x250   :  { %3920 = vmatpush1.bf16.msra.mxu0 %v12612_v56  ;;  %v12674_v56 = vld [vmem:[#allocation8 + $0x734] ss:$40 sps:$4 sm:$0xff]  }
 0x251   :  { %8592 = vmatpush2.bf16.msra.mxu1 %v12615_v57  ;;  %3921 = vmatprep.subr.bf16.mxu0 %v12620_v58  ;;  %v12677_v57 = vld [vmem:[#allocation8 + $0xa54] ss:$40 sps:$4 sm:$0xff]  }
 0x252   :  { %8593 = vmatprep.subr.bf16.mxu1 %v12623_v35  ;;  %v3992_v35 = vmax.f32 %v14155_v38, 0.0  ;;  %v12681_v38 = vld [vmem:[#allocation8 + $0xa00] ss:$40 sps:$4 sm:$0xff]  }
 0x254   :  { %3922 = vmatpush1.bf16.msra.mxu0 %v12618_v60 }
 0x255   :  { %8594 = vmatpush2.bf16.msra.mxu1 %v12621_v61  ;;  %3923 = vmatprep.subr.bf16.mxu0 %v12626_v0  ;;  %v12672_v61 = vld [vmem:[#allocation8 + $0x730] ss:$40 sps:$4 sm:$0xff]  }
 0x256   :  { %8595 = vmatprep.subr.bf16.mxu1 %v12629_v2 }
 0x258   :  { %v14184_v11 = vpop.f32.mrf.mxu1  ;;  %3924 = vmatpush2.bf16.msra.mxu0 %v12624_v4  ;;  %v12675_v4 = vld [vmem:[#allocation8 + $0xa50] ss:$40 sps:$4 sm:$0xff]  }
 0x259   :  { %8596 = vmatpush2.bf16.msra.mxu1 %v12627_v6  ;;  %3925 = vmatprep.subr.bf16.mxu0 %v12632_v7  ;;  %v14198_v7 = vpack.c.bf16 %v3992_v35, %v3992_v35  ;;  %v12734_v35 = vld [vmem:[#allocation8 + $0x914] ss:$40 sps:$4 sm:$0xff]  }
 0x25a   :  { %8597 = vmatprep.subr.bf16.mxu1 %v12635_v8  ;;  %v14187_v55 = vpop.f32.mrf.mxu1 }
 0x25c   :  { %v3699_v22 = vpop.f32.mrf.mxu1  ;;  %3926 = vmatpush2.bf16.msra.mxu0 %v12630_v9  ;;  %v12678_v9 = vld [vmem:[#allocation8 + $0x6e0] ss:$40 sps:$4 sm:$0xff]  }
 0x25d   :  { %8598 = vmatpush2.bf16.msra.mxu1 %v12633_v10  ;;  %3927 = vmatprep.subr.bf16.mxu0 %v12638_v12  ;;  %v12683_v10 = vld [vmem:[#allocation8 + $0xa04] ss:$40 sps:$4 sm:$0xff]   ;;  %v12686_v12 = vld [vmem:[#allocation8 + $0x694] ss:$40 sps:$4 sm:$0xff]  }
 0x25e   :  { %8649 = vmatprep.subr.bf16.mxu1 %v12641_v14  ;;  %v3700_v24 = vpop.f32.mrf.mxu1  ;;  %v12684_v14 = vld [vmem:[#allocation8 + $0x690] ss:$40 sps:$4 sm:$0xff]   ;;  %v12695_v22 = vld [vmem:[#allocation8 + $0xe64] ss:$40 sps:$4 sm:$0xff]  }
 0x25f   :  { %v12701_v24 = vld [vmem:[#allocation8 + $0xe14] ss:$40 sps:$4 sm:$0xff]  }
 0x260   :  { %8600 = vmatmul.mubr.bf16.vlgmr.msra.gmra.mxu1 %v14189_v21  ;;  %3928 = vmatpush2.bf16.msra.mxu0 %v12636_v16  ;;  %v12687_v16 = vld [vmem:[#allocation8 + $0xeb0] ss:$40 sps:$4 sm:$0xff]  }
 0x261   :  { %8650 = vmatpush1.bf16.msra.mxu1 %v12639_v17  ;;  %3929 = vmatprep.subr.bf16.mxu0 %v12644_v18  ;;  %v12692_v17 = vld [vmem:[#allocation8 + $0x644] ss:$40 sps:$4 sm:$0xff]   ;;  %v12690_v18 = vld [vmem:[#allocation8 + $0x640] ss:$40 sps:$4 sm:$0xff]  }
 0x262   :  { %8651 = vmatprep.subr.bf16.mxu1 %v12647_v20  ;;  %v12698_v20 = vld [vmem:[#allocation8 + $0x5f4] ss:$40 sps:$4 sm:$0xff]  }
 0x264   :  { %3930 = vmatpush2.bf16.msra.mxu0 %v12642_v25  ;;  %v12696_v25 = vld [vmem:[#allocation8 + $0x5f0] ss:$40 sps:$4 sm:$0xff]  }
 0x265   :  { %8652 = vmatpush1.bf16.msra.mxu1 %v12645_v26  ;;  %3931 = vmatprep.subr.bf16.mxu0 %v12650_v40  ;;  %v12699_v26 = vld [vmem:[#allocation8 + $0xe10] ss:$40 sps:$4 sm:$0xff]   ;;  %v12704_v40 = vld [vmem:[#allocation8 + $0x5a4] ss:$40 sps:$4 sm:$0xff]  }
 0x266   :  { %8653 = vmatprep.subr.bf16.mxu1 %v12653_v28  ;;  %v12707_v28 = vld [vmem:[#allocation8 + $0xdc4] ss:$40 sps:$4 sm:$0xff]  }
 0x267   :  { %v14192_v1 = vpop.f32.mrf.mxu0 }
 0x268   :  { %3932 = vmatpush2.bf16.msra.mxu0 %v12648_v27  ;;  %v12702_v27 = vld [vmem:[#allocation8 + $0x5a0] ss:$40 sps:$4 sm:$0xff]  }
 0x269   :  { %8654 = vmatpush1.bf16.msra.mxu1 %v12651_v29  ;;  %v3615_v5 = vpop.f32.mrf.mxu0  ;;  %3933 = vmatprep.subr.bf16.mxu0 %v12656_v30  ;;  %v12705_v29 = vld [vmem:[#allocation8 + $0xdc0] ss:$40 sps:$4 sm:$0xff]   ;;  %v12710_v30 = vld [vmem:[#allocation8 + $0x554] ss:$40 sps:$4 sm:$0xff]  }
 0x26a   :  { %8655 = vmatprep.subr.bf16.mxu1 %v12659_v31  ;;  %v3616_v48 = vadd.f32 %v3615_v5, %v14180_v3  ;;  %v12680_v3 = vld [vmem:[#allocation8 + $0x6e4] ss:$40 sps:$4 sm:$0xff]   ;;  %v12713_v31 = vld [vmem:[#allocation8 + $0xd74] ss:$40 sps:$4 sm:$0xff]   ;;  %v12714_v5 = vld [vmem:[#allocation8 + $0x500] ss:$40 sps:$4 sm:$0xff]  }
 0x26b   :  { %v3617_v43 = vpop.f32.mrf.mxu0 }
 0x26c   :  { %3934 = vmatpush2.bf16.msra.mxu0 %v12654_v34  ;;  %v12708_v34 = vld [vmem:[#allocation8 + $0x550] ss:$40 sps:$4 sm:$0xff]   ;;  %v12725_v43 = vld [vmem:[#allocation8 + $0xcd4] ss:$40 sps:$4 sm:$0xff]  }
 0x26d   :  { %8656 = vmatpush1.bf16.msra.mxu1 %v12657_v36  ;;  %v3618_v23 = vpop.f32.mrf.mxu0  ;;  %3935 = vmatprep.subr.bf16.mxu0 %v12662_v37  ;;  %v12711_v36 = vld [vmem:[#allocation8 + $0xd70] ss:$40 sps:$4 sm:$0xff]   ;;  %v12716_v37 = vld [vmem:[#allocation8 + $0x504] ss:$40 sps:$4 sm:$0xff]  }
 0x26e   :  { %8657 = vmatprep.subr.bf16.mxu1 %v12665_v39  ;;  %v12719_v39 = vld [vmem:[#allocation8 + $0xd24] ss:$40 sps:$4 sm:$0xff]  }
 0x26f   :  { %v14194_v51 = vpop.f32.mrf.mxu0  ;;  %v12728_v23 = vld [vmem:[#allocation8 + $0x964] ss:$40 sps:$4 sm:$0xff]  }
 0x270   :  { %3936 = vmatpush2.bf16.msra.mxu0 %v12660_v13  ;;  %v12717_v13 = vld [vmem:[#allocation8 + $0xd20] ss:$40 sps:$4 sm:$0xff]  }
 0x271   :  { %8658 = vmatpush1.bf16.msra.mxu1 %v12663_v41  ;;  %v3656_v58 = vpop.f32.mrf.mxu0  ;;  %3937 = vmatprep.subr.bf16.mxu0 %v12668_v45  ;;  %v12722_v41 = vld [vmem:[#allocation8 + $0x9b4] ss:$40 sps:$4 sm:$0xff]   ;;  %v12720_v45 = vld [vmem:[#allocation8 + $0x9b0] ss:$40 sps:$4 sm:$0xff]  }
 0x272   :  { %8659 = vmatprep.subr.bf16.mxu1 %v12671_v47  ;;  %v3657_v60 = vadd.f32 %v3656_v58, %v3616_v48  ;;  %v12723_v47 = vld [vmem:[#allocation8 + $0xcd0] ss:$40 sps:$4 sm:$0xff]   ;;  %v12729_v58 = vld [vmem:[#allocation8 + $0xc80] ss:$40 sps:$4 sm:$0xff]  }
 0x273   :  { %v3658_v0 = vpop.f32.mrf.mxu0 }
 0x274   :  { %v3994_v2 = vmax.f32 %v3657_v60, 0.0  ;;  %3938 = vmatpush2.bf16.msra.mxu0 %v12666_v19  ;;  %v3614_v19 = vadd.f32 %v14192_v1, %v14178_v62  ;;  %v12732_v1 = vld [vmem:[#allocation8 + $0x910] ss:$40 sps:$4 sm:$0xff]  }
 0x275   :  { %8660 = vmatpush1.bf16.msra.mxu1 %v12669_v49  ;;  %v3659_v6 = vpop.f32.mrf.mxu0  ;;  %8608 = vmatprep.subr.bf16.mxu0 %v12674_v56  ;;  %v12731_v49 = vld [vmem:[#allocation8 + $0xc84] ss:$40 sps:$4 sm:$0xff]  }
 0x276   :  { %8661 = vmatprep.subr.bf16.mxu1 %v12677_v57  ;;  %v14200_v8 = vpack.c.bf16 %v3994_v2, %v3994_v2  ;;  %v3655_v48 = vadd.f32 %v14194_v51, %v3614_v19  ;;  %v12726_v57 = vld [vmem:[#allocation8 + $0x960] ss:$40 sps:$4 sm:$0xff]   ;;  %v12737_v2 = vld [vmem:[#allocation8 + $0x8c4] ss:$40 sps:$4 sm:$0xff]  }
 0x277   :  { %3940 = vmatmul.mubr.bf16.vlgmr.msra.gmra.mxu0 %v14066_v63  ;;  %v12693_v63 = vld [vmem:[#allocation8 + $0xe60] ss:$40 sps:$4 sm:$0xff]   ;;  %v12830_v6 = vld [vmem:[#allocation8 + $0x15e4] ss:$40 sps:$4 sm:$0xff]  }
 0x278   :  { %8609 = vmatpush1.bf16.msra.mxu0 %v12672_v61  ;;  %8640 = vmatprep.mubr.bf16.mxu0 %v14198_v7  ;;  %v12824_v61 = vld [vmem:[#allocation8 + $0x1634] ss:$40 sps:$4 sm:$0xff]   ;;  %v3993_v0 = vmax.f32 %v3655_v48, 0.0 }
 0x279   :  { %8681 = vmatprep.mubr.bf16.mxu1 %v14200_v8  ;;  %8610 = vmatprep.subr.bf16.mxu0 %v12680_v3 }
 0x27a   :  { %8662 = vmatpush1.bf16.msra.mxu1 %v12675_v4  ;;  %v12822_v4 = vld [vmem:[#allocation8 + $0x1630] ss:$40 sps:$4 sm:$0xff]   ;;  %v14212_v3 = vpack.c.bf16 %v3993_v0, %v3993_v0 }
 0x27b   :  { %8663 = vmatprep.subr.bf16.mxu1 %v12683_v10  ;;  %v12740_v10 = vld [vmem:[#allocation8 + $0x874] ss:$40 sps:$4 sm:$0xff]  }
 0x27c   :  { %8611 = vmatpush1.bf16.msra.mxu0 %v12678_v9  ;;  %v12735_v9 = vld [vmem:[#allocation8 + $0x8c0] ss:$40 sps:$4 sm:$0xff]  }
 0x27d   :  { %8612 = vmatprep.subr.bf16.mxu0 %v12686_v12  ;;  %v12836_v12 = vld [vmem:[#allocation8 + $0x1594] ss:$40 sps:$4 sm:$0xff]  }
 0x27e   :  { %8664 = vmatpush1.bf16.msra.mxu1 %v12681_v38  ;;  %v12828_v38 = vld [vmem:[#allocation8 + $0x15e0] ss:$40 sps:$4 sm:$0xff]  }
 0x27f   :  { %8665 = vmatprep.subr.bf16.mxu1 %v12689_v15  ;;  %v636_v15 = vsub.s32 6, %v14055_v42 }
 0x280   :  { %8613 = vmatpush1.bf16.msra.mxu0 %v12684_v14  ;;  %v12738_v14 = vld [vmem:[#allocation8 + $0x870] ss:$40 sps:$4 sm:$0xff]  }
 0x281   :  { %8614 = vmatprep.subr.bf16.mxu0 %v12692_v17  ;;  %v12834_v17 = vld [vmem:[#allocation8 + $0x1590] ss:$40 sps:$4 sm:$0xff]  }
 0x282   :  { %8666 = vmatpush2.bf16.msra.mxu1 %v12687_v16  ;;  %v12743_v16 = vld [vmem:[#allocation8 + $0x824] ss:$40 sps:$4 sm:$0xff]  }
 0x283   :  { %8667 = vmatprep.subr.bf16.mxu1 %v12695_v22  ;;  %v12842_v22 = vld [vmem:[#allocation8 + $0x1544] ss:$40 sps:$4 sm:$0xff]  }
 0x284   :  { %8615 = vmatpush1.bf16.msra.mxu0 %v12690_v18  ;;  %v12741_v18 = vld [vmem:[#allocation8 + $0x820] ss:$40 sps:$4 sm:$0xff]  }
 0x285   :  { %8616 = vmatprep.subr.bf16.mxu0 %v12698_v20 }
 0x286   :  { %8668 = vmatpush2.bf16.msra.mxu1 %v12693_v63  ;;  %v13807_v63 = vld [vmem:[#allocation7] sm:$0xff] }
 0x287   :  { %8669 = vmatprep.subr.bf16.mxu1 %v12701_v24  ;;  %v637_v20 = vrot.slane %v13807_v63, %v636_v15  ;;  %v640_v24 = vsub.s32 7, %v14055_v42 }
 0x288   :  { %8617 = vmatpush1.bf16.msra.mxu0 %v12696_v25  ;;  %v12746_v25 = vld [vmem:[#allocation8 + $0x7d4] ss:$40 sps:$4 sm:$0xff]  }
 0x289   :  { %8618 = vmatprep.subr.bf16.mxu0 %v12704_v40  ;;  %v12848_v40 = vld [vmem:[#allocation8 + $0x14f4] ss:$40 sps:$4 sm:$0xff]  }
 0x28a   :  { %8670 = vmatpush2.bf16.msra.mxu1 %v12699_v26  ;;  %v12840_v26 = vld [vmem:[#allocation8 + $0x1540] ss:$40 sps:$4 sm:$0xff]  }
 0x28b   :  { %8671 = vmatprep.subr.bf16.mxu1 %v12707_v28  ;;  %v3696_v28 = vadd.f32 %v14184_v11, %v637_v20  ;;  %v3991_v11 = vmax.f32 %v14153_v33, 0.0  ;;  %v12866_v33 = vld [vmem:[#allocation8 + $0x1404] ss:$40 sps:$4 sm:$0xff]  }
 0x28c   :  { %8619 = vmatpush1.bf16.msra.mxu0 %v12702_v27  ;;  %v641_v27 = vrot.slane %v13807_v63, %v640_v24  ;;  %v12884_v63 = vld [vmem:[#allocation8 + $0x1684] ss:$40 sps:$4 sm:$0xff]  }
 0x28d   :  { %8620 = vmatprep.subr.bf16.mxu0 %v12710_v30  ;;  %v12749_v30 = vld [vmem:[#allocation8 + $0x784] ss:$40 sps:$4 sm:$0xff]   ;;  %v14227_v48 = vpack.c.bf16 %v3991_v11, %v3991_v11 }
 0x28e   :  { %8672 = vmatpush2.bf16.msra.mxu1 %v12705_v29  ;;  %v12744_v29 = vld [vmem:[#allocation8 + $0x7d0] ss:$40 sps:$4 sm:$0xff]   ;;  %v12767_v20 = vld [vmem:[#allocation8 + $0xfa4] ss:$40 sps:$4 sm:$0xff]  }
 0x28f   :  { %8673 = vmatprep.subr.bf16.mxu1 %v12713_v31  ;;  %v12846_v31 = vld [vmem:[#allocation8 + $0x14f0] ss:$40 sps:$4 sm:$0xff]  }
 0x290   :  { %8621 = vmatpush1.bf16.msra.mxu0 %v12708_v34  ;;  %v12854_v34 = vld [vmem:[#allocation8 + $0x14a4] ss:$40 sps:$4 sm:$0xff]  }
 0x291   :  { %8622 = vmatprep.subr.bf16.mxu0 %v12716_v37  ;;  %v3698_v37 = vadd.f32 %v14187_v55, %v641_v27  ;;  %v12755_v55 = vld [vmem:[#allocation8 + $0x10e4] ss:$40 sps:$4 sm:$0xff]   ;;  %v12768_v27 = vld [vmem:[#allocation8 + $0xf50] ss:$40 sps:$4 sm:$0xff]  }
 0x292   :  { %8674 = vmatpush2.bf16.msra.mxu1 %v12711_v36 }
 0x293   :  { %8675 = vmatprep.subr.bf16.mxu1 %v12719_v39 }
 0x294   :  { %8623 = vmatpush1.bf16.msra.mxu0 %v12714_v5  ;;  %v12747_v5 = vld [vmem:[#allocation8 + $0x780] ss:$40 sps:$4 sm:$0xff]  }
 0x295   :  { %8624 = vmatprep.subr.bf16.mxu0 %v12722_v41  ;;  %v12852_v41 = vld [vmem:[#allocation8 + $0x14a0] ss:$40 sps:$4 sm:$0xff]  }
 0x296   :  { %8676 = vmatpush2.bf16.msra.mxu1 %v12717_v13  ;;  %v12752_v13 = vld [vmem:[#allocation8 + $0x1134] ss:$40 sps:$4 sm:$0xff]  }
 0x297   :  { %8677 = vmatprep.subr.bf16.mxu1 %v12725_v43 }
 0x298   :  { %v14208_v56 = vpop.f32.mrf.mxu1  ;;  %8625 = vmatpush2.bf16.msra.mxu0 %v12720_v45  ;;  %v12860_v45 = vld [vmem:[#allocation8 + $0x1454] ss:$40 sps:$4 sm:$0xff]  }
 0x299   :  { %8626 = vmatprep.subr.bf16.mxu0 %v12728_v23 }
 0x29a   :  { %v14210_v60 = vpop.f32.mrf.mxu1  ;;  %8678 = vmatpush2.bf16.msra.mxu1 %v12723_v47 }
 0x29b   :  { %8679 = vmatprep.subr.bf16.mxu1 %v12731_v49  ;;  %v12750_v49 = vld [vmem:[#allocation8 + $0x1130] ss:$40 sps:$4 sm:$0xff]  }
 0x29c   :  { %v3781_v62 = vpop.f32.mrf.mxu1  ;;  %8627 = vmatpush2.bf16.msra.mxu0 %v12726_v57 }
 0x29d   :  { %8628 = vmatprep.subr.bf16.mxu0 %v12734_v35  ;;  %v12758_v62 = vld [vmem:[#allocation8 + $0x1094] ss:$40 sps:$4 sm:$0xff]  }
 0x29e   :  { %v3782_v51 = vpop.f32.mrf.mxu1  ;;  %8680 = vmatpush2.bf16.msra.mxu1 %v12729_v58  ;;  %v12858_v58 = vld [vmem:[#allocation8 + $0x1450] ss:$40 sps:$4 sm:$0xff]  }
 0x29f   :  { %8731 = vmatprep.subr.bf16.mxu1 %v12824_v61  ;;  %v12753_v61 = vld [vmem:[#allocation8 + $0x10e0] ss:$40 sps:$4 sm:$0xff]  }
 0x2a0   :  { %8629 = vmatpush2.bf16.msra.mxu0 %v12732_v1  ;;  %v12864_v1 = vld [vmem:[#allocation8 + $0x1400] ss:$40 sps:$4 sm:$0xff]  }
 0x2a1   :  { %8682 = vmatmul.mubr.bf16.vlgmr.msra.gmra.mxu1 %v14212_v3  ;;  %8630 = vmatprep.subr.bf16.mxu0 %v12737_v2 }
 0x2a2   :  { %8732 = vmatpush1.bf16.msra.mxu1 %v12822_v4  ;;  %v12872_v4 = vld [vmem:[#allocation8 + $0x1724] ss:$40 sps:$4 sm:$0xff]  }
 0x2a3   :  { %8733 = vmatprep.subr.bf16.mxu1 %v12830_v6 }
 0x2a4   :  { %8631 = vmatpush2.bf16.msra.mxu0 %v12735_v9  ;;  %v12756_v9 = vld [vmem:[#allocation8 + $0x1090] ss:$40 sps:$4 sm:$0xff]  }
 0x2a5   :  { %8632 = vmatprep.subr.bf16.mxu0 %v12740_v10 }
 0x2a6   :  { %8734 = vmatpush1.bf16.msra.mxu1 %v12828_v38  ;;  %v12761_v38 = vld [vmem:[#allocation8 + $0x1044] ss:$40 sps:$4 sm:$0xff]  }
 0x2a7   :  { %8735 = vmatprep.subr.bf16.mxu1 %v12836_v12  ;;  %v12870_v12 = vld [vmem:[#allocation8 + $0x1720] ss:$40 sps:$4 sm:$0xff]  }
 0x2a8   :  { %8633 = vmatpush2.bf16.msra.mxu0 %v12738_v14 }
 0x2a9   :  { %8634 = vmatprep.subr.bf16.mxu0 %v12743_v16  ;;  %v12759_v16 = vld [vmem:[#allocation8 + $0x1040] ss:$40 sps:$4 sm:$0xff]  }
 0x2aa   :  { %8736 = vmatpush1.bf16.msra.mxu1 %v12834_v17  ;;  %v12764_v17 = vld [vmem:[#allocation8 + $0xff4] ss:$40 sps:$4 sm:$0xff]  }
 0x2ab   :  { %8737 = vmatprep.subr.bf16.mxu1 %v12842_v22  ;;  %v12762_v22 = vld [vmem:[#allocation8 + $0xff0] ss:$40 sps:$4 sm:$0xff]  }
 0x2ac   :  { %8635 = vmatpush2.bf16.msra.mxu0 %v12741_v18  ;;  %v12876_v18 = vld [vmem:[#allocation8 + $0x16d0] ss:$40 sps:$4 sm:$0xff]  }
 0x2ad   :  { %8636 = vmatprep.subr.bf16.mxu0 %v12746_v25  ;;  %v12765_v25 = vld [vmem:[#allocation8 + $0xfa0] ss:$40 sps:$4 sm:$0xff]  }
 0x2ae   :  { %8738 = vmatpush1.bf16.msra.mxu1 %v12840_v26  ;;  %v12882_v26 = vld [vmem:[#allocation8 + $0x1680] ss:$40 sps:$4 sm:$0xff]  }
 0x2af   :  { %v3736_v36 = vpop.f32.mrf.mxu0  ;;  %8739 = vmatprep.subr.bf16.mxu1 %v12848_v40  ;;  %v12890_v40 = vld [vmem:[#allocation8 + $0x23c] ss:$40 sps:$4 sm:$0xff]  }
 0x2b0   :  { %v3737_v39 = vadd.f32 %v3736_v36, %v3696_v28  ;;  %8637 = vmatpush2.bf16.msra.mxu0 %v12744_v29  ;;  %v12770_v28 = vld [vmem:[#allocation8 + $0xf54] ss:$40 sps:$4 sm:$0xff]   ;;  %v12773_v29 = vld [vmem:[#allocation8 + $0xf04] ss:$40 sps:$4 sm:$0xff]  }
 0x2b1   :  { %v3738_v43 = vpop.f32.mrf.mxu0  ;;  %8638 = vmatprep.subr.bf16.mxu0 %v12749_v30  ;;  %v12771_v30 = vld [vmem:[#allocation8 + $0xf00] ss:$40 sps:$4 sm:$0xff]   ;;  %v12779_v36 = vld [vmem:[#allocation8 + $0x1364] ss:$40 sps:$4 sm:$0xff]  }
 0x2b2   :  { %v14225_v47 = vadd.f32 %v14208_v56, %v3737_v39  ;;  %8740 = vmatpush1.bf16.msra.mxu1 %v12846_v31  ;;  %v3739_v19 = vadd.f32 %v3738_v43, %v3698_v37  ;;  %v12776_v31 = vld [vmem:[#allocation8 + $0x13b4] ss:$40 sps:$4 sm:$0xff]   ;;  %v12777_v37 = vld [vmem:[#allocation8 + $0x1360] ss:$40 sps:$4 sm:$0xff]   ;;  %v12785_v43 = vld [vmem:[#allocation8 + $0x12c4] ss:$40 sps:$4 sm:$0xff]  }
 0x2b3   :  { %v3740_v23 = vpop.f32.mrf.mxu0  ;;  %8741 = vmatprep.subr.bf16.mxu1 %v12854_v34  ;;  %v12774_v34 = vld [vmem:[#allocation8 + $0x13b0] ss:$40 sps:$4 sm:$0xff]  }
 0x2b4   :  { %8639 = vmatpush2.bf16.msra.mxu0 %v12747_v5  ;;  %v3780_v56 = vadd.f32 %v14210_v60, %v3739_v19  ;;  %v12878_v60 = vld [vmem:[#allocation8 + $0x16d4] ss:$40 sps:$4 sm:$0xff]   ;;  %v12783_v23 = vld [vmem:[#allocation8 + $0x12c0] ss:$40 sps:$4 sm:$0xff]  }
 0x2b5   :  { %v3741_v57 = vpop.f32.mrf.mxu0  ;;  %8690 = vmatprep.subr.bf16.mxu0 %v12752_v13  ;;  %v12782_v5 = vld [vmem:[#allocation8 + $0x1314] ss:$40 sps:$4 sm:$0xff]  }
 0x2b6   :  { %8742 = vmatpush1.bf16.msra.mxu1 %v12852_v41  ;;  %v12780_v41 = vld [vmem:[#allocation8 + $0x1310] ss:$40 sps:$4 sm:$0xff]  }
 0x2b7   :  { %8641 = vmatmul.mubr.bf16.vlgmr.msra.gmra.mxu0 %v14227_v48  ;;  %v14230_v35 = vpop.f32.mrf.mxu0  ;;  %8743 = vmatprep.subr.bf16.mxu1 %v12860_v45  ;;  %v12786_v57 = vld [vmem:[#allocation8 + $0x1270] ss:$40 sps:$4 sm:$0xff]  }
 0x2b8   :  { %8691 = vmatpush1.bf16.msra.mxu0 %v12750_v49  ;;  %v12788_v49 = vld [vmem:[#allocation8 + $0x1274] ss:$40 sps:$4 sm:$0xff]  }
 0x2b9   :  { %v3820_v0 = vpop.f32.mrf.mxu0  ;;  %8692 = vmatprep.subr.bf16.mxu0 %v12755_v55 }
 0x2ba   :  { %v3821_v2 = vadd.f32 %v3820_v0, %v3780_v56  ;;  %8744 = vmatpush1.bf16.msra.mxu1 %v12858_v58  ;;  %v12794_v0 = vld [vmem:[#allocation8 + $0x11d4] ss:$40 sps:$4 sm:$0xff]  }
 0x2bb   :  { %v3822_v51 = vpop.f32.mrf.mxu0  ;;  %8745 = vmatprep.subr.bf16.mxu1 %v12866_v33  ;;  %v12791_v33 = vld [vmem:[#allocation8 + $0x1224] ss:$40 sps:$4 sm:$0xff]  }
 0x2bc   :  { %v3996_v6 = vmax.f32 %v3821_v2, 0.0  ;;  %8693 = vmatpush1.bf16.msra.mxu0 %v12753_v61  ;;  %v12789_v61 = vld [vmem:[#allocation8 + $0x1220] ss:$40 sps:$4 sm:$0xff]   ;;  %v12797_v2 = vld [vmem:[#allocation8 + $0x1184] ss:$40 sps:$4 sm:$0xff]  }
 0x2bd   :  { %v3823_v10 = vpop.f32.mrf.mxu0  ;;  %8694 = vmatprep.subr.bf16.mxu0 %v12758_v62  ;;  %v12792_v62 = vld [vmem:[#allocation8 + $0x11d0] ss:$40 sps:$4 sm:$0xff]  }
 0x2be   :  { %v14233_v14 = vpack.c.bf16 %v3996_v6, %v3996_v6  ;;  %8746 = vmatpush1.bf16.msra.mxu1 %v12864_v1  ;;  %v3819_v1 = vadd.f32 %v14230_v35, %v14225_v47  ;;  %v12800_v6 = vld [vmem:[#allocation8 + $0x73c] ss:$40 sps:$4 sm:$0xff]  }
 0x2bf   :  { %8757 = vmatprep.subr.bf16.mxu1 %v12872_v4  ;;  %v12795_v4 = vld [vmem:[#allocation8 + $0x1180] ss:$40 sps:$4 sm:$0xff]   ;;  %v12806_v35 = vld [vmem:[#allocation8 + $0x69c] ss:$40 sps:$4 sm:$0xff]  }
 0x2c0   :  { %8695 = vmatpush1.bf16.msra.mxu0 %v12756_v9  ;;  %8722 = vmatprep.mubr.bf16.mxu0 %v14233_v14  ;;  %v3995_v51 = vmax.f32 %v3819_v1, 0.0  ;;  %v12798_v9 = vld [vmem:[#allocation8 + $0x738] ss:$40 sps:$4 sm:$0xff]  }
 0x2c1   :  { %8696 = vmatprep.subr.bf16.mxu0 %v12761_v38  ;;  %v12803_v38 = vld [vmem:[#allocation8 + $0x6ec] ss:$40 sps:$4 sm:$0xff]   ;;  %v12861_v1 = vld [vmem:[#allocation8 + $0x7d8] ss:$40 sps:$4 sm:$0xff]  }
 0x2c2   :  { %8758 = vmatpush2.bf16.msra.mxu1 %v12870_v12  ;;  %v14246_v10 = vpack.c.bf16 %v3995_v51, %v3995_v51 }
 0x2c3   :  { %8759 = vmatprep.subr.bf16.mxu1 %v12878_v60  ;;  %v12801_v60 = vld [vmem:[#allocation8 + $0x6e8] ss:$40 sps:$4 sm:$0xff]  }
 0x2c4   :  { %8697 = vmatpush1.bf16.msra.mxu0 %v12759_v16 }
 0x2c5   :  { %8698 = vmatprep.subr.bf16.mxu0 %v12764_v17  ;;  %v12804_v17 = vld [vmem:[#allocation8 + $0x698] ss:$40 sps:$4 sm:$0xff]  }
 0x2c6   :  { %8760 = vmatpush2.bf16.msra.mxu1 %v12876_v18  ;;  %v12809_v18 = vld [vmem:[#allocation8 + $0x64c] ss:$40 sps:$4 sm:$0xff]  }
 0x2c7   :  { %8761 = vmatprep.subr.bf16.mxu1 %v12884_v63  ;;  %v12807_v63 = vld [vmem:[#allocation8 + $0x648] ss:$40 sps:$4 sm:$0xff]  }
 0x2c8   :  { %8699 = vmatpush1.bf16.msra.mxu0 %v12762_v22 }
 0x2c9   :  { %8700 = vmatprep.subr.bf16.mxu0 %v12767_v20  ;;  %v12812_v20 = vld [vmem:[#allocation8 + $0x5fc] ss:$40 sps:$4 sm:$0xff]  }
 0x2ca   :  { %8762 = vmatpush2.bf16.msra.mxu1 %v12882_v26  ;;  %v12815_v26 = vld [vmem:[#allocation8 + $0x5ac] ss:$40 sps:$4 sm:$0xff]  }
 0x2cb   :  { %8772 = vmatprep.subr.bf16.mxu1 %v12890_v40  ;;  %v12813_v40 = vld [vmem:[#allocation8 + $0x5a8] ss:$40 sps:$4 sm:$0xff]  }
 0x2cc   :  { %8701 = vmatpush1.bf16.msra.mxu0 %v12765_v25  ;;  %v12810_v25 = vld [vmem:[#allocation8 + $0x5f8] ss:$40 sps:$4 sm:$0xff]  }
 0x2cd   :  { %8702 = vmatprep.subr.bf16.mxu0 %v12770_v28  ;;  %v12818_v28 = vld [vmem:[#allocation8 + $0x55c] ss:$40 sps:$4 sm:$0xff]  }
 0x2d0   :  { %8703 = vmatpush1.bf16.msra.mxu0 %v12768_v27  ;;  %v12816_v27 = vld [vmem:[#allocation8 + $0x558] ss:$40 sps:$4 sm:$0xff]  }
 0x2d1   :  { %8704 = vmatprep.subr.bf16.mxu0 %v12773_v29  ;;  %v12821_v29 = vld [vmem:[#allocation8 + $0x50c] ss:$40 sps:$4 sm:$0xff]  }
 0x2d4   :  { %8705 = vmatpush1.bf16.msra.mxu0 %v12771_v30  ;;  %v12819_v30 = vld [vmem:[#allocation8 + $0x508] ss:$40 sps:$4 sm:$0xff]  }
 0x2d5   :  { %8706 = vmatprep.subr.bf16.mxu0 %v12776_v31  ;;  %v12827_v31 = vld [vmem:[#allocation8 + $0x9bc] ss:$40 sps:$4 sm:$0xff]  }
 0x2d8   :  { %v14236_v39 = vpop.f32.mrf.mxu1  ;;  %8707 = vmatpush2.bf16.msra.mxu0 %v12774_v34  ;;  %v12825_v34 = vld [vmem:[#allocation8 + $0x9b8] ss:$40 sps:$4 sm:$0xff]  }
 0x2d9   :  { %8708 = vmatprep.subr.bf16.mxu0 %v12779_v36  ;;  %v12833_v36 = vld [vmem:[#allocation8 + $0x96c] ss:$40 sps:$4 sm:$0xff]  }
 0x2da   :  { %v14238_v13 = vpop.f32.mrf.mxu1 }
 0x2dc   :  { %v3904_v11 = vpop.f32.mrf.mxu1  ;;  %8709 = vmatpush2.bf16.msra.mxu0 %v12777_v37  ;;  %v12831_v37 = vld [vmem:[#allocation8 + $0x968] ss:$40 sps:$4 sm:$0xff]  }
 0x2dd   :  { %8710 = vmatprep.subr.bf16.mxu0 %v12782_v5  ;;  %v12839_v5 = vld [vmem:[#allocation8 + $0x91c] ss:$40 sps:$4 sm:$0xff]   ;;  %v12845_v11 = vld [vmem:[#allocation8 + $0x8cc] ss:$40 sps:$4 sm:$0xff]  }
 0x2de   :  { %v3905_v45 = vpop.f32.mrf.mxu1 }
 0x2df   :  { %v12843_v45 = vld [vmem:[#allocation8 + $0x8c8] ss:$40 sps:$4 sm:$0xff]  }
 0x2e0   :  { %v14240_v19 = vpop.f32.mrf.mxu1  ;;  %8711 = vmatpush2.bf16.msra.mxu0 %v12780_v41  ;;  %v12837_v41 = vld [vmem:[#allocation8 + $0x918] ss:$40 sps:$4 sm:$0xff]  }
 0x2e1   :  { %8712 = vmatprep.subr.bf16.mxu0 %v12785_v43 }
 0x2e2   :  { %v14242_v55 = vpop.f32.mrf.mxu1 }
 0x2e4   :  { %v3986_v58 = vpop.f32.mrf.mxu1  ;;  %8713 = vmatpush2.bf16.msra.mxu0 %v12783_v23 }
 0x2e5   :  { %8714 = vmatprep.subr.bf16.mxu0 %v12788_v49  ;;  %v12851_v49 = vld [vmem:[#allocation8 + $0x87c] ss:$40 sps:$4 sm:$0xff]   ;;  %v12849_v58 = vld [vmem:[#allocation8 + $0x878] ss:$40 sps:$4 sm:$0xff]  }
 0x2e6   :  { %v3987_v56 = vpop.f32.mrf.mxu1 }
 0x2e7   :  { %v12857_v56 = vld [vmem:[#allocation8 + $0x82c] ss:$40 sps:$4 sm:$0xff]  }
 0x2e8   :  { %8715 = vmatpush2.bf16.msra.mxu0 %v12786_v57 }
 0x2e9   :  { %8716 = vmatprep.subr.bf16.mxu0 %v12791_v33 }
 0x2ec   :  { %8717 = vmatpush2.bf16.msra.mxu0 %v12789_v61  ;;  %v12855_v61 = vld [vmem:[#allocation8 + $0x828] ss:$40 sps:$4 sm:$0xff]  }
 0x2ed   :  { %8718 = vmatprep.subr.bf16.mxu0 %v12794_v0  ;;  %v12863_v0 = vld [vmem:[#allocation8 + $0x7dc] ss:$40 sps:$4 sm:$0xff]  }
 0x2f0   :  { %8719 = vmatpush2.bf16.msra.mxu0 %v12792_v62  ;;  %v607_v62 = vld [vmem:[#allocation7 + $0x8] sm:$0x3] }
 0x2f1   :  { %8720 = vmatprep.subr.bf16.mxu0 %v12797_v2  ;;  %v12869_v2 = vld [vmem:[#allocation8 + $0x78c] ss:$40 sps:$4 sm:$0xff]   ;;  %v649_v51 = vrot.slane %v607_v62, %v14110_v46 }
 0x2f4   :  { %8721 = vmatpush2.bf16.msra.mxu0 %v12795_v4  ;;  %v645_v4 = vrot.slane %v607_v62, %v14107_v44  ;;  %v12917_v62 = vld [vmem:[#allocation8 + $0xf0c] ss:$40 sps:$4 sm:$0xff]  }
 0x2f5   :  { %8813 = vmatprep.subr.bf16.mxu0 %v12800_v6  ;;  %v12867_v6 = vld [vmem:[#allocation8 + $0x788] ss:$40 sps:$4 sm:$0xff]  }
 0x2f7   :  { %v14248_v12 = vpop.f32.mrf.mxu0  ;;  %8723 = vmatmul.mubr.bf16.vlgmr.msra.gmra.mxu0 %v14246_v10 }
 0x2f8   :  { %8814 = vmatpush1.bf16.msra.mxu0 %v12798_v9  ;;  %8845 = vmatprep.mubr.bf16.mxu0 %v14198_v7  ;;  %v12875_v9 = vld [vmem:[#allocation8 + $0x113c] ss:$40 sps:$4 sm:$0xff]  }
 0x2f9   :  { %v14252_v47 = vpop.f32.mrf.mxu0  ;;  %8815 = vmatprep.subr.bf16.mxu0 %v12803_v38  ;;  %v3860_v38 = vadd.f32 %v14248_v12, %v645_v4  ;;  %v12887_v12 = vld [vmem:[#allocation8 + $0x109c] ss:$40 sps:$4 sm:$0xff]   ;;  %v12920_v4 = vld [vmem:[#allocation8 + $0xac] ss:$40 sps:$4 sm:$0xff]  }
 0x2fb   :  { %v3863_v16 = vpop.f32.mrf.mxu0 }
 0x2fc   :  { %8816 = vmatpush1.bf16.msra.mxu0 %v12801_v60  ;;  %v3862_v60 = vadd.f32 %v14252_v47, %v649_v51  ;;  %v12881_v16 = vld [vmem:[#allocation8 + $0x10ec] ss:$40 sps:$4 sm:$0xff]   ;;  %v12923_v51 = vld [vmem:[#allocation8 + $0x13bc] ss:$40 sps:$4 sm:$0xff]  }
 0x2fd   :  { %v3864_v22 = vpop.f32.mrf.mxu0  ;;  %8817 = vmatprep.subr.bf16.mxu0 %v12806_v35  ;;  %v12873_v35 = vld [vmem:[#allocation8 + $0x1138] ss:$40 sps:$4 sm:$0xff]  }
 0x300   :  { %8818 = vmatpush1.bf16.msra.mxu0 %v12804_v17  ;;  %v3901_v17 = vadd.f32 %v14236_v39, %v3860_v38  ;;  %v12885_v39 = vld [vmem:[#allocation8 + $0x1098] ss:$40 sps:$4 sm:$0xff]   ;;  %v12926_v38 = vld [vmem:[#allocation8 + $0x5c] ss:$40 sps:$4 sm:$0xff]  }
 0x301   :  { %8819 = vmatprep.subr.bf16.mxu0 %v12809_v18  ;;  %v3903_v18 = vadd.f32 %v14238_v13, %v3862_v60  ;;  %v12893_v13 = vld [vmem:[#allocation8 + $0x104c] ss:$40 sps:$4 sm:$0xff]  }
 0x302   :  { %v12929_v60 = vld [vmem:[#allocation8 + $0x136c] ss:$40 sps:$4 sm:$0xff]  }
 0x304   :  { %8820 = vmatpush1.bf16.msra.mxu0 %v12807_v63 }
 0x305   :  { %8821 = vmatprep.subr.bf16.mxu0 %v12812_v20  ;;  %v12879_v20 = vld [vmem:[#allocation8 + $0x10e8] ss:$40 sps:$4 sm:$0xff]  }
 0x308   :  { %8822 = vmatpush1.bf16.msra.mxu0 %v12810_v25 }
 0x309   :  { %8823 = vmatprep.subr.bf16.mxu0 %v12815_v26 }
 0x30c   :  { %8824 = vmatpush1.bf16.msra.mxu0 %v12813_v40 }
 0x30d   :  { %8825 = vmatprep.subr.bf16.mxu0 %v12818_v28 }
 0x310   :  { %8826 = vmatpush1.bf16.msra.mxu0 %v12816_v27 }
 0x311   :  { %8827 = vmatprep.subr.bf16.mxu0 %v12821_v29 }
 0x314   :  { %8828 = vmatpush1.bf16.msra.mxu0 %v12819_v30 }
 0x315   :  { %8829 = vmatprep.subr.bf16.mxu0 %v12827_v31 }
 0x318   :  { %8830 = vmatpush2.bf16.msra.mxu0 %v12825_v34  ;;  %v12888_v34 = vld [vmem:[#allocation8 + $0x238] ss:$40 sps:$4 sm:$0xff]  }
 0x319   :  { %8831 = vmatprep.subr.bf16.mxu0 %v12833_v36 }
 0x31c   :  { %8832 = vmatpush2.bf16.msra.mxu0 %v12831_v37  ;;  %v12891_v37 = vld [vmem:[#allocation8 + $0x1048] ss:$40 sps:$4 sm:$0xff]  }
 0x31d   :  { %8833 = vmatprep.subr.bf16.mxu0 %v12839_v5  ;;  %v12894_v5 = vld [vmem:[#allocation8 + $0x1e8] ss:$40 sps:$4 sm:$0xff]  }
 0x320   :  { %v14254_v43 = vpop.f32.mrf.mxu1  ;;  %8834 = vmatpush2.bf16.msra.mxu0 %v12837_v41  ;;  %v12897_v41 = vld [vmem:[#allocation8 + $0xff8] ss:$40 sps:$4 sm:$0xff]  }
 0x321   :  { %8835 = vmatprep.subr.bf16.mxu0 %v12845_v11  ;;  %v12902_v11 = vld [vmem:[#allocation8 + $0x19c] ss:$40 sps:$4 sm:$0xff]  }
 0x322   :  { %v14256_v23 = vpop.f32.mrf.mxu1 }
 0x324   :  { %v8605_v57 = vpop.f32.mrf.mxu1  ;;  %8836 = vmatpush2.bf16.msra.mxu0 %v12843_v45  ;;  %v12905_v45 = vld [vmem:[#allocation8 + $0xfac] ss:$40 sps:$4 sm:$0xff]  }
 0x325   :  { %8837 = vmatprep.subr.bf16.mxu0 %v12851_v49  ;;  %v12900_v49 = vld [vmem:[#allocation8 + $0x198] ss:$40 sps:$4 sm:$0xff]   ;;  %v12903_v57 = vld [vmem:[#allocation8 + $0xfa8] ss:$40 sps:$4 sm:$0xff]  }
 0x326   :  { %v8606_v33 = vpop.f32.mrf.mxu1 }
 0x327   :  { %v12911_v33 = vld [vmem:[#allocation8 + $0xf5c] ss:$40 sps:$4 sm:$0xff]  }
 0x328   :  { %8838 = vmatpush2.bf16.msra.mxu0 %v12849_v58  ;;  %v12908_v58 = vld [vmem:[#allocation8 + $0x14c] ss:$40 sps:$4 sm:$0xff]  }
 0x329   :  { %8839 = vmatprep.subr.bf16.mxu0 %v12857_v56  ;;  %v12906_v56 = vld [vmem:[#allocation8 + $0x148] ss:$40 sps:$4 sm:$0xff]  }
 0x32c   :  { %8840 = vmatpush2.bf16.msra.mxu0 %v12855_v61  ;;  %v12909_v61 = vld [vmem:[#allocation8 + $0xf58] ss:$40 sps:$4 sm:$0xff]  }
 0x32d   :  { %8841 = vmatprep.subr.bf16.mxu0 %v12863_v0  ;;  %v12914_v0 = vld [vmem:[#allocation8 + $0xfc] ss:$40 sps:$4 sm:$0xff]  }
 0x330   :  { %8842 = vmatpush2.bf16.msra.mxu0 %v12861_v1  ;;  %v12912_v1 = vld [vmem:[#allocation8 + $0xf8] ss:$40 sps:$4 sm:$0xff]  }
 0x331   :  { %8843 = vmatprep.subr.bf16.mxu0 %v12869_v2  ;;  %v12915_v2 = vld [vmem:[#allocation8 + $0xf08] ss:$40 sps:$4 sm:$0xff]  }
 0x334   :  { %8844 = vmatpush2.bf16.msra.mxu0 %v12867_v6  ;;  %v12918_v6 = vld [vmem:[#allocation8 + $0xa8] ss:$40 sps:$4 sm:$0xff]  }
 0x335   :  { %8895 = vmatprep.subr.bf16.mxu0 %v12875_v9  ;;  %v12921_v9 = vld [vmem:[#allocation8 + $0x13b8] ss:$40 sps:$4 sm:$0xff]  }
 0x337   :  { %v3941_v22 = vpop.f32.mrf.mxu0  ;;  %8846 = vmatmul.mubr.bf16.vlgmr.msra.gmra.mxu0 %v14227_v48 }
 0x338   :  { %v3942_v63 = vadd.f32 %v3941_v22, %v3901_v17  ;;  %8896 = vmatpush1.bf16.msra.mxu0 %v12873_v35  ;;  %8927 = vmatprep.mubr.bf16.mxu0 %v14233_v14  ;;  %v12924_v35 = vld [vmem:[#allocation8 + $0x58] ss:$40 sps:$4 sm:$0xff]   ;;  %v12932_v17 = vld [vmem:[#allocation8 + $0xc] ss:$40 sps:$4 sm:$0xff]   ;;  %v12935_v22 = vld [vmem:[#allocation8 + $0x131c] ss:$40 sps:$4 sm:$0xff]  }
 0x339   :  { %v3943_v25 = vpop.f32.mrf.mxu0  ;;  %8897 = vmatprep.subr.bf16.mxu0 %v12881_v16  ;;  %v12927_v16 = vld [vmem:[#allocation8 + $0x1368] ss:$40 sps:$4 sm:$0xff]  }
 0x33a   :  { %v3983_v47 = vadd.f32 %v14240_v19, %v3942_v63  ;;  %v3944_v26 = vadd.f32 %v3943_v25, %v3903_v18  ;;  %v12896_v19 = vld [vmem:[#allocation8 + $0x1ec] ss:$40 sps:$4 sm:$0xff]   ;;  %v12930_v18 = vld [vmem:[#allocation8 + $0x8] ss:$40 sps:$4 sm:$0xff]   ;;  %v12933_v63 = vld [vmem:[#allocation8 + $0x1318] ss:$40 sps:$4 sm:$0xff]  }
 0x33b   :  { %v3945_v40 = vpop.f32.mrf.mxu0  ;;  %v12941_v25 = vld [vmem:[#allocation8 + $0x12cc] ss:$40 sps:$4 sm:$0xff]  }
 0x33c   :  { %v3985_v28 = vadd.f32 %v14242_v55, %v3944_v26  ;;  %8898 = vmatpush1.bf16.msra.mxu0 %v12879_v20  ;;  %v3997_v27 = vmax.f32 %v3983_v47, 0.0  ;;  %v12899_v55 = vld [vmem:[#allocation8 + $0xffc] ss:$40 sps:$4 sm:$0xff]   ;;  %v12939_v26 = vld [vmem:[#allocation8 + $0x12c8] ss:$40 sps:$4 sm:$0xff]  }
 0x33d   :  { %v3946_v29 = vpop.f32.mrf.mxu0  ;;  %8899 = vmatprep.subr.bf16.mxu0 %v12887_v12  ;;  %v12938_v20 = vld [vmem:[#allocation8 + $0x4bc] ss:$40 sps:$4 sm:$0xff]   ;;  %v12936_v12 = vld [vmem:[#allocation8 + $0x4b8] ss:$40 sps:$4 sm:$0xff]   ;;  %v12944_v40 = vld [vmem:[#allocation8 + $0x46c] ss:$40 sps:$4 sm:$0xff]  }
 0x33e   :  { %v3998_v30 = vmax.f32 %v3985_v28, 0.0  ;;  %v14270_v36 = vpack.c.bf16 %v3997_v27, %v3997_v27  ;;  %v12947_v28 = vld [vmem:[#allocation8 + $0x127c] ss:$40 sps:$4 sm:$0xff]   ;;  %v12942_v27 = vld [vmem:[#allocation8 + $0x468] ss:$40 sps:$4 sm:$0xff]  }
 0x340   :  { %v14268_v31 = vpack.c.bf16 %v3998_v30, %v3998_v30  ;;  %8900 = vmatpush1.bf16.msra.mxu0 %v12885_v39  ;;  %v12950_v30 = vld [vmem:[#allocation8 + $0x41c] ss:$40 sps:$4 sm:$0xff]  }
 0x341   :  { %8901 = vmatprep.subr.bf16.mxu0 %v12893_v13  ;;  %v12945_v13 = vld [vmem:[#allocation8 + $0x1278] ss:$40 sps:$4 sm:$0xff]  }
 0x342   :  { %11686 = vmatprep.mubr.msk.bf16.mxu1 %vm8563_vm1, %v14268_v31 }
 0x343   :  { %8764 = vmatmul.mubr.bf16.vlgmr.msra.gmra.mxu1 %v14270_v36 }
 0x344   :  { %8773 = vmatpush1.bf16.msra.mxu1 %v12888_v34  ;;  %8804 = vmatprep.mubr.bf16.mxu1 %v14165_v52  ;;  %v12953_v34 = vld [vmem:[#allocation8 + $0x122c] ss:$40 sps:$4 sm:$0xff]  }
 0x345   :  { %8902 = vmatpush1.bf16.msra.mxu0 %v12891_v37  ;;  %8774 = vmatprep.subr.bf16.mxu1 %v12896_v19  ;;  %v12948_v19 = vld [vmem:[#allocation8 + $0x418] ss:$40 sps:$4 sm:$0xff]  }
 0x346   :  { %8903 = vmatprep.subr.bf16.mxu0 %v12899_v55  ;;  %v12951_v55 = vld [vmem:[#allocation8 + $0x1228] ss:$40 sps:$4 sm:$0xff]  }
 0x348   :  { %8775 = vmatpush1.bf16.msra.mxu1 %v12894_v5  ;;  %v12956_v5 = vld [vmem:[#allocation8 + $0x3cc] ss:$40 sps:$4 sm:$0xff]  }
 0x349   :  { %8904 = vmatpush1.bf16.msra.mxu0 %v12897_v41  ;;  %8776 = vmatprep.subr.bf16.mxu1 %v12902_v11  ;;  %v12959_v41 = vld [vmem:[#allocation8 + $0x11dc] ss:$40 sps:$4 sm:$0xff]   ;;  %v12954_v11 = vld [vmem:[#allocation8 + $0x3c8] ss:$40 sps:$4 sm:$0xff]  }
 0x34a   :  { %8905 = vmatprep.subr.bf16.mxu0 %v12905_v45  ;;  %v12957_v45 = vld [vmem:[#allocation8 + $0x11d8] ss:$40 sps:$4 sm:$0xff]  }
 0x34c   :  { %8777 = vmatpush1.bf16.msra.mxu1 %v12900_v49  ;;  %v12962_v49 = vld [vmem:[#allocation8 + $0x37c] ss:$40 sps:$4 sm:$0xff]  }
 0x34d   :  { %8906 = vmatpush1.bf16.msra.mxu0 %v12903_v57  ;;  %8778 = vmatprep.subr.bf16.mxu1 %v12908_v58  ;;  %v12965_v57 = vld [vmem:[#allocation8 + $0x118c] ss:$40 sps:$4 sm:$0xff]  }
 0x34e   :  { %8907 = vmatprep.subr.bf16.mxu0 %v12911_v33  ;;  %v4759_v58 = vld [vmem:[#allocation10] sm:$0xff]  ;;  %v12960_v33 = vld [vmem:[#allocation8 + $0x378] ss:$40 sps:$4 sm:$0xff]  }
 0x350   :  { %8779 = vmatpush1.bf16.msra.mxu1 %v12906_v56  ;;  %v12963_v56 = vld [vmem:[#allocation8 + $0x1188] ss:$40 sps:$4 sm:$0xff]  }
 0x351   :  { %8908 = vmatpush1.bf16.msra.mxu0 %v12909_v61  ;;  %8780 = vmatprep.subr.bf16.mxu1 %v12914_v0  ;;  %v12968_v61 = vld [vmem:[#allocation8 + $0x32c] ss:$40 sps:$4 sm:$0xff]   ;;  %v4766_v0 = vrot.slane %v4759_v58, %v14107_v44 }
 0x352   :  { %8909 = vmatprep.subr.bf16.mxu0 %v12917_v62  ;;  %v12971_v62 = vld [vmem:[#allocation8 + $0x244] ss:$40 sps:$4 sm:$0xff]  }
 0x354   :  { %8781 = vmatpush1.bf16.msra.mxu1 %v12912_v1  ;;  %v4770_v1 = vrot.slane %v4759_v58, %v14110_v46  ;;  %v13013_v58 = vld [vmem:[#allocation8 + $0x14] ss:$40 sps:$4 sm:$0xff]  }
 0x355   :  { %8910 = vmatpush1.bf16.msra.mxu0 %v12915_v2  ;;  %8782 = vmatprep.subr.bf16.mxu1 %v12920_v4  ;;  %v12966_v2 = vld [vmem:[#allocation8 + $0x328] ss:$40 sps:$4 sm:$0xff]  }
 0x356   :  { %8911 = vmatprep.subr.bf16.mxu0 %v12923_v51  ;;  %v12969_v4 = vld [vmem:[#allocation8 + $0x240] ss:$40 sps:$4 sm:$0xff]   ;;  %v8602_v51 = vadd.f32 %v14254_v43, %v4766_v0  ;;  %v12983_v43 = vld [vmem:[#allocation8 + $0x1a4] ss:$40 sps:$4 sm:$0xff]  }
 0x357   :  { %v13019_v0 = vld [vmem:[#allocation8 + $0x4c4] ss:$40 sps:$4 sm:$0xff]  }
 0x358   :  { %8783 = vmatpush1.bf16.msra.mxu1 %v12918_v6  ;;  %v12974_v6 = vld [vmem:[#allocation8 + $0x2dc] ss:$40 sps:$4 sm:$0xff]  }
 0x359   :  { %8912 = vmatpush2.bf16.msra.mxu0 %v12921_v9  ;;  %8784 = vmatprep.subr.bf16.mxu1 %v12926_v38  ;;  %v12977_v9 = vld [vmem:[#allocation8 + $0x1f4] ss:$40 sps:$4 sm:$0xff]  }
 0x35a   :  { %8913 = vmatprep.subr.bf16.mxu0 %v12929_v60  ;;  %v8604_v60 = vadd.f32 %v14256_v23, %v4770_v1  ;;  %v12978_v23 = vld [vmem:[#allocation8 + $0x288] ss:$40 sps:$4 sm:$0xff]  }
 0x35b   :  { %v13017_v1 = vld [vmem:[#allocation8 + $0x4c0] ss:$40 sps:$4 sm:$0xff]  }
 0x35c   :  { %8785 = vmatpush1.bf16.msra.mxu1 %v12924_v35 }
 0x35d   :  { %8914 = vmatpush2.bf16.msra.mxu0 %v12927_v16  ;;  %8786 = vmatprep.subr.bf16.mxu1 %v12932_v17  ;;  %v12972_v16 = vld [vmem:[#allocation8 + $0x2d8] ss:$40 sps:$4 sm:$0xff]  }
 0x35e   :  { %8915 = vmatprep.subr.bf16.mxu0 %v12935_v22  ;;  %v12975_v22 = vld [vmem:[#allocation8 + $0x1f0] ss:$40 sps:$4 sm:$0xff]  }
 0x360   :  { %8787 = vmatpush1.bf16.msra.mxu1 %v12930_v18  ;;  %v12980_v18 = vld [vmem:[#allocation8 + $0x28c] ss:$40 sps:$4 sm:$0xff]  }
 0x361   :  { %8916 = vmatpush2.bf16.msra.mxu0 %v12933_v63  ;;  %v14276_v47 = vpop.f32.mrf.mxu1  ;;  %8788 = vmatprep.subr.bf16.mxu1 %v12938_v20 }
 0x362   :  { %8917 = vmatprep.subr.bf16.mxu0 %v12941_v25 }
 0x363   :  { %v14278_v39 = vpop.f32.mrf.mxu1 }
 0x364   :  { %8789 = vmatpush2.bf16.msra.mxu1 %v12936_v12 }
 0x365   :  { %8918 = vmatpush2.bf16.msra.mxu0 %v12939_v26  ;;  %v8687_v29 = vpop.f32.mrf.mxu1  ;;  %8790 = vmatprep.subr.bf16.mxu1 %v12944_v40  ;;  %v12981_v40 = vld [vmem:[#allocation8 + $0x1a0] ss:$40 sps:$4 sm:$0xff]  }
 0x366   :  { %8919 = vmatprep.subr.bf16.mxu0 %v12947_v28  ;;  %v12986_v28 = vld [vmem:[#allocation8 + $0xc3c] ss:$40 sps:$4 sm:$0xff]   ;;  %v12984_v29 = vld [vmem:[#allocation8 + $0xc38] ss:$40 sps:$4 sm:$0xff]  }
 0x367   :  { %v8688_v37 = vpop.f32.mrf.mxu1 }
 0x368   :  { %8791 = vmatpush2.bf16.msra.mxu1 %v12942_v27  ;;  %v12989_v27 = vld [vmem:[#allocation8 + $0x154] ss:$40 sps:$4 sm:$0xff]  }
 0x369   :  { %8920 = vmatpush2.bf16.msra.mxu0 %v12945_v13  ;;  %8792 = vmatprep.subr.bf16.mxu1 %v12950_v30  ;;  %v12987_v13 = vld [vmem:[#allocation8 + $0x150] ss:$40 sps:$4 sm:$0xff]   ;;  %v12995_v30 = vld [vmem:[#allocation8 + $0x104] ss:$40 sps:$4 sm:$0xff]  }
 0x36a   :  { %8921 = vmatprep.subr.bf16.mxu0 %v12953_v34  ;;  %v12993_v34 = vld [vmem:[#allocation8 + $0x100] ss:$40 sps:$4 sm:$0xff]   ;;  %v12998_v37 = vld [vmem:[#allocation8 + $0xb9c] ss:$40 sps:$4 sm:$0xff]  }
 0x36c   :  { %8793 = vmatpush2.bf16.msra.mxu1 %v12948_v19  ;;  %v13001_v19 = vld [vmem:[#allocation8 + $0xb4] ss:$40 sps:$4 sm:$0xff]  }
 0x36d   :  { %8922 = vmatpush2.bf16.msra.mxu0 %v12951_v55  ;;  %8794 = vmatprep.subr.bf16.mxu1 %v12956_v5  ;;  %v12996_v55 = vld [vmem:[#allocation8 + $0xb98] ss:$40 sps:$4 sm:$0xff]  }
 0x36e   :  { %8923 = vmatprep.subr.bf16.mxu0 %v12959_v41  ;;  %v12999_v5 = vld [vmem:[#allocation8 + $0xb0] ss:$40 sps:$4 sm:$0xff]   ;;  %v13004_v41 = vld [vmem:[#allocation8 + $0xb4c] ss:$40 sps:$4 sm:$0xff]  }
 0x370   :  { %8795 = vmatpush2.bf16.msra.mxu1 %v12954_v11  ;;  %v13007_v11 = vld [vmem:[#allocation8 + $0x64] ss:$40 sps:$4 sm:$0xff]  }
 0x371   :  { %8924 = vmatpush2.bf16.msra.mxu0 %v12957_v45  ;;  %8796 = vmatprep.subr.bf16.mxu1 %v12962_v49  ;;  %v13002_v45 = vld [vmem:[#allocation8 + $0xb48] ss:$40 sps:$4 sm:$0xff]  }
 0x372   :  { %8925 = vmatprep.subr.bf16.mxu0 %v12965_v57  ;;  %v13005_v49 = vld [vmem:[#allocation8 + $0x60] ss:$40 sps:$4 sm:$0xff]   ;;  %v13010_v57 = vld [vmem:[#allocation8 + $0xafc] ss:$40 sps:$4 sm:$0xff]  }
 0x374   :  { %8797 = vmatpush2.bf16.msra.mxu1 %v12960_v33  ;;  %v13008_v33 = vld [vmem:[#allocation8 + $0xaf8] ss:$40 sps:$4 sm:$0xff]  }
 0x375   :  { %8926 = vmatpush2.bf16.msra.mxu0 %v12963_v56  ;;  %8798 = vmatprep.subr.bf16.mxu1 %v12968_v61  ;;  %v13011_v56 = vld [vmem:[#allocation8 + $0x10] ss:$40 sps:$4 sm:$0xff]   ;;  %v13016_v61 = vld [vmem:[#allocation8 + $0xaac] ss:$40 sps:$4 sm:$0xff]  }
 0x376   :  { %8977 = vmatprep.subr.bf16.mxu0 %v12971_v62  ;;  %v13014_v62 = vld [vmem:[#allocation8 + $0xaa8] ss:$40 sps:$4 sm:$0xff]  }
 0x377   :  { %v8642_v38 = vpop.f32.mrf.mxu0 }
 0x378   :  { %v8643_v35 = vadd.f32 %v8642_v38, %v8602_v51  ;;  %8799 = vmatpush2.bf16.msra.mxu1 %v12966_v2  ;;  %8928 = vmatmul.mubr.bf16.vlgmr.msra.gmra.mxu0 %v14246_v10  ;;  %v13022_v2 = vld [vmem:[#allocation8 + $0xa5c] ss:$40 sps:$4 sm:$0xff]   ;;  %v13020_v51 = vld [vmem:[#allocation8 + $0xa58] ss:$40 sps:$4 sm:$0xff]  }
 0x379   :  { %8978 = vmatpush1.bf16.msra.mxu0 %v12969_v4  ;;  %9009 = vmatprep.mubr.bf16.mxu0 %v14165_v52  ;;  %v8644_v17 = vpop.f32.mrf.mxu0  ;;  %v13025_v4 = vld [vmem:[#allocation8 + $0x474] ss:$40 sps:$4 sm:$0xff]   ;;  %v13031_v38 = vld [vmem:[#allocation8 + $0x424] ss:$40 sps:$4 sm:$0xff]  }
 0x37a   :  { %v8645_v63 = vadd.f32 %v8644_v17, %v8604_v60  ;;  %8800 = vmatprep.subr.bf16.mxu1 %v12974_v6  ;;  %8979 = vmatprep.subr.bf16.mxu0 %v12977_v9  ;;  %v14287_v20 = vadd.f32 %v14276_v47, %v8643_v35  ;;  %v12992_v47 = vld [vmem:[#allocation8 + $0xbec] ss:$40 sps:$4 sm:$0xff]   ;;  %v13023_v6 = vld [vmem:[#allocation8 + $0x470] ss:$40 sps:$4 sm:$0xff]   ;;  %v13029_v35 = vld [vmem:[#allocation8 + $0x420] ss:$40 sps:$4 sm:$0xff]  }
 0x37b   :  { %v8646_v25 = vpop.f32.mrf.mxu0  ;;  %v13028_v9 = vld [vmem:[#allocation8 + $0xa0c] ss:$40 sps:$4 sm:$0xff]   ;;  %v13026_v60 = vld [vmem:[#allocation8 + $0xa08] ss:$40 sps:$4 sm:$0xff]  }
 0x37c   :  { %8801 = vmatpush2.bf16.msra.mxu1 %v12972_v16  ;;  %v14290_v12 = vadd.f32 %v14278_v39, %v8645_v63  ;;  %v12990_v39 = vld [vmem:[#allocation8 + $0xbe8] ss:$40 sps:$4 sm:$0xff]   ;;  %v13034_v16 = vld [vmem:[#allocation8 + $0xebc] ss:$40 sps:$4 sm:$0xff]   ;;  %v13040_v63 = vld [vmem:[#allocation8 + $0xe6c] ss:$40 sps:$4 sm:$0xff]  }
 0x37d   :  { %8980 = vmatpush1.bf16.msra.mxu0 %v12975_v22  ;;  %v8647_v26 = vpop.f32.mrf.mxu0  ;;  %8802 = vmatprep.subr.bf16.mxu1 %v12980_v18  ;;  %v13037_v17 = vld [vmem:[#allocation8 + $0x3d4] ss:$40 sps:$4 sm:$0xff]   ;;  %v13032_v22 = vld [vmem:[#allocation8 + $0xeb8] ss:$40 sps:$4 sm:$0xff]   ;;  %v13038_v25 = vld [vmem:[#allocation8 + $0xe68] ss:$40 sps:$4 sm:$0xff]  }
 0x37e   :  { %8981 = vmatprep.subr.bf16.mxu0 %v12983_v43  ;;  %v13035_v18 = vld [vmem:[#allocation8 + $0x3d0] ss:$40 sps:$4 sm:$0xff]   ;;  %v13043_v43 = vld [vmem:[#allocation8 + $0x384] ss:$40 sps:$4 sm:$0xff]  }
 0x37f   :  { %v13046_v26 = vld [vmem:[#allocation8 + $0xe1c] ss:$40 sps:$4 sm:$0xff]  }
 0x380   :  { %8803 = vmatpush2.bf16.msra.mxu1 %v12978_v23  ;;  %v13041_v23 = vld [vmem:[#allocation8 + $0x380] ss:$40 sps:$4 sm:$0xff]  }
 0x381   :  { %8982 = vmatpush1.bf16.msra.mxu0 %v12981_v40  ;;  %8854 = vmatprep.subr.bf16.mxu1 %v12986_v28  ;;  %v13049_v40 = vld [vmem:[#allocation8 + $0x334] ss:$40 sps:$4 sm:$0xff]   ;;  %v13044_v28 = vld [vmem:[#allocation8 + $0xe18] ss:$40 sps:$4 sm:$0xff]  }
 0x382   :  { %8983 = vmatprep.subr.bf16.mxu0 %v12989_v27  ;;  %v13047_v27 = vld [vmem:[#allocation8 + $0x330] ss:$40 sps:$4 sm:$0xff]  }
 0x383   :  { %8805 = vmatmul.mubr.bf16.vlgmr.msra.gmra.mxu1 %v14189_v21 }
 0x384   :  { %8855 = vmatpush1.bf16.msra.mxu1 %v12984_v29  ;;  %8886 = vmatprep.mubr.bf16.mxu1 %v14200_v8  ;;  %v13052_v29 = vld [vmem:[#allocation8 + $0xdcc] ss:$40 sps:$4 sm:$0xff]  }
 0x385   :  { %8984 = vmatpush1.bf16.msra.mxu0 %v12987_v13  ;;  %8856 = vmatprep.subr.bf16.mxu1 %v12992_v47  ;;  %v13055_v13 = vld [vmem:[#allocation8 + $0x2e4] ss:$40 sps:$4 sm:$0xff]   ;;  %v13050_v47 = vld [vmem:[#allocation8 + $0xdc8] ss:$40 sps:$4 sm:$0xff]  }
 0x386   :  { %8985 = vmatprep.subr.bf16.mxu0 %v12995_v30  ;;  %v13053_v30 = vld [vmem:[#allocation8 + $0x2e0] ss:$40 sps:$4 sm:$0xff]  }
 0x388   :  { %8857 = vmatpush1.bf16.msra.mxu1 %v12990_v39  ;;  %v13058_v39 = vld [vmem:[#allocation8 + $0xd7c] ss:$40 sps:$4 sm:$0xff]  }
 0x389   :  { %8986 = vmatpush1.bf16.msra.mxu0 %v12993_v34  ;;  %8858 = vmatprep.subr.bf16.mxu1 %v12998_v37  ;;  %v13061_v34 = vld [vmem:[#allocation8 + $0x294] ss:$40 sps:$4 sm:$0xff]   ;;  %v13056_v37 = vld [vmem:[#allocation8 + $0xd78] ss:$40 sps:$4 sm:$0xff]  }
 0x38a   :  { %8987 = vmatprep.subr.bf16.mxu0 %v13001_v19  ;;  %v13059_v19 = vld [vmem:[#allocation8 + $0x290] ss:$40 sps:$4 sm:$0xff]  }
 0x38c   :  { %8859 = vmatpush1.bf16.msra.mxu1 %v12996_v55  ;;  %v13064_v55 = vld [vmem:[#allocation8 + $0xd2c] ss:$40 sps:$4 sm:$0xff]  }
 0x38d   :  { %8988 = vmatpush1.bf16.msra.mxu0 %v12999_v5  ;;  %8860 = vmatprep.subr.bf16.mxu1 %v13004_v41  ;;  %v13067_v5 = vld [vmem:[#allocation8 + $0xc44] ss:$40 sps:$4 sm:$0xff]   ;;  %v13062_v41 = vld [vmem:[#allocation8 + $0xd28] ss:$40 sps:$4 sm:$0xff]  }
 0x38e   :  { %8989 = vmatprep.subr.bf16.mxu0 %v13007_v11  ;;  %v13065_v11 = vld [vmem:[#allocation8 + $0xc40] ss:$40 sps:$4 sm:$0xff]  }
 0x390   :  { %8861 = vmatpush1.bf16.msra.mxu1 %v13002_v45  ;;  %v13070_v45 = vld [vmem:[#allocation8 + $0xcdc] ss:$40 sps:$4 sm:$0xff]  }
 0x391   :  { %8990 = vmatpush1.bf16.msra.mxu0 %v13005_v49  ;;  %8862 = vmatprep.subr.bf16.mxu1 %v13010_v57  ;;  %v13073_v49 = vld [vmem:[#allocation8 + $0xbf4] ss:$40 sps:$4 sm:$0xff]  }
 0x392   :  { %8991 = vmatprep.subr.bf16.mxu0 %v13013_v58 }
 0x394   :  { %8863 = vmatpush1.bf16.msra.mxu1 %v13008_v33  ;;  %v13068_v33 = vld [vmem:[#allocation8 + $0xcd8] ss:$40 sps:$4 sm:$0xff]  }
 0x395   :  { %8992 = vmatpush1.bf16.msra.mxu0 %v13011_v56  ;;  %8864 = vmatprep.subr.bf16.mxu1 %v13016_v61  ;;  %v13071_v61 = vld [vmem:[#allocation8 + $0xbf0] ss:$40 sps:$4 sm:$0xff]  }
 0x396   :  { %8993 = vmatprep.subr.bf16.mxu0 %v13019_v0  ;;  %v13076_v0 = vld [vmem:[#allocation8 + $0xc8c] ss:$40 sps:$4 sm:$0xff]  }
 0x398   :  { %8865 = vmatpush1.bf16.msra.mxu1 %v13014_v62 }
 0x399   :  { %8994 = vmatpush2.bf16.msra.mxu0 %v13017_v1  ;;  %8866 = vmatprep.subr.bf16.mxu1 %v13022_v2  ;;  %v13079_v1 = vld [vmem:[#allocation8 + $0xba4] ss:$40 sps:$4 sm:$0xff]  }
 0x39a   :  { %8995 = vmatprep.subr.bf16.mxu0 %v13025_v4 }
 0x39c   :  { %8867 = vmatpush1.bf16.msra.mxu1 %v13020_v51  ;;  %v13077_v51 = vld [vmem:[#allocation8 + $0xba0] ss:$40 sps:$4 sm:$0xff]  }
 0x39d   :  { %8996 = vmatpush2.bf16.msra.mxu0 %v13023_v6  ;;  %8868 = vmatprep.subr.bf16.mxu1 %v13028_v9  ;;  %v13082_v6 = vld [vmem:[#allocation8 + $0x163c] ss:$40 sps:$4 sm:$0xff]  }
 0x39e   :  { %8997 = vmatprep.subr.bf16.mxu0 %v13031_v38  ;;  %v13085_v9 = vld [vmem:[#allocation8 + $0xb54] ss:$40 sps:$4 sm:$0xff]   ;;  %v13080_v38 = vld [vmem:[#allocation8 + $0x1638] ss:$40 sps:$4 sm:$0xff]  }
 0x3a0   :  { %8869 = vmatpush1.bf16.msra.mxu1 %v13026_v60  ;;  %v13083_v60 = vld [vmem:[#allocation8 + $0xb50] ss:$40 sps:$4 sm:$0xff]  }
 0x3a1   :  { %8998 = vmatpush2.bf16.msra.mxu0 %v13029_v35  ;;  %8870 = vmatprep.subr.bf16.mxu1 %v13034_v16  ;;  %v13091_v35 = vld [vmem:[#allocation8 + $0xb04] ss:$40 sps:$4 sm:$0xff]   ;;  %v13086_v16 = vld [vmem:[#allocation8 + $0x15e8] ss:$40 sps:$4 sm:$0xff]  }
 0x3a2   :  { %8999 = vmatprep.subr.bf16.mxu0 %v13037_v17  ;;  %v13089_v17 = vld [vmem:[#allocation8 + $0xb00] ss:$40 sps:$4 sm:$0xff]  }
 0x3a4   :  { %8871 = vmatpush2.bf16.msra.mxu1 %v13032_v22  ;;  %v13094_v22 = vld [vmem:[#allocation8 + $0x159c] ss:$40 sps:$4 sm:$0xff]  }
 0x3a5   :  { %9000 = vmatpush2.bf16.msra.mxu0 %v13035_v18  ;;  %8872 = vmatprep.subr.bf16.mxu1 %v13040_v63  ;;  %v13097_v18 = vld [vmem:[#allocation8 + $0xab4] ss:$40 sps:$4 sm:$0xff]   ;;  %v13092_v63 = vld [vmem:[#allocation8 + $0x1598] ss:$40 sps:$4 sm:$0xff]  }
 0x3a6   :  { %9001 = vmatprep.subr.bf16.mxu0 %v13043_v43  ;;  %v13095_v43 = vld [vmem:[#allocation8 + $0xab0] ss:$40 sps:$4 sm:$0xff]  }
 0x3a8   :  { %8873 = vmatpush2.bf16.msra.mxu1 %v13038_v25  ;;  %v13100_v25 = vld [vmem:[#allocation8 + $0x154c] ss:$40 sps:$4 sm:$0xff]  }
 0x3a9   :  { %9002 = vmatpush2.bf16.msra.mxu0 %v13041_v23  ;;  %8874 = vmatprep.subr.bf16.mxu1 %v13046_v26  ;;  %v13103_v23 = vld [vmem:[#allocation8 + $0xa64] ss:$40 sps:$4 sm:$0xff]   ;;  %v13098_v26 = vld [vmem:[#allocation8 + $0x1548] ss:$40 sps:$4 sm:$0xff]  }
 0x3aa   :  { %9003 = vmatprep.subr.bf16.mxu0 %v13049_v40  ;;  %v13101_v40 = vld [vmem:[#allocation8 + $0xa60] ss:$40 sps:$4 sm:$0xff]  }
 0x3ac   :  { %8875 = vmatpush2.bf16.msra.mxu1 %v13044_v28  ;;  %v13106_v28 = vld [vmem:[#allocation8 + $0x14fc] ss:$40 sps:$4 sm:$0xff]  }
 0x3ad   :  { %9004 = vmatpush2.bf16.msra.mxu0 %v13047_v27  ;;  %8876 = vmatprep.subr.bf16.mxu1 %v13052_v29  ;;  %v13109_v27 = vld [vmem:[#allocation8 + $0xa14] ss:$40 sps:$4 sm:$0xff]   ;;  %v13104_v29 = vld [vmem:[#allocation8 + $0x14f8] ss:$40 sps:$4 sm:$0xff]  }
 0x3ae   :  { %9005 = vmatprep.subr.bf16.mxu0 %v13055_v13  ;;  %v13107_v13 = vld [vmem:[#allocation8 + $0xa10] ss:$40 sps:$4 sm:$0xff]  }
 0x3b0   :  { %8877 = vmatpush2.bf16.msra.mxu1 %v13050_v47  ;;  %v13112_v47 = vld [vmem:[#allocation8 + $0x14ac] ss:$40 sps:$4 sm:$0xff]  }
 0x3b1   :  { %9006 = vmatpush2.bf16.msra.mxu0 %v13053_v30  ;;  %8878 = vmatprep.subr.bf16.mxu1 %v13058_v39  ;;  %v13115_v30 = vld [vmem:[#allocation8 + $0xec4] ss:$40 sps:$4 sm:$0xff]   ;;  %v13110_v39 = vld [vmem:[#allocation8 + $0x14a8] ss:$40 sps:$4 sm:$0xff]  }
 0x3b2   :  { %9007 = vmatprep.subr.bf16.mxu0 %v13061_v34  ;;  %v13113_v34 = vld [vmem:[#allocation8 + $0xec0] ss:$40 sps:$4 sm:$0xff]  }
 0x3b4   :  { %8879 = vmatpush2.bf16.msra.mxu1 %v13056_v37  ;;  %v13118_v37 = vld [vmem:[#allocation8 + $0x145c] ss:$40 sps:$4 sm:$0xff]  }
 0x3b5   :  { %9008 = vmatpush2.bf16.msra.mxu0 %v13059_v19  ;;  %8880 = vmatprep.subr.bf16.mxu1 %v13064_v55  ;;  %v13121_v19 = vld [vmem:[#allocation8 + $0xe74] ss:$40 sps:$4 sm:$0xff]   ;;  %v13116_v55 = vld [vmem:[#allocation8 + $0x1458] ss:$40 sps:$4 sm:$0xff]  }
 0x3b6   :  { %9059 = vmatprep.subr.bf16.mxu0 %v13067_v5  ;;  %v13119_v5 = vld [vmem:[#allocation8 + $0xe70] ss:$40 sps:$4 sm:$0xff]  }
 0x3b7   :  { %v8724_v57 = vpop.f32.mrf.mxu0 }
 0x3b8   :  { %v14295_v58 = vadd.f32 %v8724_v57, %v14287_v20  ;;  %8881 = vmatpush2.bf16.msra.mxu1 %v13062_v41  ;;  %9010 = vmatmul.mubr.bf16.vlgmr.msra.gmra.mxu0 %v14189_v21  ;;  %v13074_v20 = vld [vmem:[#allocation8 + $0xc88] ss:$40 sps:$4 sm:$0xff]   ;;  %v13124_v41 = vld [vmem:[#allocation8 + $0x140c] ss:$40 sps:$4 sm:$0xff]  }
 0x3b9   :  { %9060 = vmatpush1.bf16.msra.mxu0 %v13065_v11  ;;  %9091 = vmatprep.mubr.bf16.mxu0 %v14200_v8  ;;  %v8726_v56 = vpop.f32.mrf.mxu0  ;;  %v13127_v11 = vld [vmem:[#allocation8 + $0xe24] ss:$40 sps:$4 sm:$0xff]  }
 0x3ba   :  { %v14300_v62 = vadd.f32 %v8726_v56, %v14290_v12  ;;  %8882 = vmatprep.subr.bf16.mxu1 %v13070_v45  ;;  %9061 = vmatprep.subr.bf16.mxu0 %v13073_v49  ;;  %v13088_v12 = vld [vmem:[#allocation8 + $0x15ec] ss:$40 sps:$4 sm:$0xff]   ;;  %v13122_v45 = vld [vmem:[#allocation8 + $0x1408] ss:$40 sps:$4 sm:$0xff]  }
 0x3bb   :  { %v8728_v2 = vpop.f32.mrf.mxu0  ;;  %v13125_v49 = vld [vmem:[#allocation8 + $0xe20] ss:$40 sps:$4 sm:$0xff]   ;;  %v13130_v57 = vld [vmem:[#allocation8 + $0x172c] ss:$40 sps:$4 sm:$0xff]  }
 0x3bc   :  { %8883 = vmatpush2.bf16.msra.mxu1 %v13068_v33  ;;  %v13133_v33 = vld [vmem:[#allocation8 + $0xdd4] ss:$40 sps:$4 sm:$0xff]   ;;  %v13128_v56 = vld [vmem:[#allocation8 + $0x1728] ss:$40 sps:$4 sm:$0xff]   ;;  %v13134_v2 = vld [vmem:[#allocation8 + $0x16d8] ss:$40 sps:$4 sm:$0xff]  }
 0x3bd   :  { %9062 = vmatpush1.bf16.msra.mxu0 %v13071_v61  ;;  %v8729_v4 = vpop.f32.mrf.mxu0  ;;  %8884 = vmatprep.subr.bf16.mxu1 %v13076_v0  ;;  %v13131_v61 = vld [vmem:[#allocation8 + $0xdd0] ss:$40 sps:$4 sm:$0xff]   ;;  %v13136_v0 = vld [vmem:[#allocation8 + $0x16dc] ss:$40 sps:$4 sm:$0xff]  }
 0x3be   :  { %9063 = vmatprep.subr.bf16.mxu0 %v13079_v1  ;;  %v13139_v1 = vld [vmem:[#allocation8 + $0xd84] ss:$40 sps:$4 sm:$0xff]  }
 0x3bf   :  { %v13142_v4 = vld [vmem:[#allocation8 + $0x168c] ss:$40 sps:$4 sm:$0xff]  }
 0x3c0   :  { %8885 = vmatpush2.bf16.msra.mxu1 %v13074_v20  ;;  %v13137_v20 = vld [vmem:[#allocation8 + $0xd80] ss:$40 sps:$4 sm:$0xff]  }
 0x3c1   :  { %9064 = vmatpush1.bf16.msra.mxu0 %v13077_v51  ;;  %8936 = vmatprep.subr.bf16.mxu1 %v13082_v6  ;;  %v13145_v51 = vld [vmem:[#allocation8 + $0xd34] ss:$40 sps:$4 sm:$0xff]   ;;  %v13140_v6 = vld [vmem:[#allocation8 + $0x1688] ss:$40 sps:$4 sm:$0xff]  }
 0x3c2   :  { %9065 = vmatprep.subr.bf16.mxu0 %v13085_v9  ;;  %v13143_v9 = vld [vmem:[#allocation8 + $0xd30] ss:$40 sps:$4 sm:$0xff]  }
 0x3c3   :  { %8887 = vmatmul.mubr.bf16.vlgmr.msra.gmra.mxu1 %v14212_v3 }
 0x3c4   :  { %8937 = vmatpush1.bf16.msra.mxu1 %v13080_v38  ;;  %11687 = vmatprep.mubr.msk.bf16.mxu1 %vm8563_vm1, %v14268_v31  ;;  %v13148_v38 = vld [vmem:[#allocation8 + $0x744] ss:$40 sps:$4 sm:$0xff]  }
 0x3c5   :  { %9066 = vmatpush1.bf16.msra.mxu0 %v13083_v60  ;;  %8938 = vmatprep.subr.bf16.mxu1 %v13088_v12  ;;  %v13151_v60 = vld [vmem:[#allocation8 + $0xce4] ss:$40 sps:$4 sm:$0xff]   ;;  %v13146_v12 = vld [vmem:[#allocation8 + $0x740] ss:$40 sps:$4 sm:$0xff]  }
 0x3c6   :  { %9067 = vmatprep.subr.bf16.mxu0 %v13091_v35  ;;  %v13149_v35 = vld [vmem:[#allocation8 + $0xce0] ss:$40 sps:$4 sm:$0xff]  }
 0x3c8   :  { %8939 = vmatpush1.bf16.msra.mxu1 %v13086_v16  ;;  %v13154_v16 = vld [vmem:[#allocation8 + $0x6f4] ss:$40 sps:$4 sm:$0xff]  }
 0x3c9   :  { %9068 = vmatpush1.bf16.msra.mxu0 %v13089_v17  ;;  %8940 = vmatprep.subr.bf16.mxu1 %v13094_v22  ;;  %v13157_v17 = vld [vmem:[#allocation8 + $0xc94] ss:$40 sps:$4 sm:$0xff]   ;;  %v13152_v22 = vld [vmem:[#allocation8 + $0x6f0] ss:$40 sps:$4 sm:$0xff]  }
 0x3ca   :  { %9069 = vmatprep.subr.bf16.mxu0 %v13097_v18  ;;  %v13155_v18 = vld [vmem:[#allocation8 + $0xc90] ss:$40 sps:$4 sm:$0xff]  }
 0x3cc   :  { %8941 = vmatpush1.bf16.msra.mxu1 %v13092_v63  ;;  %v13160_v63 = vld [vmem:[#allocation8 + $0x6a4] ss:$40 sps:$4 sm:$0xff]  }
 0x3cd   :  { %9070 = vmatpush1.bf16.msra.mxu0 %v13095_v43  ;;  %8942 = vmatprep.subr.bf16.mxu1 %v13100_v25  ;;  %v13163_v43 = vld [vmem:[#allocation8 + $0x1644] ss:$40 sps:$4 sm:$0xff]   ;;  %v13158_v25 = vld [vmem:[#allocation8 + $0x6a0] ss:$40 sps:$4 sm:$0xff]  }
 0x3ce   :  { %9071 = vmatprep.subr.bf16.mxu0 %v13103_v23  ;;  %v13161_v23 = vld [vmem:[#allocation8 + $0x1640] ss:$40 sps:$4 sm:$0xff]  }
 0x3d0   :  { %8943 = vmatpush1.bf16.msra.mxu1 %v13098_v26  ;;  %v13166_v26 = vld [vmem:[#allocation8 + $0x654] ss:$40 sps:$4 sm:$0xff]  }
 0x3d1   :  { %9072 = vmatpush1.bf16.msra.mxu0 %v13101_v40  ;;  %8944 = vmatprep.subr.bf16.mxu1 %v13106_v28  ;;  %v13169_v40 = vld [vmem:[#allocation8 + $0x15f4] ss:$40 sps:$4 sm:$0xff]  }
 0x3d2   :  { %9073 = vmatprep.subr.bf16.mxu0 %v13109_v27  ;;  %v13164_v27 = vld [vmem:[#allocation8 + $0x650] ss:$40 sps:$4 sm:$0xff]  }
 0x3d4   :  { %8945 = vmatpush1.bf16.msra.mxu1 %v13104_v29 }
 0x3d5   :  { %9074 = vmatpush1.bf16.msra.mxu0 %v13107_v13  ;;  %8946 = vmatprep.subr.bf16.mxu1 %v13112_v47  ;;  %v13167_v13 = vld [vmem:[#allocation8 + $0x15f0] ss:$40 sps:$4 sm:$0xff]   ;;  %v13172_v47 = vld [vmem:[#allocation8 + $0x604] ss:$40 sps:$4 sm:$0xff]  }
 0x3d6   :  { %9075 = vmatprep.subr.bf16.mxu0 %v13115_v30  ;;  %v13175_v30 = vld [vmem:[#allocation8 + $0x15a4] ss:$40 sps:$4 sm:$0xff]  }
 0x3d8   :  { %8947 = vmatpush1.bf16.msra.mxu1 %v13110_v39 }
 0x3d9   :  { %9076 = vmatpush2.bf16.msra.mxu0 %v13113_v34  ;;  %8948 = vmatprep.subr.bf16.mxu1 %v13118_v37  ;;  %v13170_v34 = vld [vmem:[#allocation8 + $0x600] ss:$40 sps:$4 sm:$0xff]  }
 0x3da   :  { %9077 = vmatprep.subr.bf16.mxu0 %v13121_v19  ;;  %v13173_v19 = vld [vmem:[#allocation8 + $0x15a0] ss:$40 sps:$4 sm:$0xff]  }
 0x3dc   :  { %8949 = vmatpush1.bf16.msra.mxu1 %v13116_v55  ;;  %v13178_v55 = vld [vmem:[#allocation8 + $0x5b4] ss:$40 sps:$4 sm:$0xff]  }
 0x3dd   :  { %9078 = vmatpush2.bf16.msra.mxu0 %v13119_v5  ;;  %8950 = vmatprep.subr.bf16.mxu1 %v13124_v41  ;;  %v13181_v5 = vld [vmem:[#allocation8 + $0x1554] ss:$40 sps:$4 sm:$0xff]   ;;  %v13176_v41 = vld [vmem:[#allocation8 + $0x5b0] ss:$40 sps:$4 sm:$0xff]  }
 0x3de   :  { %9079 = vmatprep.subr.bf16.mxu0 %v13127_v11  ;;  %v13179_v11 = vld [vmem:[#allocation8 + $0x1550] ss:$40 sps:$4 sm:$0xff]  }
 0x3e0   :  { %8951 = vmatpush1.bf16.msra.mxu1 %v13122_v45  ;;  %v13184_v45 = vld [vmem:[#allocation8 + $0x564] ss:$40 sps:$4 sm:$0xff]  }
 0x3e1   :  { %9080 = vmatpush2.bf16.msra.mxu0 %v13125_v49  ;;  %8962 = vmatprep.subr.bf16.mxu1 %v13130_v57  ;;  %v13187_v49 = vld [vmem:[#allocation8 + $0x1504] ss:$40 sps:$4 sm:$0xff]  }
 0x3e2   :  { %9081 = vmatprep.subr.bf16.mxu0 %v13133_v33 }
 0x3e4   :  { %8963 = vmatpush2.bf16.msra.mxu1 %v13128_v56  ;;  %v13182_v56 = vld [vmem:[#allocation8 + $0x560] ss:$40 sps:$4 sm:$0xff]  }
 0x3e5   :  { %9082 = vmatpush2.bf16.msra.mxu0 %v13131_v61  ;;  %8964 = vmatprep.subr.bf16.mxu1 %v13136_v0  ;;  %v13185_v0 = vld [vmem:[#allocation8 + $0x1500] ss:$40 sps:$4 sm:$0xff]  }
 0x3e6   :  { %9083 = vmatprep.subr.bf16.mxu0 %v13139_v1  ;;  %v13190_v1 = vld [vmem:[#allocation8 + $0x514] ss:$40 sps:$4 sm:$0xff]  }
 0x3e8   :  { %8965 = vmatpush2.bf16.msra.mxu1 %v13134_v2 }
 0x3e9   :  { %9084 = vmatpush2.bf16.msra.mxu0 %v13137_v20  ;;  %8966 = vmatprep.subr.bf16.mxu1 %v13142_v4  ;;  %v13193_v20 = vld [vmem:[#allocation8 + $0x14b4] ss:$40 sps:$4 sm:$0xff]  }
 0x3ea   :  { %9085 = vmatprep.subr.bf16.mxu0 %v13145_v51  ;;  %v13188_v51 = vld [vmem:[#allocation8 + $0x510] ss:$40 sps:$4 sm:$0xff]  }
 0x3ec   :  { %8967 = vmatpush2.bf16.msra.mxu1 %v13140_v6 }
 0x3ed   :  { %9086 = vmatpush2.bf16.msra.mxu0 %v13143_v9  ;;  %9018 = vmatprep.subr.bf16.mxu1 %v13148_v38  ;;  %v13196_v9 = vld [vmem:[#allocation8 + $0x9c4] ss:$40 sps:$4 sm:$0xff]  }
 0x3ee   :  { %9087 = vmatprep.subr.bf16.mxu0 %v13151_v60  ;;  %v13199_v38 = vld [vmem:[#allocation8 + $0x1464] ss:$40 sps:$4 sm:$0xff]   ;;  %v13194_v60 = vld [vmem:[#allocation8 + $0x9c0] ss:$40 sps:$4 sm:$0xff]  }
 0x3ef   :  { %8969 = vmatmul.mubr.bf16.vlgmr.msra.gmra.mxu1 %v14270_v36 }
 0x3f0   :  { %9019 = vmatpush1.bf16.msra.mxu1 %v13146_v12  ;;  %9050 = vmatprep.mubr.bf16.mxu1 %v14198_v7  ;;  %v13197_v12 = vld [vmem:[#allocation8 + $0x1460] ss:$40 sps:$4 sm:$0xff]  }
 0x3f1   :  { %9088 = vmatpush2.bf16.msra.mxu0 %v13149_v35  ;;  %9020 = vmatprep.subr.bf16.mxu1 %v13154_v16  ;;  %v13202_v35 = vld [vmem:[#allocation8 + $0x974] ss:$40 sps:$4 sm:$0xff]   ;;  %v13200_v16 = vld [vmem:[#allocation8 + $0x970] ss:$40 sps:$4 sm:$0xff]  }
 0x3f2   :  { %9089 = vmatprep.subr.bf16.mxu0 %v13157_v17  ;;  %v13203_v17 = vld [vmem:[#allocation8 + $0x1410] ss:$40 sps:$4 sm:$0xff]  }
 0x3f4   :  { %9021 = vmatpush1.bf16.msra.mxu1 %v13152_v22  ;;  %v13208_v22 = vld [vmem:[#allocation8 + $0x924] ss:$40 sps:$4 sm:$0xff]  }
 0x3f5   :  { %9090 = vmatpush2.bf16.msra.mxu0 %v13155_v18  ;;  %9022 = vmatprep.subr.bf16.mxu1 %v13160_v63  ;;  %v13211_v18 = vld [vmem:[#allocation8 + $0x1734] ss:$40 sps:$4 sm:$0xff]   ;;  %v13206_v63 = vld [vmem:[#allocation8 + $0x920] ss:$40 sps:$4 sm:$0xff]  }
 0x3f6   :  { %9141 = vmatprep.subr.bf16.mxu0 %v13163_v43  ;;  %v13209_v43 = vld [vmem:[#allocation8 + $0x1730] ss:$40 sps:$4 sm:$0xff]  }
 0x3f7   :  { %v14307_v28 = vpop.f32.mrf.mxu0 }
 0x3f8   :  { %9023 = vmatpush1.bf16.msra.mxu1 %v13158_v25  ;;  %9092 = vmatmul.mubr.bf16.vlgmr.msra.gmra.mxu0 %v14212_v3  ;;  %v13214_v25 = vld [vmem:[#allocation8 + $0x8d4] ss:$40 sps:$4 sm:$0xff]  }
 0x3f9   :  { %9142 = vmatpush1.bf16.msra.mxu0 %v13161_v23  ;;  %11688 = vmatprep.mubr.msk.bf16.mxu0 %vm8563_vm1, %v14268_v31  ;;  %v14312_v29 = vpop.f32.mrf.mxu0  ;;  %v13217_v23 = vld [vmem:[#allocation8 + $0x16e4] ss:$40 sps:$4 sm:$0xff]  }
 0x3fa   :  { %9024 = vmatprep.subr.bf16.mxu1 %v13166_v26  ;;  %9143 = vmatprep.subr.bf16.mxu0 %v13169_v40  ;;  %v13212_v26 = vld [vmem:[#allocation8 + $0x8d0] ss:$40 sps:$4 sm:$0xff]   ;;  %v13215_v40 = vld [vmem:[#allocation8 + $0x16e0] ss:$40 sps:$4 sm:$0xff]  }
 0x3fb   :  { %v8851_v39 = vpop.f32.mrf.mxu0 }
 0x3fc   :  { %9025 = vmatpush1.bf16.msra.mxu1 %v13164_v27  ;;  %v13220_v27 = vld [vmem:[#allocation8 + $0x884] ss:$40 sps:$4 sm:$0xff]   ;;  %v13226_v39 = vld [vmem:[#allocation8 + $0x834] ss:$40 sps:$4 sm:$0xff]  }
 0x3fd   :  { %9144 = vmatpush1.bf16.msra.mxu0 %v13167_v13  ;;  %v8852_v37 = vpop.f32.mrf.mxu0  ;;  %9026 = vmatprep.subr.bf16.mxu1 %v13172_v47  ;;  %v13223_v13 = vld [vmem:[#allocation8 + $0x1694] ss:$40 sps:$4 sm:$0xff]   ;;  %v13218_v47 = vld [vmem:[#allocation8 + $0x880] ss:$40 sps:$4 sm:$0xff]  }
 0x3fe   :  { %9145 = vmatprep.subr.bf16.mxu0 %v13175_v30  ;;  %v13221_v30 = vld [vmem:[#allocation8 + $0x1690] ss:$40 sps:$4 sm:$0xff]  }
 0x3ff   :  { %v13224_v37 = vld [vmem:[#allocation8 + $0x830] ss:$40 sps:$4 sm:$0xff]  }
 0x400   :  { %9027 = vmatpush1.bf16.msra.mxu1 %v13170_v34  ;;  %v13229_v34 = vld [vmem:[#allocation8 + $0x74c] ss:$40 sps:$4 sm:$0xff]  }
 0x401   :  { %9146 = vmatpush1.bf16.msra.mxu0 %v13173_v19  ;;  %9028 = vmatprep.subr.bf16.mxu1 %v13178_v55  ;;  %v13227_v19 = vld [vmem:[#allocation8 + $0x748] ss:$40 sps:$4 sm:$0xff]   ;;  %v13232_v55 = vld [vmem:[#allocation8 + $0x7e4] ss:$40 sps:$4 sm:$0xff]  }
 0x402   :  { %9147 = vmatprep.subr.bf16.mxu0 %v13181_v5  ;;  %v13235_v5 = vld [vmem:[#allocation8 + $0x6fc] ss:$40 sps:$4 sm:$0xff]  }
 0x403   :  { %v8765_v57 = vpop.f32.mrf.mxu1 }
 0x404   :  { %v14315_v33 = vadd.f32 %v8765_v57, %v14295_v58  ;;  %9029 = vmatpush1.bf16.msra.mxu1 %v13176_v41  ;;  %v13191_v58 = vld [vmem:[#allocation8 + $0x14b0] ss:$40 sps:$4 sm:$0xff]   ;;  %v13230_v41 = vld [vmem:[#allocation8 + $0x7e0] ss:$40 sps:$4 sm:$0xff]  }
 0x405   :  { %9148 = vmatpush1.bf16.msra.mxu0 %v13179_v11  ;;  %v8767_v61 = vpop.f32.mrf.mxu1  ;;  %9030 = vmatprep.subr.bf16.mxu1 %v13184_v45  ;;  %v13233_v11 = vld [vmem:[#allocation8 + $0x6f8] ss:$40 sps:$4 sm:$0xff]   ;;  %v13238_v45 = vld [vmem:[#allocation8 + $0x794] ss:$40 sps:$4 sm:$0xff]  }
 0x406   :  { %v14318_v2 = vadd.f32 %v8767_v61, %v14300_v62  ;;  %9149 = vmatprep.subr.bf16.mxu0 %v13187_v49  ;;  %v13205_v62 = vld [vmem:[#allocation8 + $0x1414] ss:$40 sps:$4 sm:$0xff]   ;;  %v13236_v57 = vld [vmem:[#allocation8 + $0x790] ss:$40 sps:$4 sm:$0xff]   ;;  %v13244_v61 = vld [vmem:[#allocation8 + $0x1144] ss:$40 sps:$4 sm:$0xff]  }
 0x407   :  { %v8769_v4 = vpop.f32.mrf.mxu1  ;;  %v13241_v49 = vld [vmem:[#allocation8 + $0x6ac] ss:$40 sps:$4 sm:$0xff]  }
 0x408   :  { %9031 = vmatpush1.bf16.msra.mxu1 %v13182_v56  ;;  %v13239_v56 = vld [vmem:[#allocation8 + $0x6a8] ss:$40 sps:$4 sm:$0xff]   ;;  %v13250_v4 = vld [vmem:[#allocation8 + $0x10f4] ss:$40 sps:$4 sm:$0xff]  }
 0x409   :  { %9150 = vmatpush1.bf16.msra.mxu0 %v13185_v0  ;;  %v8770_v6 = vpop.f32.mrf.mxu1  ;;  %9032 = vmatprep.subr.bf16.mxu1 %v13190_v1  ;;  %v13247_v0 = vld [vmem:[#allocation8 + $0x65c] ss:$40 sps:$4 sm:$0xff]   ;;  %v13242_v1 = vld [vmem:[#allocation8 + $0x1140] ss:$40 sps:$4 sm:$0xff]  }
 0x40a   :  { %9151 = vmatprep.subr.bf16.mxu0 %v13193_v20  ;;  %v13245_v20 = vld [vmem:[#allocation8 + $0x658] ss:$40 sps:$4 sm:$0xff]  }
 0x40b   :  { %v13248_v6 = vld [vmem:[#allocation8 + $0x10f0] ss:$40 sps:$4 sm:$0xff]  }
 0x40c   :  { %9033 = vmatpush1.bf16.msra.mxu1 %v13188_v51  ;;  %v13253_v51 = vld [vmem:[#allocation8 + $0x60c] ss:$40 sps:$4 sm:$0xff]  }
 0x40d   :  { %9152 = vmatpush1.bf16.msra.mxu0 %v13191_v58  ;;  %9034 = vmatprep.subr.bf16.mxu1 %v13196_v9  ;;  %v13251_v58 = vld [vmem:[#allocation8 + $0x608] ss:$40 sps:$4 sm:$0xff]   ;;  %v13256_v9 = vld [vmem:[#allocation8 + $0x10a4] ss:$40 sps:$4 sm:$0xff]  }
 0x40e   :  { %9153 = vmatprep.subr.bf16.mxu0 %v13199_v38  ;;  %v13259_v38 = vld [vmem:[#allocation8 + $0x5bc] ss:$40 sps:$4 sm:$0xff]  }
 0x410   :  { %9035 = vmatpush2.bf16.msra.mxu1 %v13194_v60  ;;  %v13254_v60 = vld [vmem:[#allocation8 + $0x10a0] ss:$40 sps:$4 sm:$0xff]  }
 0x411   :  { %9154 = vmatpush1.bf16.msra.mxu0 %v13197_v12  ;;  %9036 = vmatprep.subr.bf16.mxu1 %v13202_v35  ;;  %v13257_v12 = vld [vmem:[#allocation8 + $0x5b8] ss:$40 sps:$4 sm:$0xff]   ;;  %v13262_v35 = vld [vmem:[#allocation8 + $0x1054] ss:$40 sps:$4 sm:$0xff]  }
 0x412   :  { %9155 = vmatprep.subr.bf16.mxu0 %v13205_v62  ;;  %v13265_v62 = vld [vmem:[#allocation8 + $0x56c] ss:$40 sps:$4 sm:$0xff]  }
 0x414   :  { %9037 = vmatpush2.bf16.msra.mxu1 %v13200_v16 }
 0x415   :  { %9156 = vmatpush1.bf16.msra.mxu0 %v13203_v17  ;;  %9038 = vmatprep.subr.bf16.mxu1 %v13208_v22  ;;  %v13260_v17 = vld [vmem:[#allocation8 + $0x1050] ss:$40 sps:$4 sm:$0xff]  }
 0x416   :  { %9167 = vmatprep.subr.bf16.mxu0 %v13211_v18  ;;  %v13263_v22 = vld [vmem:[#allocation8 + $0x568] ss:$40 sps:$4 sm:$0xff]   ;;  %v13268_v18 = vld [vmem:[#allocation8 + $0x1004] ss:$40 sps:$4 sm:$0xff]  }
 0x418   :  { %9039 = vmatpush2.bf16.msra.mxu1 %v13206_v63 }
 0x419   :  { %9168 = vmatpush2.bf16.msra.mxu0 %v13209_v43  ;;  %9040 = vmatprep.subr.bf16.mxu1 %v13214_v25  ;;  %v13271_v43 = vld [vmem:[#allocation8 + $0x51c] ss:$40 sps:$4 sm:$0xff]  }
 0x41a   :  { %9169 = vmatprep.subr.bf16.mxu0 %v13217_v23  ;;  %v13266_v23 = vld [vmem:[#allocation8 + $0x1000] ss:$40 sps:$4 sm:$0xff]  }
 0x41c   :  { %9041 = vmatpush2.bf16.msra.mxu1 %v13212_v26  ;;  %v13269_v26 = vld [vmem:[#allocation8 + $0x518] ss:$40 sps:$4 sm:$0xff]  }
 0x41d   :  { %9170 = vmatpush2.bf16.msra.mxu0 %v13215_v40  ;;  %9042 = vmatprep.subr.bf16.mxu1 %v13220_v27  ;;  %v13274_v40 = vld [vmem:[#allocation8 + $0xfb4] ss:$40 sps:$4 sm:$0xff]  }
 0x41e   :  { %9171 = vmatprep.subr.bf16.mxu0 %v13223_v13  ;;  %v13277_v13 = vld [vmem:[#allocation8 + $0x9cc] ss:$40 sps:$4 sm:$0xff]  }
 0x420   :  { %9043 = vmatpush2.bf16.msra.mxu1 %v13218_v47  ;;  %v13272_v47 = vld [vmem:[#allocation8 + $0xfb0] ss:$40 sps:$4 sm:$0xff]  }
 0x421   :  { %9172 = vmatpush2.bf16.msra.mxu0 %v13221_v30  ;;  %9044 = vmatprep.subr.bf16.mxu1 %v13226_v39  ;;  %v13275_v30 = vld [vmem:[#allocation8 + $0x9c8] ss:$40 sps:$4 sm:$0xff]   ;;  %v13280_v39 = vld [vmem:[#allocation8 + $0xf64] ss:$40 sps:$4 sm:$0xff]  }
 0x422   :  { %9223 = vmatprep.subr.bf16.mxu0 %v13229_v34  ;;  %v13283_v34 = vld [vmem:[#allocation8 + $0x97c] ss:$40 sps:$4 sm:$0xff]  }
 0x424   :  { %9045 = vmatpush2.bf16.msra.mxu1 %v13224_v37  ;;  %9174 = vmatmul.mubr.bf16.vlgmr.msra.gmra.mxu0 %v14270_v36 }
 0x425   :  { %9224 = vmatpush1.bf16.msra.mxu0 %v13227_v19  ;;  %9255 = vmatprep.mubr.bf16.mxu0 %v14198_v7  ;;  %v13278_v19 = vld [vmem:[#allocation8 + $0xf60] ss:$40 sps:$4 sm:$0xff]  }
 0x426   :  { %9046 = vmatprep.subr.bf16.mxu1 %v13232_v55  ;;  %9225 = vmatprep.subr.bf16.mxu0 %v13235_v5  ;;  %v13281_v5 = vld [vmem:[#allocation8 + $0x978] ss:$40 sps:$4 sm:$0xff]  }
 0x428   :  { %9047 = vmatpush2.bf16.msra.mxu1 %v13230_v41  ;;  %v13286_v41 = vld [vmem:[#allocation8 + $0xf14] ss:$40 sps:$4 sm:$0xff]  }
 0x429   :  { %9226 = vmatpush1.bf16.msra.mxu0 %v13233_v11  ;;  %9048 = vmatprep.subr.bf16.mxu1 %v13238_v45  ;;  %v13289_v11 = vld [vmem:[#allocation8 + $0x92c] ss:$40 sps:$4 sm:$0xff]  }
 0x42a   :  { %9227 = vmatprep.subr.bf16.mxu0 %v13241_v49  ;;  %v13284_v49 = vld [vmem:[#allocation8 + $0xf10] ss:$40 sps:$4 sm:$0xff]  }
 0x42c   :  { %9049 = vmatpush2.bf16.msra.mxu1 %v13236_v57 }
 0x42d   :  { %9228 = vmatpush1.bf16.msra.mxu0 %v13239_v56  ;;  %9100 = vmatprep.subr.bf16.mxu1 %v13244_v61  ;;  %v13287_v56 = vld [vmem:[#allocation8 + $0x928] ss:$40 sps:$4 sm:$0xff]   ;;  %v13292_v61 = vld [vmem:[#allocation8 + $0x13c4] ss:$40 sps:$4 sm:$0xff]  }
 0x42e   :  { %9229 = vmatprep.subr.bf16.mxu0 %v13247_v0  ;;  %v13295_v0 = vld [vmem:[#allocation8 + $0x8dc] ss:$40 sps:$4 sm:$0xff]  }
 0x42f   :  { %9051 = vmatmul.mubr.bf16.vlgmr.msra.gmra.mxu1 %v14227_v48 }
 0x430   :  { %9101 = vmatpush1.bf16.msra.mxu1 %v13242_v1  ;;  %9132 = vmatprep.mubr.bf16.mxu1 %v14233_v14  ;;  %v13290_v1 = vld [vmem:[#allocation8 + $0x13c0] ss:$40 sps:$4 sm:$0xff]  }
 0x431   :  { %9230 = vmatpush1.bf16.msra.mxu0 %v13245_v20  ;;  %9102 = vmatprep.subr.bf16.mxu1 %v13250_v4  ;;  %v13293_v20 = vld [vmem:[#allocation8 + $0x8d8] ss:$40 sps:$4 sm:$0xff]   ;;  %v13298_v4 = vld [vmem:[#allocation8 + $0x1374] ss:$40 sps:$4 sm:$0xff]  }
 0x432   :  { %9231 = vmatprep.subr.bf16.mxu0 %v13253_v51  ;;  %v13301_v51 = vld [vmem:[#allocation8 + $0x88c] ss:$40 sps:$4 sm:$0xff]  }
 0x434   :  { %9103 = vmatpush1.bf16.msra.mxu1 %v13248_v6  ;;  %v13296_v6 = vld [vmem:[#allocation8 + $0x1370] ss:$40 sps:$4 sm:$0xff]  }
 0x435   :  { %9232 = vmatpush1.bf16.msra.mxu0 %v13251_v58  ;;  %9104 = vmatprep.subr.bf16.mxu1 %v13256_v9  ;;  %v13299_v58 = vld [vmem:[#allocation8 + $0x888] ss:$40 sps:$4 sm:$0xff]   ;;  %v13304_v9 = vld [vmem:[#allocation8 + $0x1324] ss:$40 sps:$4 sm:$0xff]  }
 0x436   :  { %9233 = vmatprep.subr.bf16.mxu0 %v13259_v38  ;;  %v13307_v38 = vld [vmem:[#allocation8 + $0x83c] ss:$40 sps:$4 sm:$0xff]  }
 0x438   :  { %v14324_v16 = vpop.f32.mrf.mxu0  ;;  %9105 = vmatpush1.bf16.msra.mxu1 %v13254_v60  ;;  %v13302_v60 = vld [vmem:[#allocation8 + $0x1320] ss:$40 sps:$4 sm:$0xff]  }
 0x439   :  { %9234 = vmatpush1.bf16.msra.mxu0 %v13257_v12  ;;  %9106 = vmatprep.subr.bf16.mxu1 %v13262_v35  ;;  %v13305_v12 = vld [vmem:[#allocation8 + $0x838] ss:$40 sps:$4 sm:$0xff]   ;;  %v13310_v35 = vld [vmem:[#allocation8 + $0x12d4] ss:$40 sps:$4 sm:$0xff]  }
 0x43a   :  { %v14326_v63 = vpop.f32.mrf.mxu0  ;;  %9235 = vmatprep.subr.bf16.mxu0 %v13265_v62  ;;  %v13313_v62 = vld [vmem:[#allocation8 + $0x7ec] ss:$40 sps:$4 sm:$0xff]  }
 0x43c   :  { %v8933_v25 = vpop.f32.mrf.mxu0  ;;  %9107 = vmatpush1.bf16.msra.mxu1 %v13260_v17  ;;  %v13308_v17 = vld [vmem:[#allocation8 + $0x12d0] ss:$40 sps:$4 sm:$0xff]  }
 0x43d   :  { %9236 = vmatpush1.bf16.msra.mxu0 %v13263_v22  ;;  %9108 = vmatprep.subr.bf16.mxu1 %v13268_v18  ;;  %v13311_v22 = vld [vmem:[#allocation8 + $0x7e8] ss:$40 sps:$4 sm:$0xff]   ;;  %v13316_v18 = vld [vmem:[#allocation8 + $0x1284] ss:$40 sps:$4 sm:$0xff]  }
 0x43e   :  { %v8934_v27 = vpop.f32.mrf.mxu0  ;;  %9237 = vmatprep.subr.bf16.mxu0 %v13271_v43  ;;  %v13319_v43 = vld [vmem:[#allocation8 + $0x79c] ss:$40 sps:$4 sm:$0xff]   ;;  %v13314_v25 = vld [vmem:[#allocation8 + $0x1280] ss:$40 sps:$4 sm:$0xff]  }
 0x43f   :  { %v13320_v27 = vld [vmem:[#allocation8 + $0x1230] ss:$40 sps:$4 sm:$0xff]  }
 0x440   :  { %9109 = vmatpush1.bf16.msra.mxu1 %v13266_v23  ;;  %v13317_v23 = vld [vmem:[#allocation8 + $0x798] ss:$40 sps:$4 sm:$0xff]  }
 0x441   :  { %9238 = vmatpush1.bf16.msra.mxu0 %v13269_v26  ;;  %9110 = vmatprep.subr.bf16.mxu1 %v13274_v40  ;;  %v13322_v26 = vld [vmem:[#allocation8 + $0x1234] ss:$40 sps:$4 sm:$0xff]  }
 0x442   :  { %9239 = vmatprep.subr.bf16.mxu0 %v13277_v13  ;;  %v13325_v40 = vld [vmem:[#allocation8 + $0x114c] ss:$40 sps:$4 sm:$0xff]   ;;  %v13323_v13 = vld [vmem:[#allocation8 + $0x1148] ss:$40 sps:$4 sm:$0xff]  }
 0x443   :  { %v14328_v37 = vpop.f32.mrf.mxu1 }
 0x444   :  { %9111 = vmatpush1.bf16.msra.mxu1 %v13272_v47  ;;  %v13328_v47 = vld [vmem:[#allocation8 + $0x11e4] ss:$40 sps:$4 sm:$0xff]  }
 0x445   :  { %v14330_v55 = vpop.f32.mrf.mxu1  ;;  %9240 = vmatpush2.bf16.msra.mxu0 %v13275_v30  ;;  %9112 = vmatprep.subr.bf16.mxu1 %v13280_v39  ;;  %v13331_v30 = vld [vmem:[#allocation8 + $0x10fc] ss:$40 sps:$4 sm:$0xff]   ;;  %v13326_v39 = vld [vmem:[#allocation8 + $0x11e0] ss:$40 sps:$4 sm:$0xff]  }
 0x446   :  { %9241 = vmatprep.subr.bf16.mxu0 %v13283_v34  ;;  %v13329_v34 = vld [vmem:[#allocation8 + $0x10f8] ss:$40 sps:$4 sm:$0xff]  }
 0x447   :  { %v8810_v45 = vpop.f32.mrf.mxu1 }
 0x448   :  { %9113 = vmatpush1.bf16.msra.mxu1 %v13278_v19  ;;  %v13334_v19 = vld [vmem:[#allocation8 + $0x1194] ss:$40 sps:$4 sm:$0xff]  }
 0x449   :  { %v8811_v57 = vpop.f32.mrf.mxu1  ;;  %9242 = vmatpush2.bf16.msra.mxu0 %v13281_v5  ;;  %9114 = vmatprep.subr.bf16.mxu1 %v13286_v41  ;;  %v13337_v5 = vld [vmem:[#allocation8 + $0x10ac] ss:$40 sps:$4 sm:$0xff]   ;;  %v13332_v41 = vld [vmem:[#allocation8 + $0x1190] ss:$40 sps:$4 sm:$0xff]  }
 0x44a   :  { %9243 = vmatprep.subr.bf16.mxu0 %v13289_v11  ;;  %v13335_v11 = vld [vmem:[#allocation8 + $0x10a8] ss:$40 sps:$4 sm:$0xff]   ;;  %v13340_v45 = vld [vmem:[#allocation8 + $0x24c] ss:$40 sps:$4 sm:$0xff]  }
 0x44b   :  { %v13338_v57 = vld [vmem:[#allocation8 + $0x248] ss:$40 sps:$4 sm:$0xff]  }
 0x44c   :  { %9115 = vmatpush1.bf16.msra.mxu1 %v13284_v49  ;;  %v13343_v49 = vld [vmem:[#allocation8 + $0x105c] ss:$40 sps:$4 sm:$0xff]  }
 0x44d   :  { %9244 = vmatpush2.bf16.msra.mxu0 %v13287_v56  ;;  %9116 = vmatprep.subr.bf16.mxu1 %v13292_v61  ;;  %v13341_v56 = vld [vmem:[#allocation8 + $0x1058] ss:$40 sps:$4 sm:$0xff]   ;;  %v13346_v61 = vld [vmem:[#allocation8 + $0x1fc] ss:$40 sps:$4 sm:$0xff]  }
 0x44e   :  { %9245 = vmatprep.subr.bf16.mxu0 %v13295_v0  ;;  %v13349_v0 = vld [vmem:[#allocation8 + $0x100c] ss:$40 sps:$4 sm:$0xff]  }
 0x450   :  { %9117 = vmatpush2.bf16.msra.mxu1 %v13290_v1  ;;  %v13344_v1 = vld [vmem:[#allocation8 + $0x1f8] ss:$40 sps:$4 sm:$0xff]  }
 0x451   :  { %9246 = vmatpush2.bf16.msra.mxu0 %v13293_v20  ;;  %9118 = vmatprep.subr.bf16.mxu1 %v13298_v4  ;;  %v13347_v20 = vld [vmem:[#allocation8 + $0x1008] ss:$40 sps:$4 sm:$0xff]   ;;  %v13352_v4 = vld [vmem:[#allocation8 + $0x1ac] ss:$40 sps:$4 sm:$0xff]  }
 0x452   :  { %9247 = vmatprep.subr.bf16.mxu0 %v13301_v51  ;;  %v13355_v51 = vld [vmem:[#allocation8 + $0xfbc] ss:$40 sps:$4 sm:$0xff]  }
 0x454   :  { %9119 = vmatpush2.bf16.msra.mxu1 %v13296_v6  ;;  %v13350_v6 = vld [vmem:[#allocation8 + $0x1a8] ss:$40 sps:$4 sm:$0xff]  }
 0x455   :  { %9248 = vmatpush2.bf16.msra.mxu0 %v13299_v58  ;;  %9120 = vmatprep.subr.bf16.mxu1 %v13304_v9  ;;  %v13353_v58 = vld [vmem:[#allocation8 + $0xfb8] ss:$40 sps:$4 sm:$0xff]   ;;  %v13358_v9 = vld [vmem:[#allocation8 + $0x15c] ss:$40 sps:$4 sm:$0xff]  }
 0x456   :  { %9249 = vmatprep.subr.bf16.mxu0 %v13307_v38  ;;  %v13361_v38 = vld [vmem:[#allocation8 + $0xf6c] ss:$40 sps:$4 sm:$0xff]  }
 0x458   :  { %9121 = vmatpush2.bf16.msra.mxu1 %v13302_v60 }
 0x459   :  { %9250 = vmatpush2.bf16.msra.mxu0 %v13305_v12  ;;  %9122 = vmatprep.subr.bf16.mxu1 %v13310_v35  ;;  %v13356_v12 = vld [vmem:[#allocation8 + $0x158] ss:$40 sps:$4 sm:$0xff]   ;;  %v13359_v35 = vld [vmem:[#allocation8 + $0xf68] ss:$40 sps:$4 sm:$0xff]  }
 0x45a   :  { %9251 = vmatprep.subr.bf16.mxu0 %v13313_v62  ;;  %v13364_v62 = vld [vmem:[#allocation8 + $0x10c] ss:$40 sps:$4 sm:$0xff]  }
 0x45c   :  { %9123 = vmatpush2.bf16.msra.mxu1 %v13308_v17  ;;  %v14338_v17 = vld [vmem:[#allocation10] sm:$0xff] }
 0x45d   :  { %9252 = vmatpush2.bf16.msra.mxu0 %v13311_v22  ;;  %9124 = vmatprep.subr.bf16.mxu1 %v13316_v18  ;;  %v4774_v22 = vrot.slane %v14338_v17, %v620_v50  ;;  %v13373_v50 = vld [vmem:[#allocation8 + $0x13cc] ss:$40 sps:$4 sm:$0xff]  }
 0x45e   :  { %9253 = vmatprep.subr.bf16.mxu0 %v13319_v43  ;;  %v13367_v43 = vld [vmem:[#allocation8 + $0xf1c] ss:$40 sps:$4 sm:$0xff]  }
 0x460   :  { %9125 = vmatpush2.bf16.msra.mxu1 %v13314_v25  ;;  %v4778_v25 = vrot.slane %v14338_v17, %v624_v53  ;;  %v13376_v53 = vld [vmem:[#allocation8 + $0x6c] ss:$40 sps:$4 sm:$0xff]  }
 0x461   :  { %9254 = vmatpush2.bf16.msra.mxu0 %v13317_v23  ;;  %9126 = vmatprep.subr.bf16.mxu1 %v13322_v26  ;;  %v13362_v26 = vld [vmem:[#allocation8 + $0x108] ss:$40 sps:$4 sm:$0xff]  }
 0x462   :  { %9305 = vmatprep.subr.bf16.mxu0 %v13325_v40  ;;  %v13365_v40 = vld [vmem:[#allocation8 + $0xf18] ss:$40 sps:$4 sm:$0xff]  }
 0x464   :  { %9127 = vmatpush2.bf16.msra.mxu1 %v13320_v27  ;;  %9256 = vmatmul.mubr.bf16.vlgmr.msra.gmra.mxu0 %v14227_v48  ;;  %v13370_v27 = vld [vmem:[#allocation8 + $0xbc] ss:$40 sps:$4 sm:$0xff]  }
 0x465   :  { %9306 = vmatpush1.bf16.msra.mxu0 %v13323_v13  ;;  %9337 = vmatprep.mubr.bf16.mxu0 %v14233_v14  ;;  %v8807_v13 = vadd.f32 %v14328_v37, %v4774_v22  ;;  %v13398_v22 = vld [vmem:[#allocation8 + $0x428] ss:$40 sps:$4 sm:$0xff]  }
 0x466   :  { %9128 = vmatprep.subr.bf16.mxu1 %v13328_v47  ;;  %9307 = vmatprep.subr.bf16.mxu0 %v13331_v30  ;;  %v8809_v30 = vadd.f32 %v14330_v55, %v4778_v25  ;;  %v13377_v55 = vld [vmem:[#allocation8 + $0x1378] ss:$40 sps:$4 sm:$0xff]   ;;  %v13406_v25 = vld [vmem:[#allocation8 + $0x3dc] ss:$40 sps:$4 sm:$0xff]  }
 0x468   :  { %9129 = vmatpush2.bf16.msra.mxu1 %v13326_v39  ;;  %v13368_v39 = vld [vmem:[#allocation8 + $0xb8] ss:$40 sps:$4 sm:$0xff]   ;;  %v8850_v37 = vadd.f32 %v14312_v29, %v8809_v30  ;;  %v13391_v29 = vld [vmem:[#allocation8 + $0x12dc] ss:$40 sps:$4 sm:$0xff]  }
 0x469   :  { %9308 = vmatpush1.bf16.msra.mxu0 %v13329_v34  ;;  %9130 = vmatprep.subr.bf16.mxu1 %v13334_v19  ;;  %v13371_v34 = vld [vmem:[#allocation8 + $0x13c8] ss:$40 sps:$4 sm:$0xff]   ;;  %v8848_v19 = vadd.f32 %v14307_v28, %v8807_v13  ;;  %v13380_v28 = vld [vmem:[#allocation8 + $0x18] ss:$40 sps:$4 sm:$0xff]   ;;  %v13415_v13 = vld [vmem:[#allocation8 + $0x119c] ss:$40 sps:$4 sm:$0xff]  }
 0x46a   :  { %9309 = vmatprep.subr.bf16.mxu0 %v13337_v5  ;;  %v13379_v5 = vld [vmem:[#allocation8 + $0x137c] ss:$40 sps:$4 sm:$0xff]  }
 0x46b   :  { %v13418_v30 = vld [vmem:[#allocation8 + $0x33c] ss:$40 sps:$4 sm:$0xff]  }
 0x46c   :  { %9131 = vmatpush2.bf16.msra.mxu1 %v13332_v41 }
 0x46d   :  { %9310 = vmatpush1.bf16.msra.mxu0 %v13335_v11  ;;  %9182 = vmatprep.subr.bf16.mxu1 %v13340_v45  ;;  %v13374_v45 = vld [vmem:[#allocation8 + $0x68] ss:$40 sps:$4 sm:$0xff]  }
 0x46e   :  { %9311 = vmatprep.subr.bf16.mxu0 %v13343_v49 }
 0x46f   :  { %9133 = vmatmul.mubr.bf16.vlgmr.msra.gmra.mxu1 %v14246_v10 }
 0x470   :  { %9183 = vmatpush1.bf16.msra.mxu1 %v13338_v57  ;;  %9214 = vmatprep.mubr.bf16.mxu1 %v14165_v52  ;;  %v13382_v57 = vld [vmem:[#allocation8 + $0x1c] ss:$40 sps:$4 sm:$0xff]  }
 0x471   :  { %9312 = vmatpush1.bf16.msra.mxu0 %v13341_v56  ;;  %9184 = vmatprep.subr.bf16.mxu1 %v13346_v61  ;;  %v13385_v61 = vld [vmem:[#allocation8 + $0x132c] ss:$40 sps:$4 sm:$0xff]  }
 0x472   :  { %9313 = vmatprep.subr.bf16.mxu0 %v13349_v0 }
 0x474   :  { %9185 = vmatpush1.bf16.msra.mxu1 %v13344_v1 }
 0x475   :  { %9314 = vmatpush1.bf16.msra.mxu0 %v13347_v20  ;;  %9186 = vmatprep.subr.bf16.mxu1 %v13352_v4  ;;  %v13383_v20 = vld [vmem:[#allocation8 + $0x1328] ss:$40 sps:$4 sm:$0xff]   ;;  %v13388_v4 = vld [vmem:[#allocation8 + $0x4cc] ss:$40 sps:$4 sm:$0xff]  }
 0x476   :  { %9315 = vmatprep.subr.bf16.mxu0 %v13355_v51  ;;  %v13386_v51 = vld [vmem:[#allocation8 + $0x4c8] ss:$40 sps:$4 sm:$0xff]  }
 0x478   :  { %v14336_v60 = vpop.f32.mrf.mxu0  ;;  %9187 = vmatpush1.bf16.msra.mxu1 %v13350_v6  ;;  %v13389_v6 = vld [vmem:[#allocation8 + $0x12d8] ss:$40 sps:$4 sm:$0xff]  }
 0x479   :  { %9316 = vmatpush1.bf16.msra.mxu0 %v13353_v58  ;;  %9188 = vmatprep.subr.bf16.mxu1 %v13358_v9  ;;  %v13394_v58 = vld [vmem:[#allocation8 + $0x47c] ss:$40 sps:$4 sm:$0xff]   ;;  %v13397_v9 = vld [vmem:[#allocation8 + $0x128c] ss:$40 sps:$4 sm:$0xff]  }
 0x47a   :  { %v14343_v18 = vpop.f32.mrf.mxu0  ;;  %9317 = vmatprep.subr.bf16.mxu0 %v13361_v38  ;;  %v13392_v38 = vld [vmem:[#allocation8 + $0x478] ss:$40 sps:$4 sm:$0xff]  }
 0x47c   :  { %v9015_v23 = vpop.f32.mrf.mxu0  ;;  %9189 = vmatpush1.bf16.msra.mxu1 %v13356_v12  ;;  %v13395_v12 = vld [vmem:[#allocation8 + $0x1288] ss:$40 sps:$4 sm:$0xff]  }
 0x47d   :  { %9318 = vmatpush1.bf16.msra.mxu0 %v13359_v35  ;;  %9190 = vmatprep.subr.bf16.mxu1 %v13364_v62  ;;  %v13400_v35 = vld [vmem:[#allocation8 + $0x42c] ss:$40 sps:$4 sm:$0xff]   ;;  %v13403_v62 = vld [vmem:[#allocation8 + $0x123c] ss:$40 sps:$4 sm:$0xff]  }
 0x47e   :  { %v9016_v47 = vpop.f32.mrf.mxu0  ;;  %9319 = vmatprep.subr.bf16.mxu0 %v13367_v43  ;;  %v13401_v43 = vld [vmem:[#allocation8 + $0x1238] ss:$40 sps:$4 sm:$0xff]   ;;  %v13409_v23 = vld [vmem:[#allocation8 + $0x11ec] ss:$40 sps:$4 sm:$0xff]  }
 0x47f   :  { %v13410_v47 = vld [vmem:[#allocation8 + $0x388] ss:$40 sps:$4 sm:$0xff]  }
 0x480   :  { %9191 = vmatpush1.bf16.msra.mxu1 %v13362_v26  ;;  %v13404_v26 = vld [vmem:[#allocation8 + $0x3d8] ss:$40 sps:$4 sm:$0xff]  }
 0x481   :  { %9320 = vmatpush1.bf16.msra.mxu0 %v13365_v40  ;;  %9192 = vmatprep.subr.bf16.mxu1 %v13370_v27  ;;  %v13407_v40 = vld [vmem:[#allocation8 + $0x11e8] ss:$40 sps:$4 sm:$0xff]   ;;  %v13412_v27 = vld [vmem:[#allocation8 + $0x38c] ss:$40 sps:$4 sm:$0xff]  }
 0x482   :  { %9321 = vmatprep.subr.bf16.mxu0 %v13373_v50  ;;  %v13413_v50 = vld [vmem:[#allocation8 + $0x1198] ss:$40 sps:$4 sm:$0xff]  }
 0x483   :  { %v8888_v41 = vpop.f32.mrf.mxu1 }
 0x484   :  { %v14351_v11 = vadd.f32 %v8888_v41, %v8848_v19  ;;  %9193 = vmatpush1.bf16.msra.mxu1 %v13368_v39  ;;  %v13421_v39 = vld [vmem:[#allocation8 + $0x254] ss:$40 sps:$4 sm:$0xff]   ;;  %v13422_v41 = vld [vmem:[#allocation8 + $0x2e8] ss:$40 sps:$4 sm:$0xff]  }
 0x485   :  { %v8890_v49 = vpop.f32.mrf.mxu1  ;;  %9322 = vmatpush2.bf16.msra.mxu0 %v13371_v34  ;;  %9194 = vmatprep.subr.bf16.mxu1 %v13376_v53  ;;  %v13416_v34 = vld [vmem:[#allocation8 + $0x338] ss:$40 sps:$4 sm:$0xff]   ;;  %v13424_v19 = vld [vmem:[#allocation8 + $0x2ec] ss:$40 sps:$4 sm:$0xff]  }
 0x486   :  { %v14354_v56 = vadd.f32 %v8890_v49, %v8850_v37  ;;  %9323 = vmatprep.subr.bf16.mxu0 %v13379_v5  ;;  %v13419_v53 = vld [vmem:[#allocation8 + $0x250] ss:$40 sps:$4 sm:$0xff]   ;;  %v13427_v5 = vld [vmem:[#allocation8 + $0x204] ss:$40 sps:$4 sm:$0xff]   ;;  %v13425_v37 = vld [vmem:[#allocation8 + $0x200] ss:$40 sps:$4 sm:$0xff]  }
 0x487   :  { %v8892_v0 = vpop.f32.mrf.mxu1  ;;  %v13433_v49 = vld [vmem:[#allocation8 + $0x1b4] ss:$40 sps:$4 sm:$0xff]  }
 0x488   :  { %9195 = vmatpush1.bf16.msra.mxu1 %v13374_v45  ;;  %v13430_v45 = vld [vmem:[#allocation8 + $0x29c] ss:$40 sps:$4 sm:$0xff]  }
 0x489   :  { %v8893_v1 = vpop.f32.mrf.mxu1  ;;  %9324 = vmatpush2.bf16.msra.mxu0 %v13377_v55  ;;  %9196 = vmatprep.subr.bf16.mxu1 %v13382_v57  ;;  %v13428_v55 = vld [vmem:[#allocation8 + $0x298] ss:$40 sps:$4 sm:$0xff]   ;;  %v13439_v0 = vld [vmem:[#allocation8 + $0x164] ss:$40 sps:$4 sm:$0xff]  }
 0x48a   :  { %9325 = vmatprep.subr.bf16.mxu0 %v13385_v61  ;;  %v13431_v57 = vld [vmem:[#allocation8 + $0x1b0] ss:$40 sps:$4 sm:$0xff]   ;;  %v13436_v61 = vld [vmem:[#allocation8 + $0xc4c] ss:$40 sps:$4 sm:$0xff]   ;;  %v13437_v1 = vld [vmem:[#allocation8 + $0x160] ss:$40 sps:$4 sm:$0xff]  }
 0x48c   :  { %9197 = vmatpush1.bf16.msra.mxu1 %v13380_v28  ;;  %v13434_v28 = vld [vmem:[#allocation8 + $0xc48] ss:$40 sps:$4 sm:$0xff]  }
 0x48d   :  { %9326 = vmatpush2.bf16.msra.mxu0 %v13383_v20  ;;  %9198 = vmatprep.subr.bf16.mxu1 %v13388_v4  ;;  %v13442_v20 = vld [vmem:[#allocation8 + $0xbfc] ss:$40 sps:$4 sm:$0xff]  }
 0x48e   :  { %9327 = vmatprep.subr.bf16.mxu0 %v13391_v29  ;;  %v13445_v4 = vld [vmem:[#allocation8 + $0x114] ss:$40 sps:$4 sm:$0xff]  }
 0x490   :  { %9199 = vmatpush2.bf16.msra.mxu1 %v13386_v51 }
 0x491   :  { %9328 = vmatpush2.bf16.msra.mxu0 %v13389_v6  ;;  %9200 = vmatprep.subr.bf16.mxu1 %v13394_v58  ;;  %v8932_v6 = vadd.f32 %v14326_v63, %v14354_v56  ;;  %v13440_v58 = vld [vmem:[#allocation8 + $0xbf8] ss:$40 sps:$4 sm:$0xff]   ;;  %v13457_v63 = vld [vmem:[#allocation8 + $0x74] ss:$40 sps:$4 sm:$0xff]  }
 0x492   :  { %9329 = vmatprep.subr.bf16.mxu0 %v13397_v9 }
 0x494   :  { %9201 = vmatpush2.bf16.msra.mxu1 %v13392_v38  ;;  %v13443_v38 = vld [vmem:[#allocation8 + $0x110] ss:$40 sps:$4 sm:$0xff]  }
 0x495   :  { %9330 = vmatpush2.bf16.msra.mxu0 %v13395_v12  ;;  %9202 = vmatprep.subr.bf16.mxu1 %v13400_v35  ;;  %v13448_v12 = vld [vmem:[#allocation8 + $0xbac] ss:$40 sps:$4 sm:$0xff]  }
 0x496   :  { %9331 = vmatprep.subr.bf16.mxu0 %v13403_v62  ;;  %v13446_v62 = vld [vmem:[#allocation8 + $0xba8] ss:$40 sps:$4 sm:$0xff]  }
 0x498   :  { %9203 = vmatpush2.bf16.msra.mxu1 %v13398_v22 }
 0x499   :  { %9332 = vmatpush2.bf16.msra.mxu0 %v13401_v43  ;;  %9204 = vmatprep.subr.bf16.mxu1 %v13406_v25  ;;  %v13449_v43 = vld [vmem:[#allocation8 + $0xc0] ss:$40 sps:$4 sm:$0xff]   ;;  %v13454_v25 = vld [vmem:[#allocation8 + $0xb5c] ss:$40 sps:$4 sm:$0xff]  }
 0x49a   :  { %9333 = vmatprep.subr.bf16.mxu0 %v13409_v23  ;;  %v13452_v23 = vld [vmem:[#allocation8 + $0xb58] ss:$40 sps:$4 sm:$0xff]  }
 0x49c   :  { %9205 = vmatpush2.bf16.msra.mxu1 %v13404_v26  ;;  %v13455_v26 = vld [vmem:[#allocation8 + $0x70] ss:$40 sps:$4 sm:$0xff]  }
 0x49d   :  { %9334 = vmatpush2.bf16.msra.mxu0 %v13407_v40  ;;  %9206 = vmatprep.subr.bf16.mxu1 %v13412_v27  ;;  %v13460_v40 = vld [vmem:[#allocation8 + $0xb0c] ss:$40 sps:$4 sm:$0xff]  }
 0x49e   :  { %9335 = vmatprep.subr.bf16.mxu0 %v13415_v13  ;;  %v13463_v13 = vld [vmem:[#allocation8 + $0x24] ss:$40 sps:$4 sm:$0xff]  }
 0x4a0   :  { %9207 = vmatpush2.bf16.msra.mxu1 %v13410_v47 }
 0x4a1   :  { %9336 = vmatpush2.bf16.msra.mxu0 %v13413_v50  ;;  %9208 = vmatprep.subr.bf16.mxu1 %v13418_v30  ;;  %v13458_v50 = vld [vmem:[#allocation8 + $0xb08] ss:$40 sps:$4 sm:$0xff]  }
 0x4a2   :  { %9387 = vmatprep.subr.bf16.mxu0 %v13421_v39  ;;  %v13461_v30 = vld [vmem:[#allocation8 + $0x20] ss:$40 sps:$4 sm:$0xff]   ;;  %v13466_v39 = vld [vmem:[#allocation8 + $0xabc] ss:$40 sps:$4 sm:$0xff]  }
 0x4a4   :  { %9209 = vmatpush2.bf16.msra.mxu1 %v13416_v34  ;;  %9338 = vmatmul.mubr.bf16.vlgmr.msra.gmra.mxu0 %v14246_v10 }
 0x4a5   :  { %9388 = vmatpush1.bf16.msra.mxu0 %v13419_v53  ;;  %9419 = vmatprep.mubr.bf16.mxu0 %v14165_v52  ;;  %v8930_v52 = vadd.f32 %v14324_v16, %v14351_v11  ;;  %v13451_v11 = vld [vmem:[#allocation8 + $0xc4] ss:$40 sps:$4 sm:$0xff]   ;;  %v13469_v53 = vld [vmem:[#allocation8 + $0x4d4] ss:$40 sps:$4 sm:$0xff]  }
 0x4a6   :  { %9210 = vmatprep.subr.bf16.mxu1 %v13424_v19  ;;  %9389 = vmatprep.subr.bf16.mxu0 %v13427_v5  ;;  %v13464_v19 = vld [vmem:[#allocation8 + $0xab8] ss:$40 sps:$4 sm:$0xff]  }
 0x4a7   :  { %v13467_v5 = vld [vmem:[#allocation8 + $0x4d0] ss:$40 sps:$4 sm:$0xff]  }
 0x4a8   :  { %9211 = vmatpush2.bf16.msra.mxu1 %v13422_v41  ;;  %v13472_v41 = vld [vmem:[#allocation8 + $0xa6c] ss:$40 sps:$4 sm:$0xff]  }
 0x4a9   :  { %9390 = vmatpush1.bf16.msra.mxu0 %v13425_v37  ;;  %9212 = vmatprep.subr.bf16.mxu1 %v13430_v45  ;;  %v13475_v37 = vld [vmem:[#allocation8 + $0x484] ss:$40 sps:$4 sm:$0xff]   ;;  %v13470_v45 = vld [vmem:[#allocation8 + $0xa68] ss:$40 sps:$4 sm:$0xff]  }
 0x4aa   :  { %9391 = vmatprep.subr.bf16.mxu0 %v13433_v49  ;;  %v13473_v49 = vld [vmem:[#allocation8 + $0x480] ss:$40 sps:$4 sm:$0xff]  }
 0x4ac   :  { %9213 = vmatpush2.bf16.msra.mxu1 %v13428_v55  ;;  %v13478_v55 = vld [vmem:[#allocation8 + $0xa1c] ss:$40 sps:$4 sm:$0xff]  }
 0x4ad   :  { %9392 = vmatpush1.bf16.msra.mxu0 %v13431_v57  ;;  %9264 = vmatprep.subr.bf16.mxu1 %v13436_v61  ;;  %v13481_v57 = vld [vmem:[#allocation8 + $0x434] ss:$40 sps:$4 sm:$0xff]   ;;  %v13476_v61 = vld [vmem:[#allocation8 + $0xa18] ss:$40 sps:$4 sm:$0xff]  }
 0x4ae   :  { %9393 = vmatprep.subr.bf16.mxu0 %v13439_v0  ;;  %v13479_v0 = vld [vmem:[#allocation8 + $0x430] ss:$40 sps:$4 sm:$0xff]  }
 0x4af   :  { %v8970_v29 = vpop.f32.mrf.mxu1  ;;  %9215 = vmatmul.mubr.bf16.vlgmr.msra.gmra.mxu1 %v14189_v21 }
 0x4b0   :  { %v14361_v51 = vadd.f32 %v8970_v29, %v8930_v52  ;;  %9265 = vmatpush1.bf16.msra.mxu1 %v13434_v28  ;;  %9296 = vmatprep.mubr.bf16.mxu1 %v14200_v8  ;;  %v13484_v28 = vld [vmem:[#allocation8 + $0xecc] ss:$40 sps:$4 sm:$0xff]   ;;  %v13485_v52 = vld [vmem:[#allocation8 + $0x3e0] ss:$40 sps:$4 sm:$0xff]  }
 0x4b1   :  { %v8972_v9 = vpop.f32.mrf.mxu1  ;;  %9394 = vmatpush1.bf16.msra.mxu0 %v13437_v1  ;;  %9266 = vmatprep.subr.bf16.mxu1 %v13442_v20  ;;  %v13487_v1 = vld [vmem:[#allocation8 + $0x3e4] ss:$40 sps:$4 sm:$0xff]   ;;  %v13482_v20 = vld [vmem:[#allocation8 + $0xec8] ss:$40 sps:$4 sm:$0xff]   ;;  %v13493_v29 = vld [vmem:[#allocation8 + $0x394] ss:$40 sps:$4 sm:$0xff]  }
 0x4b2   :  { %v14366_v16 = vadd.f32 %v8972_v9, %v8932_v6  ;;  %9395 = vmatprep.subr.bf16.mxu0 %v13445_v4  ;;  %v13490_v4 = vld [vmem:[#allocation8 + $0xe7c] ss:$40 sps:$4 sm:$0xff]   ;;  %v13488_v6 = vld [vmem:[#allocation8 + $0xe78] ss:$40 sps:$4 sm:$0xff]   ;;  %v13496_v9 = vld [vmem:[#allocation8 + $0xe2c] ss:$40 sps:$4 sm:$0xff]  }
 0x4b3   :  { %v8974_v35 = vpop.f32.mrf.mxu1 }
 0x4b4   :  { %9267 = vmatpush1.bf16.msra.mxu1 %v13440_v58  ;;  %v13491_v58 = vld [vmem:[#allocation8 + $0x390] ss:$40 sps:$4 sm:$0xff]   ;;  %v13502_v35 = vld [vmem:[#allocation8 + $0xddc] ss:$40 sps:$4 sm:$0xff]  }
 0x4b5   :  { %v8975_v22 = vpop.f32.mrf.mxu1  ;;  %9396 = vmatpush1.bf16.msra.mxu0 %v13443_v38  ;;  %9268 = vmatprep.subr.bf16.mxu1 %v13448_v12  ;;  %v13499_v38 = vld [vmem:[#allocation8 + $0x344] ss:$40 sps:$4 sm:$0xff]   ;;  %v13494_v12 = vld [vmem:[#allocation8 + $0xe28] ss:$40 sps:$4 sm:$0xff]  }
 0x4b6   :  { %9397 = vmatprep.subr.bf16.mxu0 %v13451_v11  ;;  %v13497_v11 = vld [vmem:[#allocation8 + $0x340] ss:$40 sps:$4 sm:$0xff]  }
 0x4b7   :  { %v13500_v22 = vld [vmem:[#allocation8 + $0xdd8] ss:$40 sps:$4 sm:$0xff]  }
 0x4b8   :  { %v14368_v56 = vpop.f32.mrf.mxu0  ;;  %9269 = vmatpush1.bf16.msra.mxu1 %v13446_v62  ;;  %v13505_v62 = vld [vmem:[#allocation8 + $0x2f4] ss:$40 sps:$4 sm:$0xff]  }
 0x4b9   :  { %9398 = vmatpush1.bf16.msra.mxu0 %v13449_v43  ;;  %9270 = vmatprep.subr.bf16.mxu1 %v13454_v25  ;;  %v13503_v43 = vld [vmem:[#allocation8 + $0x2f0] ss:$40 sps:$4 sm:$0xff]   ;;  %v13508_v25 = vld [vmem:[#allocation8 + $0xd8c] ss:$40 sps:$4 sm:$0xff]  }
 0x4ba   :  { %v14370_v27 = vpop.f32.mrf.mxu0  ;;  %9399 = vmatprep.subr.bf16.mxu0 %v13457_v63  ;;  %v13511_v63 = vld [vmem:[#allocation8 + $0x2a4] ss:$40 sps:$4 sm:$0xff]  }
 0x4bc   :  { %v9097_v47 = vpop.f32.mrf.mxu0  ;;  %9271 = vmatpush1.bf16.msra.mxu1 %v13452_v23  ;;  %v13506_v23 = vld [vmem:[#allocation8 + $0xd88] ss:$40 sps:$4 sm:$0xff]  }
 0x4bd   :  { %9400 = vmatpush1.bf16.msra.mxu0 %v13455_v26  ;;  %9272 = vmatprep.subr.bf16.mxu1 %v13460_v40  ;;  %v13509_v26 = vld [vmem:[#allocation8 + $0x2a0] ss:$40 sps:$4 sm:$0xff]   ;;  %v13514_v40 = vld [vmem:[#allocation8 + $0xd3c] ss:$40 sps:$4 sm:$0xff]  }
 0x4be   :  { %v9098_v34 = vpop.f32.mrf.mxu0  ;;  %9401 = vmatprep.subr.bf16.mxu0 %v13463_v13  ;;  %v13517_v13 = vld [vmem:[#allocation8 + $0xc54] ss:$40 sps:$4 sm:$0xff]   ;;  %v13512_v47 = vld [vmem:[#allocation8 + $0xd38] ss:$40 sps:$4 sm:$0xff]  }
 0x4c0   :  { %9273 = vmatpush1.bf16.msra.mxu1 %v13458_v50  ;;  %v13515_v50 = vld [vmem:[#allocation8 + $0xc50] ss:$40 sps:$4 sm:$0xff]  }
 0x4c1   :  { %9402 = vmatpush1.bf16.msra.mxu0 %v13461_v30  ;;  %9274 = vmatprep.subr.bf16.mxu1 %v13466_v39  ;;  %v13520_v30 = vld [vmem:[#allocation8 + $0xcec] ss:$40 sps:$4 sm:$0xff]  }
 0x4c2   :  { %9403 = vmatprep.subr.bf16.mxu0 %v13469_v53  ;;  %v13523_v39 = vld [vmem:[#allocation8 + $0xc04] ss:$40 sps:$4 sm:$0xff]   ;;  %v13518_v53 = vld [vmem:[#allocation8 + $0xce8] ss:$40 sps:$4 sm:$0xff]  }
 0x4c4   :  { %9275 = vmatpush1.bf16.msra.mxu1 %v13464_v19  ;;  %v13521_v19 = vld [vmem:[#allocation8 + $0xc00] ss:$40 sps:$4 sm:$0xff]  }
 0x4c5   :  { %9404 = vmatpush2.bf16.msra.mxu0 %v13467_v5  ;;  %9276 = vmatprep.subr.bf16.mxu1 %v13472_v41  ;;  %v13526_v5 = vld [vmem:[#allocation8 + $0xc9c] ss:$40 sps:$4 sm:$0xff]  }
 0x4c6   :  { %9405 = vmatprep.subr.bf16.mxu0 %v13475_v37  ;;  %v13529_v37 = vld [vmem:[#allocation8 + $0xbb4] ss:$40 sps:$4 sm:$0xff]  }
 0x4c8   :  { %9277 = vmatpush1.bf16.msra.mxu1 %v13470_v45 }
 0x4c9   :  { %9406 = vmatpush2.bf16.msra.mxu0 %v13473_v49  ;;  %9278 = vmatprep.subr.bf16.mxu1 %v13478_v55  ;;  %v13524_v49 = vld [vmem:[#allocation8 + $0xc98] ss:$40 sps:$4 sm:$0xff]  }
 0x4ca   :  { %9407 = vmatprep.subr.bf16.mxu0 %v13481_v57  ;;  %v13527_v55 = vld [vmem:[#allocation8 + $0xbb0] ss:$40 sps:$4 sm:$0xff]   ;;  %v13532_v57 = vld [vmem:[#allocation8 + $0x164c] ss:$40 sps:$4 sm:$0xff]  }
 0x4cc   :  { %9279 = vmatpush1.bf16.msra.mxu1 %v13476_v61 }
 0x4cd   :  { %9408 = vmatpush2.bf16.msra.mxu0 %v13479_v0  ;;  %9280 = vmatprep.subr.bf16.mxu1 %v13484_v28  ;;  %v4786_v0 = vrot.slane %v14338_v17, %v632_v59  ;;  %v13530_v28 = vld [vmem:[#allocation8 + $0x1648] ss:$40 sps:$4 sm:$0xff]   ;;  %v13536_v59 = vld [vmem:[#allocation8 + $0x15f8] ss:$40 sps:$4 sm:$0xff]  }
 0x4ce   :  { %9409 = vmatprep.subr.bf16.mxu0 %v13487_v1  ;;  %v13533_v1 = vld [vmem:[#allocation8 + $0xb60] ss:$40 sps:$4 sm:$0xff]  }
 0x4d0   :  { %9281 = vmatpush2.bf16.msra.mxu1 %v13482_v20  ;;  %v13538_v20 = vld [vmem:[#allocation8 + $0x15fc] ss:$40 sps:$4 sm:$0xff]  }
 0x4d1   :  { %9410 = vmatpush2.bf16.msra.mxu0 %v13485_v52  ;;  %9282 = vmatprep.subr.bf16.mxu1 %v13490_v4  ;;  %v13541_v4 = vld [vmem:[#allocation8 + $0xb14] ss:$40 sps:$4 sm:$0xff]  }
 0x4d2   :  { %9411 = vmatprep.subr.bf16.mxu0 %v13493_v29 }
 0x4d4   :  { %9283 = vmatpush2.bf16.msra.mxu1 %v13488_v6 }
 0x4d5   :  { %9412 = vmatpush2.bf16.msra.mxu0 %v13491_v58  ;;  %9284 = vmatprep.subr.bf16.mxu1 %v13496_v9  ;;  %v13539_v58 = vld [vmem:[#allocation8 + $0xb10] ss:$40 sps:$4 sm:$0xff]   ;;  %v13544_v9 = vld [vmem:[#allocation8 + $0x15ac] ss:$40 sps:$4 sm:$0xff]  }
 0x4d6   :  { %9413 = vmatprep.subr.bf16.mxu0 %v13499_v38 }
 0x4d8   :  { %9285 = vmatpush2.bf16.msra.mxu1 %v13494_v12 }
 0x4d9   :  { %9414 = vmatpush2.bf16.msra.mxu0 %v13497_v11  ;;  %9286 = vmatprep.subr.bf16.mxu1 %v13502_v35 }
 0x4da   :  { %9415 = vmatprep.subr.bf16.mxu0 %v13505_v62 }
 0x4dc   :  { %9287 = vmatpush2.bf16.msra.mxu1 %v13500_v22  ;;  %v13545_v22 = vld [vmem:[#allocation8 + $0xac0] ss:$40 sps:$4 sm:$0xff]  }
 0x4dd   :  { %9416 = vmatpush2.bf16.msra.mxu0 %v13503_v43  ;;  %9288 = vmatprep.subr.bf16.mxu1 %v13508_v25  ;;  %v13550_v43 = vld [vmem:[#allocation8 + $0x155c] ss:$40 sps:$4 sm:$0xff]  }
 0x4de   :  { %9417 = vmatprep.subr.bf16.mxu0 %v13511_v63  ;;  %v13553_v25 = vld [vmem:[#allocation8 + $0xa74] ss:$40 sps:$4 sm:$0xff]   ;;  %v13548_v63 = vld [vmem:[#allocation8 + $0x1558] ss:$40 sps:$4 sm:$0xff]  }
 0x4e0   :  { %9289 = vmatpush2.bf16.msra.mxu1 %v13506_v23  ;;  %v13551_v23 = vld [vmem:[#allocation8 + $0xa70] ss:$40 sps:$4 sm:$0xff]  }
 0x4e1   :  { %9418 = vmatpush2.bf16.msra.mxu0 %v13509_v26  ;;  %9290 = vmatprep.subr.bf16.mxu1 %v13514_v40  ;;  %v13559_v26 = vld [vmem:[#allocation8 + $0xa24] ss:$40 sps:$4 sm:$0xff]   ;;  %v13554_v40 = vld [vmem:[#allocation8 + $0x1508] ss:$40 sps:$4 sm:$0xff]  }
 0x4e2   :  { %9469 = vmatprep.subr.bf16.mxu0 %v13517_v13  ;;  %v13562_v13 = vld [vmem:[#allocation8 + $0x14bc] ss:$40 sps:$4 sm:$0xff]  }
 0x4e4   :  { %v14372_v34 = vpop.f32.mrf.mxu0  ;;  %9291 = vmatpush2.bf16.msra.mxu1 %v13512_v47  ;;  %9420 = vmatmul.mubr.bf16.vlgmr.msra.gmra.mxu0 %v14189_v21  ;;  %v4782_v21 = vrot.slane %v14338_v17, %v628_v54  ;;  %v9014_v54 = vadd.f32 %v14343_v18, %v4786_v0  ;;  %v13542_v18 = vld [vmem:[#allocation8 + $0x15a8] ss:$40 sps:$4 sm:$0xff]   ;;  %v13565_v47 = vld [vmem:[#allocation8 + $0xed4] ss:$40 sps:$4 sm:$0xff]  }
 0x4e5   :  { %9470 = vmatpush1.bf16.msra.mxu0 %v13515_v50  ;;  %9501 = vmatprep.mubr.bf16.mxu0 %v14200_v8  ;;  %v13535_v8 = vld [vmem:[#allocation8 + $0xb64] ss:$40 sps:$4 sm:$0xff]   ;;  %v13560_v50 = vld [vmem:[#allocation8 + $0x14b8] ss:$40 sps:$4 sm:$0xff]  }
 0x4e6   :  { %v14376_v41 = vpop.f32.mrf.mxu0  ;;  %9292 = vmatprep.subr.bf16.mxu1 %v13520_v30  ;;  %9471 = vmatprep.subr.bf16.mxu0 %v13523_v39  ;;  %v9012_v52 = vadd.f32 %v14336_v60, %v4782_v21  ;;  %v13547_v60 = vld [vmem:[#allocation8 + $0xac4] ss:$40 sps:$4 sm:$0xff]   ;;  %v13563_v30 = vld [vmem:[#allocation8 + $0xed0] ss:$40 sps:$4 sm:$0xff]  }
 0x4e7   :  { %v13568_v39 = vld [vmem:[#allocation8 + $0x146c] ss:$40 sps:$4 sm:$0xff]  }
 0x4e8   :  { %v9179_v45 = vpop.f32.mrf.mxu0  ;;  %9293 = vmatpush2.bf16.msra.mxu1 %v13518_v53  ;;  %v13571_v53 = vld [vmem:[#allocation8 + $0xe84] ss:$40 sps:$4 sm:$0xff]  }
 0x4e9   :  { %9472 = vmatpush1.bf16.msra.mxu0 %v13521_v19  ;;  %9294 = vmatprep.subr.bf16.mxu1 %v13526_v5  ;;  %v13566_v19 = vld [vmem:[#allocation8 + $0x1468] ss:$40 sps:$4 sm:$0xff]   ;;  %v13577_v45 = vld [vmem:[#allocation8 + $0xe34] ss:$40 sps:$4 sm:$0xff]   ;;  %v13583_v21 = vld [vmem:[#allocation8 + $0xde4] ss:$40 sps:$4 sm:$0xff]  }
 0x4ea   :  { %v9180_v61 = vpop.f32.mrf.mxu0  ;;  %9473 = vmatprep.subr.bf16.mxu0 %v13529_v37  ;;  %v13569_v5 = vld [vmem:[#allocation8 + $0xe80] ss:$40 sps:$4 sm:$0xff]   ;;  %v13574_v37 = vld [vmem:[#allocation8 + $0x141c] ss:$40 sps:$4 sm:$0xff]   ;;  %v13586_v0 = vld [vmem:[#allocation8 + $0x16ec] ss:$40 sps:$4 sm:$0xff]  }
 0x4eb   :  { %v13578_v61 = vld [vmem:[#allocation8 + $0x1738] ss:$40 sps:$4 sm:$0xff]  }
 0x4ec   :  { %9295 = vmatpush2.bf16.msra.mxu1 %v13524_v49  ;;  %v13572_v49 = vld [vmem:[#allocation8 + $0x1418] ss:$40 sps:$4 sm:$0xff]  }
 0x4ed   :  { %9474 = vmatpush1.bf16.msra.mxu0 %v13527_v55  ;;  %9346 = vmatprep.subr.bf16.mxu1 %v13532_v57  ;;  %v13575_v55 = vld [vmem:[#allocation8 + $0xe30] ss:$40 sps:$4 sm:$0xff]   ;;  %v13580_v57 = vld [vmem:[#allocation8 + $0x173c] ss:$40 sps:$4 sm:$0xff]  }
 0x4ee   :  { %9475 = vmatprep.subr.bf16.mxu0 %v13535_v8  ;;  %v13581_v8 = vld [vmem:[#allocation8 + $0xde0] ss:$40 sps:$4 sm:$0xff]  }
 0x4ef   :  { %v9052_v29 = vpop.f32.mrf.mxu1  ;;  %9297 = vmatmul.mubr.bf16.vlgmr.msra.gmra.mxu1 %v14212_v3 }
 0x4f0   :  { %v9053_v6 = vadd.f32 %v9052_v29, %v9012_v52  ;;  %9347 = vmatpush1.bf16.msra.mxu1 %v13530_v28  ;;  %11689 = vmatprep.mubr.msk.bf16.mxu1 %vm8563_vm1, %v14268_v31  ;;  %v13589_v28 = vld [vmem:[#allocation8 + $0xd94] ss:$40 sps:$4 sm:$0xff]   ;;  %v13590_v29 = vld [vmem:[#allocation8 + $0x1698] ss:$40 sps:$4 sm:$0xff]  }
 0x4f1   :  { %v9054_v17 = vpop.f32.mrf.mxu1  ;;  %9476 = vmatpush1.bf16.msra.mxu0 %v13533_v1  ;;  %9348 = vmatprep.subr.bf16.mxu1 %v13538_v20  ;;  %v13584_v1 = vld [vmem:[#allocation8 + $0x16e8] ss:$40 sps:$4 sm:$0xff]   ;;  %v13592_v52 = vld [vmem:[#allocation8 + $0x169c] ss:$40 sps:$4 sm:$0xff]  }
 0x4f2   :  { %v9055_v38 = vadd.f32 %v9054_v17, %v9014_v54  ;;  %9477 = vmatprep.subr.bf16.mxu0 %v13541_v4  ;;  %v14390_v12 = vadd.f32 %v14368_v56, %v9053_v6  ;;  %v13556_v56 = vld [vmem:[#allocation8 + $0x150c] ss:$40 sps:$4 sm:$0xff]   ;;  %v13587_v20 = vld [vmem:[#allocation8 + $0xd90] ss:$40 sps:$4 sm:$0xff]   ;;  %v13593_v54 = vld [vmem:[#allocation8 + $0xd40] ss:$40 sps:$4 sm:$0xff]  }
 0x4f3   :  { %v9056_v11 = vpop.f32.mrf.mxu1  ;;  %v13595_v4 = vld [vmem:[#allocation8 + $0xd44] ss:$40 sps:$4 sm:$0xff]   ;;  %v13598_v6 = vld [vmem:[#allocation8 + $0x754] ss:$40 sps:$4 sm:$0xff]   ;;  %v13596_v17 = vld [vmem:[#allocation8 + $0x750] ss:$40 sps:$4 sm:$0xff]  }
 0x4f4   :  { %9349 = vmatpush1.bf16.msra.mxu1 %v13536_v59  ;;  %v14393_v35 = vadd.f32 %v14370_v27, %v9055_v38  ;;  %v13557_v27 = vld [vmem:[#allocation8 + $0xa20] ss:$40 sps:$4 sm:$0xff]   ;;  %v13601_v59 = vld [vmem:[#allocation8 + $0xcf4] ss:$40 sps:$4 sm:$0xff]   ;;  %v13607_v38 = vld [vmem:[#allocation8 + $0xca4] ss:$40 sps:$4 sm:$0xff]  }
 0x4f5   :  { %v9057_v62 = vpop.f32.mrf.mxu1  ;;  %9478 = vmatpush1.bf16.msra.mxu0 %v13539_v58  ;;  %9350 = vmatprep.subr.bf16.mxu1 %v13544_v9  ;;  %v13599_v58 = vld [vmem:[#allocation8 + $0xcf0] ss:$40 sps:$4 sm:$0xff]   ;;  %v13604_v9 = vld [vmem:[#allocation8 + $0x704] ss:$40 sps:$4 sm:$0xff]   ;;  %v13605_v11 = vld [vmem:[#allocation8 + $0xca0] ss:$40 sps:$4 sm:$0xff]  }
 0x4f6   :  { %9479 = vmatprep.subr.bf16.mxu0 %v13547_v60  ;;  %v13602_v60 = vld [vmem:[#allocation8 + $0x700] ss:$40 sps:$4 sm:$0xff]   ;;  %v13613_v62 = vld [vmem:[#allocation8 + $0x1654] ss:$40 sps:$4 sm:$0xff]  }
 0x4f8   :  { %9351 = vmatpush1.bf16.msra.mxu1 %v13542_v18  ;;  %v13610_v18 = vld [vmem:[#allocation8 + $0x6b4] ss:$40 sps:$4 sm:$0xff]  }
 0x4f9   :  { %9480 = vmatpush1.bf16.msra.mxu0 %v13545_v22  ;;  %9352 = vmatprep.subr.bf16.mxu1 %v13550_v43  ;;  %v13608_v22 = vld [vmem:[#allocation8 + $0x6b0] ss:$40 sps:$4 sm:$0xff]  }
 0x4fa   :  { %9481 = vmatprep.subr.bf16.mxu0 %v13553_v25  ;;  %v13611_v43 = vld [vmem:[#allocation8 + $0x1650] ss:$40 sps:$4 sm:$0xff]   ;;  %v13616_v25 = vld [vmem:[#allocation8 + $0x664] ss:$40 sps:$4 sm:$0xff]  }
 0x4fc   :  { %9353 = vmatpush1.bf16.msra.mxu1 %v13548_v63  ;;  %v13619_v63 = vld [vmem:[#allocation8 + $0x1604] ss:$40 sps:$4 sm:$0xff]  }
 0x4fd   :  { %9482 = vmatpush1.bf16.msra.mxu0 %v13551_v23  ;;  %9354 = vmatprep.subr.bf16.mxu1 %v13556_v56  ;;  %v13617_v56 = vld [vmem:[#allocation8 + $0x1600] ss:$40 sps:$4 sm:$0xff]  }
 0x4fe   :  { %9483 = vmatprep.subr.bf16.mxu0 %v13559_v26  ;;  %v13622_v26 = vld [vmem:[#allocation8 + $0x614] ss:$40 sps:$4 sm:$0xff]  }
 0x500   :  { %9355 = vmatpush1.bf16.msra.mxu1 %v13554_v40 }
 0x501   :  { %9484 = vmatpush1.bf16.msra.mxu0 %v13557_v27  ;;  %9356 = vmatprep.subr.bf16.mxu1 %v13562_v13  ;;  %v13625_v27 = vld [vmem:[#allocation8 + $0x15b4] ss:$40 sps:$4 sm:$0xff]  }
 0x502   :  { %9485 = vmatprep.subr.bf16.mxu0 %v13565_v47  ;;  %v13620_v47 = vld [vmem:[#allocation8 + $0x610] ss:$40 sps:$4 sm:$0xff]  }
 0x504   :  { %9357 = vmatpush1.bf16.msra.mxu1 %v13560_v50  ;;  %v13623_v50 = vld [vmem:[#allocation8 + $0x15b0] ss:$40 sps:$4 sm:$0xff]  }
 0x505   :  { %9486 = vmatpush2.bf16.msra.mxu0 %v13563_v30  ;;  %9358 = vmatprep.subr.bf16.mxu1 %v13568_v39  ;;  %v13628_v30 = vld [vmem:[#allocation8 + $0x5c4] ss:$40 sps:$4 sm:$0xff]  }
 0x506   :  { %9487 = vmatprep.subr.bf16.mxu0 %v13571_v53  ;;  %v13631_v39 = vld [vmem:[#allocation8 + $0x1564] ss:$40 sps:$4 sm:$0xff]   ;;  %v13626_v53 = vld [vmem:[#allocation8 + $0x5c0] ss:$40 sps:$4 sm:$0xff]  }
 0x508   :  { %9359 = vmatpush1.bf16.msra.mxu1 %v13566_v19  ;;  %v13634_v19 = vld [vmem:[#allocation8 + $0x574] ss:$40 sps:$4 sm:$0xff]  }
 0x509   :  { %9488 = vmatpush2.bf16.msra.mxu0 %v13569_v5  ;;  %9360 = vmatprep.subr.bf16.mxu1 %v13574_v37  ;;  %v13637_v5 = vld [vmem:[#allocation8 + $0x1514] ss:$40 sps:$4 sm:$0xff]  }
 0x50a   :  { %9489 = vmatprep.subr.bf16.mxu0 %v13577_v45 }
 0x50c   :  { %9361 = vmatpush1.bf16.msra.mxu1 %v13572_v49  ;;  %v13632_v49 = vld [vmem:[#allocation8 + $0x570] ss:$40 sps:$4 sm:$0xff]  }
 0x50d   :  { %9490 = vmatpush2.bf16.msra.mxu0 %v13575_v55  ;;  %9372 = vmatprep.subr.bf16.mxu1 %v13580_v57  ;;  %v13635_v57 = vld [vmem:[#allocation8 + $0x1510] ss:$40 sps:$4 sm:$0xff]  }
 0x50e   :  { %9491 = vmatprep.subr.bf16.mxu0 %v13583_v21  ;;  %v13640_v21 = vld [vmem:[#allocation8 + $0x524] ss:$40 sps:$4 sm:$0xff]  }
 0x510   :  { %9373 = vmatpush2.bf16.msra.mxu1 %v13578_v61 }
 0x511   :  { %9492 = vmatpush2.bf16.msra.mxu0 %v13581_v8  ;;  %9374 = vmatprep.subr.bf16.mxu1 %v13586_v0  ;;  %v13643_v8 = vld [vmem:[#allocation8 + $0x14c4] ss:$40 sps:$4 sm:$0xff]  }
 0x512   :  { %9493 = vmatprep.subr.bf16.mxu0 %v13589_v28  ;;  %v13638_v28 = vld [vmem:[#allocation8 + $0x520] ss:$40 sps:$4 sm:$0xff]  }
 0x514   :  { %9375 = vmatpush2.bf16.msra.mxu1 %v13584_v1 }
 0x515   :  { %9494 = vmatpush2.bf16.msra.mxu0 %v13587_v20  ;;  %9376 = vmatprep.subr.bf16.mxu1 %v13592_v52  ;;  %v13646_v20 = vld [vmem:[#allocation8 + $0x9d4] ss:$40 sps:$4 sm:$0xff]  }
 0x516   :  { %9495 = vmatprep.subr.bf16.mxu0 %v13595_v4  ;;  %v13649_v52 = vld [vmem:[#allocation8 + $0x1474] ss:$40 sps:$4 sm:$0xff]   ;;  %v13644_v4 = vld [vmem:[#allocation8 + $0x9d0] ss:$40 sps:$4 sm:$0xff]  }
 0x518   :  { %9377 = vmatpush2.bf16.msra.mxu1 %v13590_v29  ;;  %v13647_v29 = vld [vmem:[#allocation8 + $0x1470] ss:$40 sps:$4 sm:$0xff]  }
 0x519   :  { %9496 = vmatpush2.bf16.msra.mxu0 %v13593_v54  ;;  %9428 = vmatprep.subr.bf16.mxu1 %v13598_v6  ;;  %v13652_v54 = vld [vmem:[#allocation8 + $0x984] ss:$40 sps:$4 sm:$0xff]   ;;  %v13650_v6 = vld [vmem:[#allocation8 + $0x980] ss:$40 sps:$4 sm:$0xff]  }
 0x51a   :  { %9497 = vmatprep.subr.bf16.mxu0 %v13601_v59  ;;  %v13653_v59 = vld [vmem:[#allocation8 + $0x1420] ss:$40 sps:$4 sm:$0xff]  }
 0x51b   :  { %9379 = vmatmul.mubr.bf16.vlgmr.msra.gmra.mxu1 %v14270_v36 }
 0x51c   :  { %9429 = vmatpush1.bf16.msra.mxu1 %v13596_v17  ;;  %9460 = vmatprep.mubr.bf16.mxu1 %v14198_v7  ;;  %v13614_v7 = vld [vmem:[#allocation8 + $0x660] ss:$40 sps:$4 sm:$0xff]   ;;  %v13658_v17 = vld [vmem:[#allocation8 + $0x934] ss:$40 sps:$4 sm:$0xff]  }
 0x51d   :  { %9498 = vmatpush2.bf16.msra.mxu0 %v13599_v58  ;;  %9430 = vmatprep.subr.bf16.mxu1 %v13604_v9  ;;  %v13661_v58 = vld [vmem:[#allocation8 + $0x1744] ss:$40 sps:$4 sm:$0xff]   ;;  %v13656_v9 = vld [vmem:[#allocation8 + $0x930] ss:$40 sps:$4 sm:$0xff]  }
 0x51e   :  { %9499 = vmatprep.subr.bf16.mxu0 %v13607_v38  ;;  %v13659_v38 = vld [vmem:[#allocation8 + $0x1740] ss:$40 sps:$4 sm:$0xff]  }
 0x520   :  { %9431 = vmatpush1.bf16.msra.mxu1 %v13602_v60  ;;  %v13664_v60 = vld [vmem:[#allocation8 + $0x8e4] ss:$40 sps:$4 sm:$0xff]  }
 0x521   :  { %9500 = vmatpush2.bf16.msra.mxu0 %v13605_v11  ;;  %9432 = vmatprep.subr.bf16.mxu1 %v13610_v18  ;;  %v13667_v11 = vld [vmem:[#allocation8 + $0x16f4] ss:$40 sps:$4 sm:$0xff]   ;;  %v13662_v18 = vld [vmem:[#allocation8 + $0x8e0] ss:$40 sps:$4 sm:$0xff]  }
 0x522   :  { %9551 = vmatprep.subr.bf16.mxu0 %v13613_v62  ;;  %v13665_v62 = vld [vmem:[#allocation8 + $0x16f0] ss:$40 sps:$4 sm:$0xff]  }
 0x524   :  { %v14397_v23 = vpop.f32.mrf.mxu0  ;;  %9433 = vmatpush1.bf16.msra.mxu1 %v13608_v22  ;;  %9502 = vmatmul.mubr.bf16.vlgmr.msra.gmra.mxu0 %v14212_v3  ;;  %v13670_v22 = vld [vmem:[#allocation8 + $0x894] ss:$40 sps:$4 sm:$0xff]  }
 0x525   :  { %9552 = vmatpush1.bf16.msra.mxu0 %v13611_v43  ;;  %11690 = vmatprep.mubr.msk.bf16.mxu0 %vm8563_vm1, %v14268_v31  ;;  %v13629_v31 = vld [vmem:[#allocation8 + $0x1560] ss:$40 sps:$4 sm:$0xff]   ;;  %v13673_v43 = vld [vmem:[#allocation8 + $0x16a4] ss:$40 sps:$4 sm:$0xff]  }
 0x526   :  { %v14402_v40 = vpop.f32.mrf.mxu0  ;;  %9434 = vmatprep.subr.bf16.mxu1 %v13616_v25  ;;  %9553 = vmatprep.subr.bf16.mxu0 %v13619_v63  ;;  %v13668_v25 = vld [vmem:[#allocation8 + $0x890] ss:$40 sps:$4 sm:$0xff]   ;;  %v13671_v63 = vld [vmem:[#allocation8 + $0x16a0] ss:$40 sps:$4 sm:$0xff]  }
 0x528   :  { %v9261_v13 = vpop.f32.mrf.mxu0  ;;  %9435 = vmatpush1.bf16.msra.mxu1 %v13614_v7  ;;  %v13676_v7 = vld [vmem:[#allocation8 + $0x844] ss:$40 sps:$4 sm:$0xff]  }
 0x529   :  { %9554 = vmatpush1.bf16.msra.mxu0 %v13617_v56  ;;  %9436 = vmatprep.subr.bf16.mxu1 %v13622_v26  ;;  %v13677_v56 = vld [vmem:[#allocation11 + $0xf8] sm:$0xff]   ;;  %v9595_v26 = vmax.f32 %v14366_v16, 0.0  ;;  %v13687_v16 = vld [vmem:[#allocation11 + $0xe8] sm:$0xff]  }
 0x52a   :  { %v9262_v3 = vpop.f32.mrf.mxu0  ;;  %9555 = vmatprep.subr.bf16.mxu0 %v13625_v27  ;;  %v13674_v27 = vld [vmem:[#allocation8 + $0x840] ss:$40 sps:$4 sm:$0xff]   ;;  %v13678_v13 = vld [vmem:[#allocation11 + $0xb8] sm:$0xff]  }
 0x52b   :  { %v13679_v3 = vld [vmem:[#allocation8 + $0x7f0] ss:$40 sps:$4 sm:$0xff]  }
 0x52c   :  { %9437 = vmatpush1.bf16.msra.mxu1 %v13620_v47  ;;  %v13681_v47 = vld [vmem:[#allocation8 + $0x7f4] ss:$40 sps:$4 sm:$0xff]  }
 0x52d   :  { %9556 = vmatpush1.bf16.msra.mxu0 %v13623_v50  ;;  %9438 = vmatprep.subr.bf16.mxu1 %v13628_v30  ;;  %v13682_v50 = vld [vmem:[#allocation11 + $0xf0] sm:$0xff]   ;;  %v9605_v30 = vpack.c.bf16 %v9595_v26, %v9595_v26  ;;  %v13777_v26 = vld [vmem:[#allocation11 + $0x1e8] sm:$0xff]  }
 0x52e   :  { %9557 = vmatprep.subr.bf16.mxu0 %v13631_v39  ;;  %v13683_v39 = vld [vmem:[#allocation11 + $0xb0] sm:$0xff]  }
 0x52f   :  { %v9134_v37 = vpop.f32.mrf.mxu1 }
 0x530   :  { %v14405_v45 = vadd.f32 %v9134_v37, %v14390_v12  ;;  %9439 = vmatpush1.bf16.msra.mxu1 %v13626_v53  ;;  %v13641_v12 = vld [vmem:[#allocation8 + $0x14c0] ss:$40 sps:$4 sm:$0xff]   ;;  %v13686_v53 = vld [vmem:[#allocation8 + $0x7a4] ss:$40 sps:$4 sm:$0xff]  }
 0x531   :  { %v9136_v55 = vpop.f32.mrf.mxu1  ;;  %9558 = vmatpush1.bf16.msra.mxu0 %v13629_v31  ;;  %9440 = vmatprep.subr.bf16.mxu1 %v13634_v19  ;;  %v13684_v31 = vld [vmem:[#allocation8 + $0x7a0] ss:$40 sps:$4 sm:$0xff]  }
 0x532   :  { %v14408_v61 = vadd.f32 %v9136_v55, %v14393_v35  ;;  %9559 = vmatprep.subr.bf16.mxu0 %v13637_v5  ;;  %v13655_v35 = vld [vmem:[#allocation8 + $0x1424] ss:$40 sps:$4 sm:$0xff]   ;;  %v13691_v5 = vld [vmem:[#allocation8 + $0x1154] ss:$40 sps:$4 sm:$0xff]  }
 0x533   :  { %v9138_v0 = vpop.f32.mrf.mxu1  ;;  %v13688_v19 = vld [vmem:[#allocation11 + $0xa8] sm:$0xff]   ;;  %v13692_v37 = vld [vmem:[#allocation11 + $0xe0] sm:$0xff]  }
 0x534   :  { %9441 = vmatpush1.bf16.msra.mxu1 %v13632_v49  ;;  %v13689_v49 = vld [vmem:[#allocation8 + $0x1150] ss:$40 sps:$4 sm:$0xff]   ;;  %v13696_v55 = vld [vmem:[#allocation8 + $0x1104] ss:$40 sps:$4 sm:$0xff]   ;;  %v13701_v0 = vld [vmem:[#allocation8 + $0x10b4] ss:$40 sps:$4 sm:$0xff]  }
 0x535   :  { %v9139_v1 = vpop.f32.mrf.mxu1  ;;  %9560 = vmatpush1.bf16.msra.mxu0 %v13635_v57  ;;  %9442 = vmatprep.subr.bf16.mxu1 %v13640_v21  ;;  %v13697_v57 = vld [vmem:[#allocation11 + $0xd8] sm:$0xff]   ;;  %v13694_v21 = vld [vmem:[#allocation8 + $0x1100] ss:$40 sps:$4 sm:$0xff]  }
 0x536   :  { %9561 = vmatprep.subr.bf16.mxu0 %v13643_v8  ;;  %v13698_v8 = vld [vmem:[#allocation11 + $0x98] sm:$0xff]  }
 0x537   :  { %v13699_v1 = vld [vmem:[#allocation8 + $0x10b0] ss:$40 sps:$4 sm:$0xff]  }
 0x538   :  { %9443 = vmatpush1.bf16.msra.mxu1 %v13638_v28  ;;  %v13702_v28 = vld [vmem:[#allocation11 + $0xd0] sm:$0xff]  }
 0x539   :  { %9562 = vmatpush1.bf16.msra.mxu0 %v13641_v12  ;;  %9444 = vmatprep.subr.bf16.mxu1 %v13646_v20  ;;  %v13703_v12 = vld [vmem:[#allocation11 + $0x90] sm:$0xff]  }
 0x53a   :  { %9563 = vmatprep.subr.bf16.mxu0 %v13649_v52  ;;  %v13706_v20 = vld [vmem:[#allocation8 + $0x1064] ss:$40 sps:$4 sm:$0xff]  }
 0x53b   :  { %v13707_v52 = vld [vmem:[#allocation11 + $0xc8] sm:$0xff]  }
 0x53c   :  { %9445 = vmatpush2.bf16.msra.mxu1 %v13644_v4 }
 0x53d   :  { %9564 = vmatpush1.bf16.msra.mxu0 %v13647_v29  ;;  %9446 = vmatprep.subr.bf16.mxu1 %v13652_v54  ;;  %v13711_v29 = vld [vmem:[#allocation8 + $0x1014] ss:$40 sps:$4 sm:$0xff]  }
 0x53e   :  { %9565 = vmatprep.subr.bf16.mxu0 %v13655_v35  ;;  %v13712_v35 = vld [vmem:[#allocation11 + $0xc0] sm:$0xff]  }
 0x540   :  { %9447 = vmatpush2.bf16.msra.mxu1 %v13650_v6 }
 0x541   :  { %9566 = vmatpush1.bf16.msra.mxu0 %v13653_v59  ;;  %9448 = vmatprep.subr.bf16.mxu1 %v13658_v17  ;;  %v13709_v59 = vld [vmem:[#allocation8 + $0x1010] ss:$40 sps:$4 sm:$0xff]  }
 0x542   :  { %9577 = vmatprep.subr.bf16.mxu0 %v13661_v58  ;;  %v13713_v17 = vld [vmem:[#allocation11 + $0x80] sm:$0xff]   ;;  %v13716_v58 = vld [vmem:[#allocation8 + $0xfc4] ss:$40 sps:$4 sm:$0xff]  }
 0x544   :  { %9449 = vmatpush2.bf16.msra.mxu1 %v13656_v9  ;;  %v9594_v9 = vmax.f32 %v14361_v51, 0.0  ;;  %v13722_v51 = vld [vmem:[#allocation8 + $0xf24] ss:$40 sps:$4 sm:$0xff]  }
 0x545   :  { %9578 = vmatpush2.bf16.msra.mxu0 %v13659_v38  ;;  %9450 = vmatprep.subr.bf16.mxu1 %v13664_v60  ;;  %v13769_v60 = vld [vmem:[#allocation11 + $0x1f8] sm:$0xff]  }
 0x546   :  { %9579 = vmatprep.subr.bf16.mxu0 %v13667_v11  ;;  %v13714_v11 = vld [vmem:[#allocation8 + $0xfc0] ss:$40 sps:$4 sm:$0xff]  }
 0x548   :  { %9451 = vmatpush2.bf16.msra.mxu1 %v13662_v18  ;;  %v13719_v18 = vld [vmem:[#allocation8 + $0xf74] ss:$40 sps:$4 sm:$0xff]  }
 0x549   :  { %9580 = vmatpush2.bf16.msra.mxu0 %v13665_v62  ;;  %9452 = vmatprep.subr.bf16.mxu1 %v13670_v22  ;;  %v13770_v62 = vld [vmem:[#allocation11 + $0x1b8] sm:$0xff]   ;;  %v9604_v22 = vpack.c.bf16 %v9594_v9, %v9594_v9  ;;  %v13749_v9 = vld [vmem:[#allocation11 + $0x70] sm:$0xff]  }
 0x54a   :  { %9581 = vmatprep.subr.bf16.mxu0 %v13673_v43  ;;  %v13773_v43 = vld [vmem:[#allocation11 + $0x1f0] sm:$0xff]  }
 0x54c   :  { %9453 = vmatpush2.bf16.msra.mxu1 %v13668_v25 }
 0x54d   :  { %9582 = vmatpush2.bf16.msra.mxu0 %v13671_v63  ;;  %9454 = vmatprep.subr.bf16.mxu1 %v13676_v7  ;;  %v13717_v63 = vld [vmem:[#allocation8 + $0xf70] ss:$40 sps:$4 sm:$0xff]  }
 0x54e   :  { %11790 = vmatprep.subr.bf16.mxu0 %v13677_v56  ;;  %v13774_v56 = vld [vmem:[#allocation11 + $0x1b0] sm:$0xff]  }
 0x550   :  { %9455 = vmatpush2.bf16.msra.mxu1 %v13674_v27  ;;  %9584 = vmatmul.mubr.bf16.vlgmr.msra.gmra.mxu0 %v14270_v36  ;;  %v13693_v36 = vld [vmem:[#allocation11 + $0xa0] sm:$0xff]  }
 0x551   :  { %11791 = vmatpush3.bf16.msra.mxu0 %v13678_v13  ;;  %10294 = vmatprep.mubr.bf16.mxu0 %v9605_v30  ;;  %v13720_v13 = vld [vmem:[#allocation8 + $0xf20] ss:$40 sps:$4 sm:$0xff]  }
 0x552   :  { %9456 = vmatprep.subr.bf16.mxu1 %v13681_v47  ;;  %11792 = vmatprep.subr.bf16.mxu0 %v13682_v50  ;;  %v13725_v50 = vld [vmem:[#allocation8 + $0x13d4] ss:$40 sps:$4 sm:$0xff]   ;;  %v13778_v30 = vld [vmem:[#allocation11 + $0x1a8] sm:$0xff]  }
 0x554   :  { %9457 = vmatpush2.bf16.msra.mxu1 %v13679_v3  ;;  %v13781_v3 = vld [vmem:[#allocation11 + $0x1e0] sm:$0xff]  }
 0x555   :  { %11793 = vmatpush3.bf16.msra.mxu0 %v13683_v39  ;;  %9458 = vmatprep.subr.bf16.mxu1 %v13686_v53  ;;  %v13723_v39 = vld [vmem:[#allocation8 + $0x13d0] ss:$40 sps:$4 sm:$0xff]   ;;  %v13728_v53 = vld [vmem:[#allocation8 + $0x1384] ss:$40 sps:$4 sm:$0xff]  }
 0x556   :  { %11794 = vmatprep.subr.bf16.mxu0 %v13687_v16  ;;  %v13782_v16 = vld [vmem:[#allocation11 + $0x1a0] sm:$0xff]  }
 0x558   :  { %9459 = vmatpush2.bf16.msra.mxu1 %v13684_v31  ;;  %v13785_v31 = vld [vmem:[#allocation11 + $0x1d8] sm:$0xff]  }
 0x559   :  { %11795 = vmatpush3.bf16.msra.mxu0 %v13688_v19  ;;  %9510 = vmatprep.subr.bf16.mxu1 %v13691_v5  ;;  %v13726_v19 = vld [vmem:[#allocation8 + $0x1380] ss:$40 sps:$4 sm:$0xff]   ;;  %v13731_v5 = vld [vmem:[#allocation8 + $0x1334] ss:$40 sps:$4 sm:$0xff]  }
 0x55a   :  { %11796 = vmatprep.subr.bf16.mxu0 %v13692_v37  ;;  %v13786_v37 = vld [vmem:[#allocation11 + $0x198] sm:$0xff]  }
 0x55b   :  { %9461 = vmatmul.mubr.bf16.vlgmr.msra.gmra.mxu1 %v14227_v48  ;;  %v13704_v48 = vld [vmem:[#allocation8 + $0x1060] ss:$40 sps:$4 sm:$0xff]  }
 0x55c   :  { %9511 = vmatpush1.bf16.msra.mxu1 %v13689_v49  ;;  %9542 = vmatprep.mubr.bf16.mxu1 %v14233_v14  ;;  %v13708_v14 = vld [vmem:[#allocation11 + $0x88] sm:$0xff]   ;;  %v13789_v49 = vld [vmem:[#allocation11 + $0x1d0] sm:$0xff]  }
 0x55d   :  { %11797 = vmatpush3.bf16.msra.mxu0 %v13693_v36  ;;  %9512 = vmatprep.subr.bf16.mxu1 %v13696_v55  ;;  %v13729_v36 = vld [vmem:[#allocation8 + $0x1330] ss:$40 sps:$4 sm:$0xff]   ;;  %v13734_v55 = vld [vmem:[#allocation8 + $0x12e4] ss:$40 sps:$4 sm:$0xff]  }
 0x55e   :  { %11798 = vmatprep.subr.bf16.mxu0 %v13697_v57  ;;  %v13790_v57 = vld [vmem:[#allocation11 + $0x190] sm:$0xff]  }
 0x560   :  { %9513 = vmatpush1.bf16.msra.mxu1 %v13694_v21  ;;  %v13791_v21 = vld [vmem:[#allocation11 + $0x1c8] sm:$0xff]  }
 0x561   :  { %11799 = vmatpush3.bf16.msra.mxu0 %v13698_v8  ;;  %9514 = vmatprep.subr.bf16.mxu1 %v13701_v0  ;;  %v13732_v8 = vld [vmem:[#allocation8 + $0x12e0] ss:$40 sps:$4 sm:$0xff]   ;;  %v13737_v0 = vld [vmem:[#allocation8 + $0x1294] ss:$40 sps:$4 sm:$0xff]  }
 0x562   :  { %11800 = vmatprep.subr.bf16.mxu0 %v13702_v28  ;;  %v13792_v28 = vld [vmem:[#allocation11 + $0x188] sm:$0xff]  }
 0x564   :  { %v14414_v4 = vpop.f32.mrf.mxu0  ;;  %9515 = vmatpush1.bf16.msra.mxu1 %v13699_v1  ;;  %v13793_v1 = vld [vmem:[#allocation11 + $0x1c0] sm:$0xff]  }
 0x565   :  { %11801 = vmatpush3.bf16.msra.mxu0 %v13703_v12  ;;  %9516 = vmatprep.subr.bf16.mxu1 %v13706_v20  ;;  %v13735_v12 = vld [vmem:[#allocation8 + $0x1290] ss:$40 sps:$4 sm:$0xff]   ;;  %v13740_v20 = vld [vmem:[#allocation8 + $0x1244] ss:$40 sps:$4 sm:$0xff]  }
 0x566   :  { %v14416_v54 = vpop.f32.mrf.mxu0  ;;  %11802 = vmatprep.subr.bf16.mxu0 %v13707_v52  ;;  %v13794_v52 = vld [vmem:[#allocation11 + $0x180] sm:$0xff]  }
 0x568   :  { %v9343_v6 = vpop.f32.mrf.mxu0  ;;  %9517 = vmatpush1.bf16.msra.mxu1 %v13704_v48  ;;  %v13738_v48 = vld [vmem:[#allocation8 + $0x1240] ss:$40 sps:$4 sm:$0xff]  }
 0x569   :  { %11803 = vmatpush3.bf16.msra.mxu0 %v13708_v14  ;;  %9518 = vmatprep.subr.bf16.mxu1 %v13711_v29  ;;  %v13743_v14 = vld [vmem:[#allocation8 + $0x11f4] ss:$40 sps:$4 sm:$0xff]   ;;  %v13741_v29 = vld [vmem:[#allocation8 + $0x11f0] ss:$40 sps:$4 sm:$0xff]   ;;  %v13744_v6 = vld [vmem:[#allocation8 + $0x11a0] ss:$40 sps:$4 sm:$0xff]  }
 0x56a   :  { %v9344_v38 = vpop.f32.mrf.mxu0  ;;  %11804 = vmatprep.subr.bf16.mxu0 %v13712_v35  ;;  %v13746_v35 = vld [vmem:[#allocation8 + $0x11a4] ss:$40 sps:$4 sm:$0xff]  }
 0x56c   :  { %9519 = vmatpush1.bf16.msra.mxu1 %v13709_v59  ;;  %v13747_v59 = vld [vmem:[#allocation11 + $0x78] sm:$0xff]  }
 0x56d   :  { %11805 = vmatpush3.bf16.msra.mxu0 %v13713_v17  ;;  %9520 = vmatprep.subr.bf16.mxu1 %v13716_v58  ;;  %v9593_v17 = vmax.f32 %v14318_v2, 0.0  ;;  %v13748_v58 = vld [vmem:[#allocation11 + $0x38] sm:$0xff]   ;;  %v13754_v2 = vld [vmem:[#allocation11 + $0x20] sm:$0xff]  }
 0x56e   :  { %11834 = vmatprep.subr.bf16.mxu0 %v13769_v60  ;;  %v13750_v60 = vld [vmem:[#allocation11 + $0x30] sm:$0xff]  }
 0x56f   :  { %v14419_v25 = vpop.f32.mrf.mxu1  ;;  %v9603_v38 = vpack.c.bf16 %v9593_v17, %v9593_v17 }
 0x570   :  { %9521 = vmatpush1.bf16.msra.mxu1 %v13714_v11  ;;  %10295 = vmatmul.mubr.bf16.vlgmr.msra.gmra.mxu0 %v9604_v22  ;;  %v13751_v11 = vld [vmem:[#allocation11 + $0x68] sm:$0xff]  }
 0x571   :  { %v14421_v7 = vpop.f32.mrf.mxu1  ;;  %9522 = vmatprep.subr.bf16.mxu1 %v13719_v18  ;;  %11835 = vmatpush3.bf16.msra.mxu0 %v13770_v62  ;;  %v13752_v18 = vld [vmem:[#allocation11 + $0x28] sm:$0xff]   ;;  %v13753_v62 = vld [vmem:[#allocation11 + $0x60] sm:$0xff]  }
 0x572   :  { %11836 = vmatprep.subr.bf16.mxu0 %v13773_v43  ;;  %v13755_v43 = vld [vmem:[#allocation11 + $0x58] sm:$0xff]  }
 0x573   :  { %v9220_v27 = vpop.f32.mrf.mxu1 }
 0x574   :  { %9523 = vmatpush1.bf16.msra.mxu1 %v13717_v63  ;;  %v13758_v27 = vld [vmem:[#allocation11 + $0x10] sm:$0xff]  }
 0x575   :  { %v9221_v47 = vpop.f32.mrf.mxu1  ;;  %9524 = vmatprep.subr.bf16.mxu1 %v13722_v51  ;;  %11837 = vmatpush3.bf16.msra.mxu0 %v13774_v56  ;;  %v13757_v56 = vld [vmem:[#allocation11 + $0x50] sm:$0xff]  }
 0x576   :  { %11838 = vmatprep.subr.bf16.mxu0 %v13777_v26 }
 0x578   :  { %9525 = vmatpush1.bf16.msra.mxu1 %v13720_v13  ;;  %v13759_v13 = vld [vmem:[#allocation11 + $0x48] sm:$0xff]  }
 0x579   :  { %9526 = vmatprep.subr.bf16.mxu1 %v13725_v50  ;;  %11839 = vmatpush3.bf16.msra.mxu0 %v13778_v30  ;;  %v13760_v50 = vld [vmem:[#allocation11 + $0x8] sm:$0xff]  }
 0x57a   :  { %11840 = vmatprep.subr.bf16.mxu0 %v13781_v3  ;;  %v13761_v3 = vld [vmem:[#allocation11 + $0x40] sm:$0xff]  }
 0x57c   :  { %9527 = vmatpush2.bf16.msra.mxu1 %v13723_v39  ;;  %v9178_v39 = vadd.f32 %v14376_v41, %v14408_v61  ;;  %v13767_v41 = vld [vmem:[#allocation11 + $0x168] sm:$0xff]  }
 0x57d   :  { %9528 = vmatprep.subr.bf16.mxu1 %v13728_v53  ;;  %11841 = vmatpush3.bf16.msra.mxu0 %v13782_v16  ;;  %v13762_v16 = vld [vmem:[#allocation11] sm:$0xff]   ;;  %v13768_v61 = vld [vmem:[#allocation11 + $0x128] sm:$0xff]  }
 0x57e   :  { %11842 = vmatprep.subr.bf16.mxu0 %v13785_v31  ;;  %v9592_v31 = vmax.f32 %v14315_v33, 0.0  ;;  %v13771_v33 = vld [vmem:[#allocation11 + $0x160] sm:$0xff]  }
 0x580   :  { %9529 = vmatpush2.bf16.msra.mxu1 %v13726_v19 }
 0x581   :  { %9530 = vmatprep.subr.bf16.mxu1 %v13731_v5  ;;  %11843 = vmatpush3.bf16.msra.mxu0 %v13786_v37  ;;  %v13763_v5 = vld [vmem:[#allocation11 + $0x178] sm:$0xff]   ;;  %v9597_v37 = vmax.f32 %v9178_v39, 0.0  ;;  %v13802_v39 = vld [vmem:[#allocation11 + $0x200] sm:$0xff]  }
 0x582   :  { %11844 = vmatprep.subr.bf16.mxu0 %v13789_v49  ;;  %v13764_v49 = vld [vmem:[#allocation11 + $0x138] sm:$0xff]  }
 0x584   :  { %9531 = vmatpush2.bf16.msra.mxu1 %v13729_v36  ;;  %v9602_v36 = vpack.c.bf16 %v9592_v31, %v9592_v31  ;;  %v13805_v31 = vld [vmem:[#allocation11 + $0x240] sm:$0xff]  }
 0x585   :  { %9532 = vmatprep.subr.bf16.mxu1 %v13734_v55  ;;  %11845 = vmatpush3.bf16.msra.mxu0 %v13790_v57  ;;  %v13765_v55 = vld [vmem:[#allocation11 + $0x170] sm:$0xff]   ;;  %v9607_v57 = vpack.c.bf16 %v9597_v37, %v9597_v37  ;;  %v4760_v37 = vld [vmem:[#allocation10 + $0x8] sm:$0x3] }
 0x586   :  { %11846 = vmatprep.subr.bf16.mxu0 %v13791_v21  ;;  %v13766_v21 = vld [vmem:[#allocation11 + $0x130] sm:$0xff]  }
 0x588   :  { %9533 = vmatpush2.bf16.msra.mxu1 %v13732_v8  ;;  %v13772_v8 = vld [vmem:[#allocation11 + $0x120] sm:$0xff]  }
 0x589   :  { %9534 = vmatprep.subr.bf16.mxu1 %v13737_v0  ;;  %11847 = vmatpush3.bf16.msra.mxu0 %v13792_v28  ;;  %v13775_v0 = vld [vmem:[#allocation11 + $0x158] sm:$0xff]  }
 0x58a   :  { %11848 = vmatprep.subr.bf16.mxu0 %v13793_v1  ;;  %v13776_v28 = vld [vmem:[#allocation11 + $0x118] sm:$0xff]   ;;  %v13779_v1 = vld [vmem:[#allocation11 + $0x150] sm:$0xff]  }
 0x58c   :  { %9535 = vmatpush2.bf16.msra.mxu1 %v13735_v12  ;;  %v13809_v12 = vld [vmem:[#allocation10] sm:$0xff] }
 0x58d   :  { %9536 = vmatprep.subr.bf16.mxu1 %v13740_v20  ;;  %11849 = vmatpush3.bf16.msra.mxu0 %v13794_v52  ;;  %v4790_v20 = vrot.slane %v13809_v12, %v636_v15  ;;  %v13780_v52 = vld [vmem:[#allocation11 + $0x110] sm:$0xff]  }
 0x590   :  { %9537 = vmatpush2.bf16.msra.mxu1 %v13738_v48  ;;  %v13783_v48 = vld [vmem:[#allocation11 + $0x148] sm:$0xff]  }
 0x591   :  { %9538 = vmatprep.subr.bf16.mxu1 %v13743_v14  ;;  %v4794_v14 = vrot.slane %v13809_v12, %v640_v24 }
 0x593   :  { %v9219_v17 = vadd.f32 %v14421_v7, %v4794_v14 }
 0x594   :  { %9539 = vmatpush2.bf16.msra.mxu1 %v13741_v29  ;;  %v9217_v29 = vadd.f32 %v14419_v25, %v4790_v20  ;;  %v13795_v25 = vld [vmem:[#allocation11 + $0x238] sm:$0xff]  }
 0x595   :  { %9540 = vmatprep.subr.bf16.mxu1 %v13746_v35  ;;  %v13784_v35 = vld [vmem:[#allocation11 + $0x108] sm:$0xff]   ;;  %v9260_v42 = vadd.f32 %v14402_v40, %v9219_v17 }
 0x596   :  { %v9258_v15 = vadd.f32 %v14397_v23, %v9217_v29 }
 0x598   :  { %9541 = vmatpush2.bf16.msra.mxu1 %v13744_v6  ;;  %v9176_v6 = vadd.f32 %v14372_v34, %v14405_v45 }
 0x599   :  { %11768 = vmatprep.subr.bf16.mxu1 %v13747_v59  ;;  %v13787_v59 = vld [vmem:[#allocation11 + $0x140] sm:$0xff]  }
 0x59b   :  { %9543 = vmatmul.mubr.bf16.vlgmr.msra.gmra.mxu1 %v14246_v10  ;;  %v13756_v10 = vld [vmem:[#allocation11 + $0x18] sm:$0xff]  }
 0x59c   :  { %11769 = vmatpush3.bf16.msra.mxu1 %v13748_v58  ;;  %10254 = vmatprep.mubr.bf16.mxu1 %v9603_v38  ;;  %v13788_v58 = vld [vmem:[#allocation11 + $0x100] sm:$0xff]  }
 0x59d   :  { %11770 = vmatprep.subr.bf16.mxu1 %v13749_v9  ;;  %v9596_v9 = vmax.f32 %v9176_v6, 0.0 }
 0x5a0   :  { %11771 = vmatpush3.bf16.msra.mxu1 %v13750_v60  ;;  %v9606_v60 = vpack.c.bf16 %v9596_v9, %v9596_v9 }
 0x5a1   :  { %11772 = vmatprep.subr.bf16.mxu1 %v13751_v11  ;;  %v13796_v11 = vld [vmem:[#allocation11 + $0x230] sm:$0xff]  }
 0x5a4   :  { %v14425_v22 = vpop.f32.mrf.mxu0  ;;  %11773 = vmatpush3.bf16.msra.mxu1 %v13752_v18 }
 0x5a5   :  { %11774 = vmatprep.subr.bf16.mxu1 %v13753_v62 }
 0x5a6   :  { %v14427_v63 = vpop.f32.mrf.mxu0 }
 0x5a8   :  { %v9425_v51 = vpop.f32.mrf.mxu0  ;;  %11775 = vmatpush3.bf16.msra.mxu1 %v13754_v2 }
 0x5a9   :  { %11776 = vmatprep.subr.bf16.mxu1 %v13755_v43  ;;  %v13797_v51 = vld [vmem:[#allocation11 + $0x228] sm:$0xff]  }
 0x5aa   :  { %v9426_v26 = vpop.f32.mrf.mxu0 }
 0x5ac   :  { %11777 = vmatpush3.bf16.msra.mxu1 %v13756_v10 }
 0x5ad   :  { %11778 = vmatprep.subr.bf16.mxu1 %v13757_v56 }
 0x5af   :  { %v9298_v47 = vpop.f32.mrf.mxu1 }
 0x5b0   :  { %11779 = vmatpush3.bf16.msra.mxu1 %v13758_v27  ;;  %v9299_v38 = vadd.f32 %v9298_v47, %v9258_v15  ;;  %v13799_v47 = vld [vmem:[#allocation11 + $0x218] sm:$0xff]  }
 0x5b1   :  { %v9300_v30 = vpop.f32.mrf.mxu1  ;;  %11780 = vmatprep.subr.bf16.mxu1 %v13759_v13 }
 0x5b2   :  { %v9301_v24 = vadd.f32 %v9300_v30, %v9260_v42  ;;  %v9340_v34 = vadd.f32 %v14414_v4, %v9299_v38  ;;  %v13800_v30 = vld [vmem:[#allocation11 + $0x210] sm:$0xff]  }
 0x5b3   :  { %v9302_v53 = vpop.f32.mrf.mxu1 }
 0x5b4   :  { %11781 = vmatpush3.bf16.msra.mxu1 %v13760_v50  ;;  %v9342_v23 = vadd.f32 %v14416_v54, %v9301_v24  ;;  %v13798_v54 = vld [vmem:[#allocation11 + $0x220] sm:$0xff]   ;;  %v13803_v53 = vld [vmem:[#allocation11 + $0x250] sm:$0xff]   ;;  %v11691_v24 = vld [vmem:[#allocation13] ss:$0 sm:$0xff] }
 0x5b5   :  { %v9303_v19 = vpop.f32.mrf.mxu1  ;;  %11782 = vmatprep.subr.bf16.mxu1 %v13761_v3  ;;  %v13801_v3 = vld [vmem:[#allocation11 + $0x208] sm:$0xff]  }
 0x5b8   :  { %11783 = vmatpush3.bf16.msra.mxu1 %v13762_v16  ;;  %v13804_v16 = vld [vmem:[#allocation11 + $0x248] sm:$0xff]  }
 0x5b9   :  { %11812 = vmatprep.subr.bf16.mxu1 %v13763_v5 }
 0x5bb   :  { %10255 = vmatmul.mubr.bf16.vlgmr.msra.gmra.mxu1 %v9602_v36  ;;  %v4798_v36 = vrot.slane %v4760_v37, %v14107_v44 }
 0x5bc   :  { %11813 = vmatpush3.bf16.msra.mxu1 %v13764_v49  ;;  %10334 = vmatprep.mubr.bf16.mxu1 %v9607_v57  ;;  %v4802_v57 = vrot.slane %v4760_v37, %v14110_v46 }
 0x5bd   :  { %11814 = vmatprep.subr.bf16.mxu1 %v13765_v55 }
 0x5c0   :  { %11815 = vmatpush3.bf16.msra.mxu1 %v13766_v21  ;;  %v9422_v21 = vadd.f32 %v14425_v22, %v4798_v36 }
 0x5c1   :  { %11816 = vmatprep.subr.bf16.mxu1 %v13767_v41 }
 0x5c4   :  { %11817 = vmatpush3.bf16.msra.mxu1 %v13768_v61  ;;  %v9424_v61 = vadd.f32 %v14427_v63, %v4802_v57 }
 0x5c5   :  { %11818 = vmatprep.subr.bf16.mxu1 %v13771_v33 }
 0x5c8   :  { %11819 = vmatpush3.bf16.msra.mxu1 %v13772_v8 }
 0x5c9   :  { %11820 = vmatprep.subr.bf16.mxu1 %v13775_v0 }
 0x5cc   :  { %11821 = vmatpush3.bf16.msra.mxu1 %v13776_v28 }
 0x5cd   :  { %11822 = vmatprep.subr.bf16.mxu1 %v13779_v1 }
 0x5d0   :  { %11823 = vmatpush3.bf16.msra.mxu1 %v13780_v52 }
 0x5d1   :  { %11824 = vmatprep.subr.bf16.mxu1 %v13783_v48 }
 0x5d4   :  { %11825 = vmatpush3.bf16.msra.mxu1 %v13784_v35 }
 0x5d5   :  { %11826 = vmatprep.subr.bf16.mxu1 %v13787_v59 }
 0x5d8   :  { %11827 = vmatpush3.bf16.msra.mxu1 %v13788_v58 }
 0x5d9   :  { %10382 = vmatprep.subr.bf16.mxu1 %v13992_v32 }
 0x5db   :  { %v9380_v45 = vpop.f32.mrf.mxu1  ;;  %10335 = vmatmul.mubr.bf16.vlgmr.msra.gmra.mxu1 %v9606_v60 }
 0x5dc   :  { %v9381_v7 = vadd.f32 %v9380_v45, %v9340_v34  ;;  %10383 = vmatpush1.bf16.msra.mxu1 %v13795_v25 }
 0x5dd   :  { %v9382_v18 = vpop.f32.mrf.mxu1  ;;  %10384 = vmatprep.subr.bf16.mxu1 %v13992_v32 }
 0x5de   :  { %v9383_v62 = vadd.f32 %v9382_v18, %v9342_v23  ;;  %v9598_v40 = vmax.f32 %v9381_v7, 0.0 }
 0x5df   :  { %v9384_v2 = vpop.f32.mrf.mxu1 }
 0x5e0   :  { %v9599_v43 = vmax.f32 %v9383_v62, 0.0  ;;  %10385 = vmatpush1.bf16.msra.mxu1 %v13796_v11  ;;  %v9608_v56 = vpack.c.bf16 %v9598_v40, %v9598_v40 }
 0x5e1   :  { %v9385_v10 = vpop.f32.mrf.mxu1  ;;  %10386 = vmatprep.subr.bf16.mxu1 %v13992_v32 }
 0x5e2   :  { %v9609_v4 = vpack.c.bf16 %v9599_v43, %v9599_v43 }
 0x5e4   :  { %v9503_v26 = vpop.f32.mrf.mxu0  ;;  %10374 = vmatprep.mubr.bf16.mxu0 %v9609_v4  ;;  %10387 = vmatpush1.bf16.msra.mxu1 %v13797_v51 }
 0x5e5   :  { %10375 = vmatmul.mubr.bf16.vlgmr.msra.gmra.mxu0 %v9608_v56  ;;  %10388 = vmatprep.subr.bf16.mxu1 %v13992_v32 }
 0x5e6   :  { %v9505_v27 = vpop.f32.mrf.mxu0 }
 0x5e8   :  { %v9507_v13 = vpop.f32.mrf.mxu0  ;;  %10389 = vmatpush1.bf16.msra.mxu1 %v13798_v54 }
 0x5e9   :  { %10390 = vmatprep.subr.bf16.mxu1 %v13992_v32 }
 0x5ea   :  { %v9508_v50 = vpop.f32.mrf.mxu0 }
 0x5ec   :  { %10391 = vmatpush1.bf16.msra.mxu1 %v13799_v47 }
 0x5ed   :  { %10392 = vmatprep.subr.bf16.mxu1 %v13992_v32 }
 0x5f0   :  { %10393 = vmatpush1.bf16.msra.mxu1 %v13800_v30 }
 0x5f1   :  { %10394 = vmatprep.subr.bf16.mxu1 %v13992_v32 }
 0x5f4   :  { %10395 = vmatpush1.bf16.msra.mxu1 %v13801_v3 }
 0x5f5   :  { %10396 = vmatprep.subr.bf16.mxu1 %v13992_v32 }
 0x5f8   :  { %10397 = vmatpush1.bf16.msra.mxu1 %v13802_v39 }
 0x5f9   :  { %10408 = vmatprep.subr.bf16.mxu1 %v13992_v32 }
 0x5fc   :  { %10409 = vmatpush2.bf16.msra.mxu1 %v13803_v53 }
 0x5fd   :  { %10410 = vmatprep.subr.bf16.mxu1 %v13992_v32 }
 0x600   :  { %10411 = vmatpush2.bf16.msra.mxu1 %v13804_v16 }
 0x601   :  { %10412 = vmatprep.subr.bf16.mxu1 %v13992_v32 }
 0x604   :  { %10413 = vmatpush2.bf16.msra.mxu1 %v13805_v31 }
 0x610   :  { %v9585_v19 = vpop.f32.mrf.mxu0 }
 0x612   :  { %v9587_v5 = vpop.f32.mrf.mxu0 }
 0x614   :  { %v9589_v49 = vpop.f32.mrf.mxu0 }
 0x616   :  { %v9590_v55 = vpop.f32.mrf.mxu0 }
 0x61b   :  { %v9462_v41 = vpop.f32.mrf.mxu1 }
 0x61c   :  { %v9463_v33 = vadd.f32 %v9462_v41, %v9422_v21 }
 0x61d   :  { %v9464_v8 = vpop.f32.mrf.mxu1 }
 0x61e   :  { %v9465_v0 = vadd.f32 %v9464_v8, %v9424_v61  ;;  %v9504_v28 = vadd.f32 %v9503_v26, %v9463_v33 }
 0x61f   :  { %v9466_v32 = vpop.f32.mrf.mxu1 }
 0x620   :  { %v9506_v1 = vadd.f32 %v9505_v27, %v9465_v0 }
 0x621   :  { %v9467_v12 = vpop.f32.mrf.mxu1 }
 0x630   :  { %v11806_v20 = vpop.f32.mrf.mxu0 }
 0x632   :  { %v11807_v52 = vpop.f32.mrf.mxu0 }
 0x633   :  { %v11808_v48 = vadd.f32 %v11807_v52, %v11806_v20 }
 0x634   :  { %v11809_v14 = vpop.f32.mrf.mxu0 }
 0x636   :  { %v11810_v44 = vpop.f32.mrf.mxu0 }
 0x65b   :  { %v9544_v29 = vpop.f32.mrf.mxu1 }
 0x65c   :  { %v9545_v35 = vadd.f32 %v9544_v29, %v9504_v28 }
 0x65d   :  { %v9546_v46 = vpop.f32.mrf.mxu1 }
 0x65e   :  { %v9586_v6 = vadd.f32 %v9585_v19, %v9545_v35  ;;  %v9547_v22 = vadd.f32 %v9546_v46, %v9506_v1 }
 0x65f   :  { %v9548_v59 = vpop.f32.mrf.mxu1 }
 0x660   :  { %v9588_v17 = vadd.f32 %v9587_v5, %v9547_v22  ;;  %v9600_v63 = vmax.f32 %v9586_v6, 0.0 }
 0x661   :  { %v9549_v15 = vpop.f32.mrf.mxu1 }
 0x662   :  { %v9601_v58 = vmax.f32 %v9588_v17, 0.0  ;;  %v9610_v38 = vpack.c.bf16 %v9600_v63, %v9600_v63 }
 0x664   :  { %v9611_v9 = vpack.c.bf16 %v9601_v58, %v9601_v58 }
 0x666   :  { %11767 = vmatprep.mubr.msk.bf16.mxu1 %vm8563_vm1, %v9611_v9 }
 0x667   :  { %10415 = vmatmul.mubr.bf16.vlgmr.msra.gmra.mxu1 %v9610_v38 }
 0x67b   :  { %v11784_v42 = vpop.f32.mrf.mxu1 }
 0x67d   :  { %v11785_v25 = vpop.f32.mrf.mxu1 }
 0x67e   :  { %v11786_v60 = vadd.f32 %v11785_v25, %v11784_v42 }
 0x67f   :  { %v11787_v34 = vpop.f32.mrf.mxu1 }
 0x680   :  { %v10257_v45 = vadd.f32 %v11786_v60, %v11691_v24 }
 0x681   :  { %v11788_v7 = vpop.f32.mrf.mxu1 }
 0x682   :  { %v10297_v23 = vadd.f32 %v11808_v48, %v10257_v45 }
 0x69b   :  { %v11828_v11 = vpop.f32.mrf.mxu1 }
 0x69d   :  { %v11829_v18 = vpop.f32.mrf.mxu1 }
 0x69e   :  { %v11830_v62 = vadd.f32 %v11829_v18, %v11828_v11 }
 0x69f   :  { %v11831_v40 = vpop.f32.mrf.mxu1 }
 0x6a0   :  { %v10337_v2 = vadd.f32 %v11830_v62, %v10297_v23 }
 0x6a1   :  { %v11832_v43 = vpop.f32.mrf.mxu1 }
 0x6a5   :  { %v11850_v51 = vpop.f32.mrf.mxu0 }
 0x6a7   :  { %v11851_v10 = vpop.f32.mrf.mxu0 }
 0x6a8   :  { %v11852_v4 = vadd.f32 %v11851_v10, %v11850_v51 }
 0x6a9   :  { %v11853_v56 = vpop.f32.mrf.mxu0 }
 0x6aa   :  { %v10377_v26 = vadd.f32 %v11852_v4, %v10337_v2 }
 0x6ab   :  { %v11854_v54 = vpop.f32.mrf.mxu0 }
 0x727   :  { %v10416_v27 = vpop.f32.mrf.mxu1 }
 0x728   :  { %v10417_v13 = vadd.f32 %v10416_v27, %v10377_v26 }
 0x729   :  { %v10418_v47 = vpop.f32.mrf.mxu1 }
 0x72a   :  { %10422 = vst [vmem:[#allocation14] sm:$0x3] %v10417_v13 }
 0x72b   :  { %v10419_v50 = vpop.f32.mrf.mxu1 }
 0x72c   :  { %13961 = shalt.err (!%p13958_p11)
}
 0x72d   :  { %10432 = dma.vmem_to_hbm [thread:$0]  %s10430_s6, 32, %s14470_s7, [#allocation4]   ;;  %v10420_v30 = vpop.f32.mrf.mxu1 }
 0x72e   :  { %13978 = dma.done.wait [#allocation4], 32  }
 0x72f   :  { %13979 = vsyncadd [#allocation4], 4294967264 }
 0x730   :  { %10436 = vsyncpa [#allocation3], 1 }
 0x731   :  { %10437 = vsyncpa [#allocation6], 1 }
 0x732   :  { %10438 = vsyncpa [#allocation9], 1 }
 0x733   :  { %10439 = vsyncpa [#allocation12], 1 }
 0x734   :  { %10440 = vsyncpa [#allocation4], 1 }

</bundles_post_ra>
